<compile_context>
chip_gen: v6e
topology: v6e:2x2x1
jax: 0.10.0
libtpu: 0.0.40
codegen_flags: <defaults>
</compile_context>

<pallas_src>
import functools

import jax
import jax.numpy as jnp
from jax import lax
from jax.experimental import pallas as pl
from jax.experimental.pallas import tpu as pltpu

LANE = 128
SUBLANE = 8


def _round_up(x, m):
    return (x + m - 1) // m * m


# ---------------------------------------------------------------------------
# Shared math helpers (used by both the Pallas kernel and the JAX reference)
# ---------------------------------------------------------------------------
def _layer_norm(x, g, b, eps=1e-5):
    mu = jnp.mean(x, axis=-1, keepdims=True)
    var = jnp.mean((x - mu) * (x - mu), axis=-1, keepdims=True)
    return (x - mu) * lax.rsqrt(var + eps) * g + b


def _gelu_tanh(x):
    c = 0.7978845608028654  # sqrt(2/pi)
    return 0.5 * x * (1.0 + jnp.tanh(c * (x + 0.044715 * x * x * x)))


def _masked_softmax(scores, keep_mask):
    scores = jnp.where(keep_mask, scores, -1e30)
    m = jnp.max(scores, axis=-1, keepdims=True)
    p = jnp.exp(scores - m)
    return p / jnp.sum(p, axis=-1, keepdims=True)


# ---------------------------------------------------------------------------
# Fused Pallas kernel: whole TransformerCritic forward for one batch tile
# ---------------------------------------------------------------------------
def _critic_kernel(state_ref, act_ref,
                   ws_ref, bs_ref, wa_ref, ba_ref, pe_ref,
                   win_ref, bin_ref, wo_ref, bo_ref,
                   g1_ref, be1_ref,
                   wf1_ref, bf1_ref, wf2_ref, bf2_ref,
                   g2_ref, be2_ref,
                   wq_ref, bq_ref,
                   o_ref, *, nhead):
    f32 = jnp.float32
    bf16 = jnp.bfloat16

    tb = state_ref.shape[0]
    S = act_ref.shape[1]
    H = ws_ref.shape[1]
    hd = H // nhead
    rows = tb * S
    scale = 1.0 / (hd ** 0.5)

    # ---- embeddings + positional encoding: combined = s_emb + a_emb + pe
    s_emb = jnp.dot(state_ref[...].astype(bf16), ws_ref[...],
                    preferred_element_type=f32) + bs_ref[...]          # (tb,H)
    a_flat = act_ref[...].reshape(rows, act_ref.shape[2])
    a_emb = jnp.dot(a_flat.astype(bf16), wa_ref[...],
                    preferred_element_type=f32) + ba_ref[...]          # (rows,H)
    x = (s_emb.reshape(tb, 1, H) + a_emb.reshape(tb, S, H)
         + pe_ref[...][None, :, :])                                    # (tb,S,H)
    x2d = x.reshape(rows, H)

    # ---- causal multi-head self-attention (post-norm layer, eval mode)
    qkv = jnp.dot(x2d.astype(bf16), win_ref[...],
                  preferred_element_type=f32) + bin_ref[...]           # (rows,3H)
    q = qkv[:, 0:H] * scale
    k = qkv[:, H:2 * H]
    v = qkv[:, 2 * H:3 * H]

    row_i = lax.broadcasted_iota(jnp.int32, (S, S), 0)
    col_i = lax.broadcasted_iota(jnp.int32, (S, S), 1)
    keep = (col_i <= row_i)[None, :, :]                                # (1,S,S)

    wo = wo_ref[...]
    attn = None
    for h in range(nhead):                 # static loop, nhead is small
        sl = slice(h * hd, (h + 1) * hd)
        qh = q[:, sl].reshape(tb, S, hd).astype(bf16)
        kh = k[:, sl].reshape(tb, S, hd).astype(bf16)
        vh = v[:, sl].reshape(tb, S, hd).astype(bf16)
        sc = jnp.einsum("bsd,btd->bst", qh, kh,
                        preferred_element_type=f32)                    # (tb,S,S)
        p = _masked_softmax(sc, keep)
        ctx = jnp.einsum("bst,btd->bsd", p.astype(bf16), vh,
                         preferred_element_type=f32)                   # (tb,S,hd)
        # out-proj as a per-head partial sum (avoids a lane-dim concat)
        part = jnp.dot(ctx.reshape(rows, hd).astype(bf16), wo[sl, :],
                       preferred_element_type=f32)                     # (rows,H)
        attn = part if attn is None else attn + part
    attn = attn + bo_ref[...]

    x1 = _layer_norm(x2d + attn, g1_ref[...], be1_ref[...])

    # ---- feed-forward (GELU) + second post-norm
    h1 = jnp.dot(x1.astype(bf16), wf1_ref[...],
                 preferred_element_type=f32) + bf1_ref[...]
    h1 = _gelu_tanh(h1)
    ff = jnp.dot(h1.astype(bf16), wf2_ref[...],
                 preferred_element_type=f32) + bf2_ref[...]
    x2 = _layer_norm(x1 + ff, g2_ref[...], be2_ref[...])

    # ---- per-position q heads: q[b, i] = x2[b, i, :] . wq[i, :] + bq[i]
    x3 = x2.reshape(tb, S, H)
    q_all = jnp.sum(x3 * wq_ref[...][None, :, :], axis=-1) + bq_ref[...]
    o_ref[...] = q_all.astype(o_ref.dtype)


# ---------------------------------------------------------------------------
# Wrapper: padding, batch tiling, pallas_call configuration
# ---------------------------------------------------------------------------
@functools.partial(jax.jit, static_argnames=("nhead",))
def _forward_impl(state, actions, params, nhead):
    f32 = jnp.float32
    bf16 = jnp.bfloat16
    B, S, A = actions.shape
    Sd = state.shape[1]
    H = params["state_w"].shape[1]
    F = params["ff1_w"].shape[1]

    # batch tiling (the only big axis); pad ragged contraction dims to lanes
    tile_b = min(128, _round_up(B, SUBLANE))
    Bp = _round_up(B, tile_b)
    Sdp = _round_up(Sd, LANE)
    Ap = _round_up(A, LANE)

    state_p = jnp.pad(state, ((0, Bp - B), (0, Sdp - Sd)))
    act_p = jnp.pad(actions, ((0, Bp - B), (0, 0), (0, Ap - A)))

    # matmul weights in bf16 (MXU-native, halves weight DMA traffic);
    # biases / LN params / PE / q-head weights stay f32
    ws = jnp.pad(params["state_w"], ((0, Sdp - Sd), (0, 0))).astype(bf16)
    wa = jnp.pad(params["action_w"], ((0, Ap - A), (0, 0))).astype(bf16)
    bs = params["state_b"].reshape(1, H)
    ba = params["action_b"].reshape(1, H)
    pe = params["pe"][:S]
    win = params["attn_in_w"].astype(bf16)
    b_in = params["attn_in_b"].reshape(1, 3 * H)
    wo = params["attn_out_w"].astype(bf16)
    bo = params["attn_out_b"].reshape(1, H)
    g1 = params["ln1_g"].reshape(1, H)
    be1 = params["ln1_b"].reshape(1, H)
    wf1 = params["ff1_w"].astype(bf16)
    bf1 = params["ff1_b"].reshape(1, F)
    wf2 = params["ff2_w"].astype(bf16)
    bf2 = params["ff2_b"].reshape(1, H)
    g2 = params["ln2_g"].reshape(1, H)
    be2 = params["ln2_b"].reshape(1, H)
    wq = params["q_w"][:S]
    bq = params["q_b"][:S].reshape(1, S)

    def resident(a):
        # same block index every grid step -> fetched once, stays in VMEM
        return pl.BlockSpec(a.shape, lambda i: (0,) * a.ndim)

    q_all = pl.pallas_call(
        functools.partial(_critic_kernel, nhead=nhead),
        out_shape=jax.ShapeDtypeStruct((Bp, S), f32),
        grid=(Bp // tile_b,),
        in_specs=[
            pl.BlockSpec((tile_b, Sdp), lambda i: (i, 0)),
            pl.BlockSpec((tile_b, S, Ap), lambda i: (i, 0, 0)),
            resident(ws), resident(bs), resident(wa), resident(ba),
            resident(pe),
            resident(win), resident(b_in), resident(wo), resident(bo),
            resident(g1), resident(be1),
            resident(wf1), resident(bf1), resident(wf2), resident(bf2),
            resident(g2), resident(be2),
            resident(wq), resident(bq),
        ],
        out_specs=pl.BlockSpec((tile_b, S), lambda i: (i, 0)),
        compiler_params=pltpu.CompilerParams(
            dimension_semantics=("parallel",),      # megacore sharding on v7x
            vmem_limit_bytes=32 * 1024 * 1024,      # sized for v7x 64 MiB VMEM
        ),
    )(state_p, act_p,
      ws, bs, wa, ba, pe,
      win, b_in, wo, bo,
      g1, be1, wf1, bf1, wf2, bf2, g2, be2,
      wq, bq)
    return q_all[:B]


def transformer_critic_forward(state, actions, params, nhead=2):
    """Returns a list of (B, 1) q-value arrays, one per sequence position
    (matches the PyTorch module's output format)."""
    S = actions.shape[1]
    q_all = _forward_impl(state, actions, params, nhead=nhead)
    return [q_all[:, i:i + 1] for i in range(S)]


# ---------------------------------------------------------------------------
# Deterministic synthetic parameters
# ---------------------------------------------------------------------------
def init_params(key, state_dim, action_dim, hidden_dim=128, max_seq_len=8,
                ffn_dim=None):
    if ffn_dim is None:
        ffn_dim = 2 * hidden_dim
    ks = jax.random.split(key, 16)
    s = 0.05

    def lin(kk, fi, fo):
        kw, kb = jax.random.split(kk)
        return (jax.random.normal(kw, (fi, fo), jnp.float32) * s,
                jax.random.normal(kb, (fo,), jnp.float32) * s)

    state_w, state_b = lin(ks[0], state_dim, hidden_dim)
    action_w, action_b = lin(ks[1], action_dim, hidden_dim)
    attn_in_w, attn_in_b = lin(ks[2], hidden_dim, 3 * hidden_dim)
    attn_out_w, attn_out_b = lin(ks[3], hidden_dim, hidden_dim)
    ff1_w, ff1_b = lin(ks[4], hidden_dim, ffn_dim)
    ff2_w, ff2_b = lin(ks[5], ffn_dim, hidden_dim)

    kqw, kqb = jax.random.split(ks[6])
    q_w = jax.random.normal(kqw, (max_seq_len, hidden_dim), jnp.float32) * s
    q_b = jax.random.normal(kqb, (max_seq_len,), jnp.float32) * s

    ln1_g = 1.0 + s * jax.random.normal(ks[7], (hidden_dim,), jnp.float32)
    ln1_b = s * jax.random.normal(ks[8], (hidden_dim,), jnp.float32)
    ln2_g = 1.0 + s * jax.random.normal(ks[9], (hidden_dim,), jnp.float32)
    ln2_b = s * jax.random.normal(ks[10], (hidden_dim,), jnp.float32)

    # PositionalEncoding buffer (sin/cos), identical to the PyTorch module
    pos = jnp.arange(max_seq_len, dtype=jnp.float32)[:, None]
    div = jnp.exp(jnp.arange(0, hidden_dim, 2, dtype=jnp.float32)
                  * (-jnp.log(10000.0) / hidden_dim))
    pe = jnp.zeros((max_seq_len, hidden_dim), jnp.float32)
    pe = pe.at[:, 0::2].set(jnp.sin(pos * div))
    pe = pe.at[:, 1::2].set(jnp.cos(pos * div))

    return dict(
        state_w=state_w, state_b=state_b,
        action_w=action_w, action_b=action_b,
        pe=pe,
        attn_in_w=attn_in_w, attn_in_b=attn_in_b,
        attn_out_w=attn_out_w, attn_out_b=attn_out_b,
        ln1_g=ln1_g, ln1_b=ln1_b,
        ff1_w=ff1_w, ff1_b=ff1_b,
        ff2_w=ff2_w, ff2_b=ff2_b,
        ln2_g=ln2_g, ln2_b=ln2_b,
        q_w=q_w, q_b=q_b,
    )


# ---------------------------------------------------------------------------
# Pure-JAX reference (correctness check only)
# ---------------------------------------------------------------------------
def _ref_forward(state, actions, params, nhead, dot_dtype):
    """dot_dtype selects matmul-operand precision so the kernel (bf16 MXU
    inputs, f32 accumulation) can be checked tightly and f32 loosely."""
    f32 = jnp.float32
    B, S, _ = actions.shape
    H = params["state_w"].shape[1]
    hd = H // nhead
    scale = 1.0 / (hd ** 0.5)
    dd = lambda a: a.astype(dot_dtype)

    se = jnp.einsum("bi,ih->bh", dd(state), dd(params["state_w"]),
                    preferred_element_type=f32) + params["state_b"]
    ae = jnp.einsum("bsi,ih->bsh", dd(actions), dd(params["action_w"]),
                    preferred_element_type=f32) + params["action_b"]
    x = se[:, None, :] + ae + params["pe"][:S][None]

    qkv = jnp.einsum("bsh,hk->bsk", dd(x), dd(params["attn_in_w"]),
                     preferred_element_type=f32) + params["attn_in_b"]
    q, k, v = qkv[..., :H], qkv[..., H:2 * H], qkv[..., 2 * H:]
    q = (q * scale).reshape(B, S, nhead, hd).transpose(0, 2, 1, 3)
    k = k.reshape(B, S, nhead, hd).transpose(0, 2, 1, 3)
    v = v.reshape(B, S, nhead, hd).transpose(0, 2, 1, 3)
    sc = jnp.einsum("bhsd,bhtd->bhst", dd(q), dd(k),
                    preferred_element_type=f32)
    keep = (jnp.arange(S)[:, None] >= jnp.arange(S)[None, :])[None, None]
    p = _masked_softmax(sc, keep)
    ctx = jnp.einsum("bhst,bhtd->bhsd", dd(p), dd(v),
                     preferred_element_type=f32)
    ctx = ctx.transpose(0, 2, 1, 3).reshape(B, S, H)
    attn = jnp.einsum("bsh,hk->bsk", dd(ctx), dd(params["attn_out_w"]),
                      preferred_element_type=f32) + params["attn_out_b"]
    x1 = _layer_norm(x + attn, params["ln1_g"], params["ln1_b"])
    h1 = jnp.einsum("bsh,hf->bsf", dd(x1), dd(params["ff1_w"]),
                    preferred_element_type=f32) + params["ff1_b"]
    h1 = _gelu_tanh(h1)
    ff = jnp.einsum("bsf,fh->bsh", dd(h1), dd(params["ff2_w"]),
                    preferred_element_type=f32) + params["ff2_b"]
    x2 = _layer_norm(x1 + ff, params["ln2_g"], params["ln2_b"])
    return (jnp.einsum("bsh,sh->bs", x2, params["q_w"][:S])
            + params["q_b"][:S][None])


if __name__ == "__main__":
    batch, state_dim, action_dim = 2, 16, 4
    hidden_dim, max_seq_len, nhead = 128, 8, 2

    key = jax.random.PRNGKey(0)
    k_state, k_act, k_par = jax.random.split(key, 3)
    state = jax.random.normal(k_state, (batch, state_dim), jnp.float32)
    actions = jax.random.normal(k_act, (batch, max_seq_len, action_dim),
                                jnp.float32)
    params = init_params(k_par, state_dim, action_dim, hidden_dim, max_seq_len)

    q_values = transformer_critic_forward(state, actions, params, nhead=nhead)
    jax.block_until_ready(q_values)

    assert len(q_values) == max_seq_len
    assert all(q.shape == (batch, 1) for q in q_values)
    q_all = jnp.concatenate(q_values, axis=1)

    # tight check against a reference mimicking the kernel's bf16 MXU operands
    ref_bf16 = _ref_forward(state, actions, params, nhead, jnp.bfloat16)
    # loose check against the module's full-f32 semantics
    ref_f32 = _ref_forward(state, actions, params, nhead, jnp.float32)

    assert jnp.allclose(q_all, ref_bf16, atol=2e-3, rtol=2e-3), (
        float(jnp.max(jnp.abs(q_all - ref_bf16))))
    assert jnp.allclose(q_all, ref_f32, atol=5e-2, rtol=5e-2), (
        float(jnp.max(jnp.abs(q_all - ref_f32))))

    print("KERNEL_OK")
</pallas_src>

<mosaic_0001>
module attributes {stable_mosaic.version = 11 : i64} {
  func.func @_critic_kernel(%arg0: i32, %arg1: memref<8x128xf32, #tpu.memory_space<vmem>>, %arg2: memref<8x8x128xf32, #tpu.memory_space<vmem>>, %arg3: memref<128x128xbf16, #tpu.memory_space<vmem>>, %arg4: memref<1x128xf32, #tpu.memory_space<vmem>>, %arg5: memref<128x128xbf16, #tpu.memory_space<vmem>>, %arg6: memref<1x128xf32, #tpu.memory_space<vmem>>, %arg7: memref<8x128xf32, #tpu.memory_space<vmem>>, %arg8: memref<128x384xbf16, #tpu.memory_space<vmem>>, %arg9: memref<1x384xf32, #tpu.memory_space<vmem>>, %arg10: memref<128x128xbf16, #tpu.memory_space<vmem>>, %arg11: memref<1x128xf32, #tpu.memory_space<vmem>>, %arg12: memref<1x128xf32, #tpu.memory_space<vmem>>, %arg13: memref<1x128xf32, #tpu.memory_space<vmem>>, %arg14: memref<128x256xbf16, #tpu.memory_space<vmem>>, %arg15: memref<1x256xf32, #tpu.memory_space<vmem>>, %arg16: memref<256x128xbf16, #tpu.memory_space<vmem>>, %arg17: memref<1x128xf32, #tpu.memory_space<vmem>>, %arg18: memref<1x128xf32, #tpu.memory_space<vmem>>, %arg19: memref<1x128xf32, #tpu.memory_space<vmem>>, %arg20: memref<8x128xf32, #tpu.memory_space<vmem>>, %arg21: memref<1x8xf32, #tpu.memory_space<vmem>>, %arg22: memref<8x8xf32, #tpu.memory_space<vmem>>) attributes {dimension_semantics = [#tpu.dimension_semantics<parallel>], iteration_bounds = array<i64: 1>, scalar_prefetch = 0 : i64, scratch_operands = 0 : i64, tpu.core_type = #tpu.core_type<tc>, window_params = [{transform_indices = @transform_0, window_bounds = array<i64: 8, 128>}, {transform_indices = @transform_1, window_bounds = array<i64: 8, 8, 128>}, {pipeline_mode = #tpu.pipeline_mode<synchronous>, transform_indices = @transform_2, window_bounds = array<i64: 128, 128>}, {pipeline_mode = #tpu.pipeline_mode<synchronous>, transform_indices = @transform_3, window_bounds = array<i64: 1, 128>}, {pipeline_mode = #tpu.pipeline_mode<synchronous>, transform_indices = @transform_4, window_bounds = array<i64: 128, 128>}, {pipeline_mode = #tpu.pipeline_mode<synchronous>, transform_indices = @transform_5, window_bounds = array<i64: 1, 128>}, {pipeline_mode = #tpu.pipeline_mode<synchronous>, transform_indices = @transform_6, window_bounds = array<i64: 8, 128>}, {pipeline_mode = #tpu.pipeline_mode<synchronous>, transform_indices = @transform_7, window_bounds = array<i64: 128, 384>}, {pipeline_mode = #tpu.pipeline_mode<synchronous>, transform_indices = @transform_8, window_bounds = array<i64: 1, 384>}, {pipeline_mode = #tpu.pipeline_mode<synchronous>, transform_indices = @transform_9, window_bounds = array<i64: 128, 128>}, {pipeline_mode = #tpu.pipeline_mode<synchronous>, transform_indices = @transform_10, window_bounds = array<i64: 1, 128>}, {pipeline_mode = #tpu.pipeline_mode<synchronous>, transform_indices = @transform_11, window_bounds = array<i64: 1, 128>}, {pipeline_mode = #tpu.pipeline_mode<synchronous>, transform_indices = @transform_12, window_bounds = array<i64: 1, 128>}, {pipeline_mode = #tpu.pipeline_mode<synchronous>, transform_indices = @transform_13, window_bounds = array<i64: 128, 256>}, {pipeline_mode = #tpu.pipeline_mode<synchronous>, transform_indices = @transform_14, window_bounds = array<i64: 1, 256>}, {pipeline_mode = #tpu.pipeline_mode<synchronous>, transform_indices = @transform_15, window_bounds = array<i64: 256, 128>}, {pipeline_mode = #tpu.pipeline_mode<synchronous>, transform_indices = @transform_16, window_bounds = array<i64: 1, 128>}, {pipeline_mode = #tpu.pipeline_mode<synchronous>, transform_indices = @transform_17, window_bounds = array<i64: 1, 128>}, {pipeline_mode = #tpu.pipeline_mode<synchronous>, transform_indices = @transform_18, window_bounds = array<i64: 1, 128>}, {pipeline_mode = #tpu.pipeline_mode<synchronous>, transform_indices = @transform_19, window_bounds = array<i64: 8, 128>}, {pipeline_mode = #tpu.pipeline_mode<synchronous>, transform_indices = @transform_20, window_bounds = array<i64: 1, 8>}, {transform_indices = @transform_21, window_bounds = array<i64: 8, 8>}]} {
    %c0 = arith.constant 0 : index
    %c0_0 = arith.constant 0 : index
    %0 = vector.load %arg1[%c0, %c0_0] : memref<8x128xf32, #tpu.memory_space<vmem>>, vector<8x128xf32>
    %1 = arith.truncf %0 : vector<8x128xf32> to vector<8x128xbf16>
    %c0_1 = arith.constant 0 : index
    %c0_2 = arith.constant 0 : index
    %2 = vector.load %arg3[%c0_1, %c0_2] : memref<128x128xbf16, #tpu.memory_space<vmem>>, vector<128x128xbf16>
    %cst = arith.constant dense<0.000000e+00> : vector<8x128xf32>
    %3 = tpu.matmul %1, %2, %cst {dimension_numbers = #tpu.dot_dimension_numbers<[1], [0], [0], [1], [0, 0, 1, 1], [], []>} : vector<8x128xbf16>, vector<128x128xbf16>, vector<8x128xf32> -> vector<8x128xf32>
    %c0_3 = arith.constant 0 : index
    %c0_4 = arith.constant 0 : index
    %4 = vector.load %arg4[%c0_3, %c0_4] : memref<1x128xf32, #tpu.memory_space<vmem>>, vector<1x128xf32>
    %5 = vector.broadcast %4 : vector<1x128xf32> to vector<8x128xf32>
    %6 = arith.addf %3, %5 : vector<8x128xf32>
    %c0_5 = arith.constant 0 : index
    %c0_6 = arith.constant 0 : index
    %c0_7 = arith.constant 0 : index
    %7 = vector.load %arg2[%c0_5, %c0_6, %c0_7] : memref<8x8x128xf32, #tpu.memory_space<vmem>>, vector<8x8x128xf32>
    %8 = vector.shape_cast %7 : vector<8x8x128xf32> to vector<64x128xf32>
    %9 = arith.truncf %8 : vector<64x128xf32> to vector<64x128xbf16>
    %c0_8 = arith.constant 0 : index
    %c0_9 = arith.constant 0 : index
    %10 = vector.load %arg5[%c0_8, %c0_9] : memref<128x128xbf16, #tpu.memory_space<vmem>>, vector<128x128xbf16>
    %cst_10 = arith.constant dense<0.000000e+00> : vector<64x128xf32>
    %11 = tpu.matmul %9, %10, %cst_10 {dimension_numbers = #tpu.dot_dimension_numbers<[1], [0], [0], [1], [0, 0, 1, 1], [], []>} : vector<64x128xbf16>, vector<128x128xbf16>, vector<64x128xf32> -> vector<64x128xf32>
    %c0_11 = arith.constant 0 : index
    %c0_12 = arith.constant 0 : index
    %12 = vector.load %arg6[%c0_11, %c0_12] : memref<1x128xf32, #tpu.memory_space<vmem>>, vector<1x128xf32>
    %13 = vector.broadcast %12 : vector<1x128xf32> to vector<64x128xf32>
    %14 = arith.addf %11, %13 : vector<64x128xf32>
    %15 = vector.shape_cast %6 : vector<8x128xf32> to vector<8x1x128xf32>
    %16 = vector.shape_cast %14 : vector<64x128xf32> to vector<8x8x128xf32>
    %17 = vector.broadcast %15 : vector<8x1x128xf32> to vector<8x8x128xf32>
    %18 = arith.addf %17, %16 : vector<8x8x128xf32>
    %c0_13 = arith.constant 0 : index
    %c0_14 = arith.constant 0 : index
    %19 = vector.load %arg7[%c0_13, %c0_14] : memref<8x128xf32, #tpu.memory_space<vmem>>, vector<8x128xf32>
    %20 = vector.shape_cast %19 : vector<8x128xf32> to vector<1x8x128xf32>
    %21 = vector.broadcast %20 : vector<1x8x128xf32> to vector<8x8x128xf32>
    %22 = arith.addf %18, %21 : vector<8x8x128xf32>
    %23 = vector.shape_cast %22 : vector<8x8x128xf32> to vector<64x128xf32>
    %24 = arith.truncf %23 : vector<64x128xf32> to vector<64x128xbf16>
    %c0_15 = arith.constant 0 : index
    %c0_16 = arith.constant 0 : index
    %25 = vector.load %arg8[%c0_15, %c0_16] : memref<128x384xbf16, #tpu.memory_space<vmem>>, vector<128x384xbf16>
    %cst_17 = arith.constant dense<0.000000e+00> : vector<64x384xf32>
    %26 = tpu.matmul %24, %25, %cst_17 {dimension_numbers = #tpu.dot_dimension_numbers<[1], [0], [0], [1], [0, 0, 1, 1], [], []>} : vector<64x128xbf16>, vector<128x384xbf16>, vector<64x384xf32> -> vector<64x384xf32>
    %c0_18 = arith.constant 0 : index
    %c0_19 = arith.constant 0 : index
    %27 = vector.load %arg9[%c0_18, %c0_19] : memref<1x384xf32, #tpu.memory_space<vmem>>, vector<1x384xf32>
    %28 = vector.broadcast %27 : vector<1x384xf32> to vector<64x384xf32>
    %29 = arith.addf %26, %28 : vector<64x384xf32>
    %30 = vector.extract_strided_slice %29 {offsets = [0, 0], sizes = [64, 128], strides = [1, 1]} : vector<64x384xf32> to vector<64x128xf32>
    %cst_20 = arith.constant 1.250000e-01 : f32
    %31 = vector.broadcast %cst_20 : f32 to vector<64x128xf32>
    %32 = arith.mulf %30, %31 : vector<64x128xf32>
    %33 = vector.extract_strided_slice %29 {offsets = [0, 128], sizes = [64, 128], strides = [1, 1]} : vector<64x384xf32> to vector<64x128xf32>
    %34 = vector.extract_strided_slice %29 {offsets = [0, 256], sizes = [64, 128], strides = [1, 1]} : vector<64x384xf32> to vector<64x128xf32>
    %35 = tpu.iota {dimensions = array<i32: 0>} : vector<8x8xi32>
    %36 = tpu.iota {dimensions = array<i32: 1>} : vector<8x8xi32>
    %37 = arith.cmpi sle, %36, %35 : vector<8x8xi32>
    %38 = vector.shape_cast %37 : vector<8x8xi1> to vector<1x8x8xi1>
    %c0_21 = arith.constant 0 : index
    %c0_22 = arith.constant 0 : index
    %39 = vector.load %arg10[%c0_21, %c0_22] : memref<128x128xbf16, #tpu.memory_space<vmem>>, vector<128x128xbf16>
    %40 = vector.extract_strided_slice %32 {offsets = [0, 0], sizes = [64, 64], strides = [1, 1]} : vector<64x128xf32> to vector<64x64xf32>
    %41 = vector.shape_cast %40 : vector<64x64xf32> to vector<8x8x64xf32>
    %42 = arith.truncf %41 : vector<8x8x64xf32> to vector<8x8x64xbf16>
    %43 = vector.extract_strided_slice %33 {offsets = [0, 0], sizes = [64, 64], strides = [1, 1]} : vector<64x128xf32> to vector<64x64xf32>
    %44 = vector.shape_cast %43 : vector<64x64xf32> to vector<8x8x64xf32>
    %45 = arith.truncf %44 : vector<8x8x64xf32> to vector<8x8x64xbf16>
    %46 = vector.extract_strided_slice %34 {offsets = [0, 0], sizes = [64, 64], strides = [1, 1]} : vector<64x128xf32> to vector<64x64xf32>
    %47 = vector.shape_cast %46 : vector<64x64xf32> to vector<8x8x64xf32>
    %48 = arith.truncf %47 : vector<8x8x64xf32> to vector<8x8x64xbf16>
    "tpu.trace_start"() <{level = 10 : i32, message = "bsd,btd->bst"}> : () -> ()
    %cst_23 = arith.constant dense<0.000000e+00> : vector<8x8x8xf32>
    %49 = tpu.matmul %42, %45, %cst_23 {dimension_numbers = #tpu.dot_dimension_numbers<[2], [2], [1], [1], [0, 0, 0, 1, 1, 1], [0], [0]>} : vector<8x8x64xbf16>, vector<8x8x64xbf16>, vector<8x8x8xf32> -> vector<8x8x8xf32>
    %cst_24 = arith.constant -1.000000e+30 : f32
    "tpu.trace_stop"() : () -> ()
    %50 = vector.shape_cast %38 : vector<1x8x8xi1> to vector<1x8x8xi1>
    %51 = vector.broadcast %50 : vector<1x8x8xi1> to vector<8x8x8xi1>
    %52 = vector.broadcast %cst_24 : f32 to vector<8x8x8xf32>
    %53 = arith.select %51, %49, %52 : vector<8x8x8xi1>, vector<8x8x8xf32>
    %cst_25 = arith.constant dense<0xFF800000> : vector<8x8xf32>
    %54 = vector.multi_reduction <maximumf>, %53, %cst_25 [2] : vector<8x8x8xf32> to vector<8x8xf32>
    %55 = vector.shape_cast %54 : vector<8x8xf32> to vector<8x8x1xf32>
    %56 = vector.broadcast %55 : vector<8x8x1xf32> to vector<8x8x8xf32>
    %57 = arith.subf %53, %56 : vector<8x8x8xf32>
    %58 = math.exp %57 : vector<8x8x8xf32>
    %cst_26 = arith.constant dense<0.000000e+00> : vector<8x8xf32>
    %59 = vector.multi_reduction <add>, %58, %cst_26 [2] : vector<8x8x8xf32> to vector<8x8xf32>
    %60 = vector.shape_cast %59 : vector<8x8xf32> to vector<8x8x1xf32>
    %61 = vector.broadcast %60 : vector<8x8x1xf32> to vector<8x8x8xf32>
    %62 = arith.divf %58, %61 : vector<8x8x8xf32>
    %63 = arith.truncf %62 : vector<8x8x8xf32> to vector<8x8x8xbf16>
    "tpu.trace_start"() <{level = 10 : i32, message = "bst,btd->bsd"}> : () -> ()
    %cst_27 = arith.constant dense<0.000000e+00> : vector<8x8x64xf32>
    %64 = tpu.matmul %63, %48, %cst_27 {dimension_numbers = #tpu.dot_dimension_numbers<[2], [1], [1], [2], [0, 0, 0, 1, 1, 2], [0], [0]>} : vector<8x8x8xbf16>, vector<8x8x64xbf16>, vector<8x8x64xf32> -> vector<8x8x64xf32>
    "tpu.trace_stop"() : () -> ()
    %65 = vector.shape_cast %64 : vector<8x8x64xf32> to vector<64x64xf32>
    %66 = arith.truncf %65 : vector<64x64xf32> to vector<64x64xbf16>
    %67 = vector.extract_strided_slice %39 {offsets = [0, 0], sizes = [64, 128], strides = [1, 1]} : vector<128x128xbf16> to vector<64x128xbf16>
    %cst_28 = arith.constant dense<0.000000e+00> : vector<64x128xf32>
    %68 = tpu.matmul %66, %67, %cst_28 {dimension_numbers = #tpu.dot_dimension_numbers<[1], [0], [0], [1], [0, 0, 1, 1], [], []>} : vector<64x64xbf16>, vector<64x128xbf16>, vector<64x128xf32> -> vector<64x128xf32>
    %69 = vector.extract_strided_slice %32 {offsets = [0, 64], sizes = [64, 64], strides = [1, 1]} : vector<64x128xf32> to vector<64x64xf32>
    %70 = vector.shape_cast %69 : vector<64x64xf32> to vector<8x8x64xf32>
    %71 = arith.truncf %70 : vector<8x8x64xf32> to vector<8x8x64xbf16>
    %72 = vector.extract_strided_slice %33 {offsets = [0, 64], sizes = [64, 64], strides = [1, 1]} : vector<64x128xf32> to vector<64x64xf32>
    %73 = vector.shape_cast %72 : vector<64x64xf32> to vector<8x8x64xf32>
    %74 = arith.truncf %73 : vector<8x8x64xf32> to vector<8x8x64xbf16>
    %75 = vector.extract_strided_slice %34 {offsets = [0, 64], sizes = [64, 64], strides = [1, 1]} : vector<64x128xf32> to vector<64x64xf32>
    %76 = vector.shape_cast %75 : vector<64x64xf32> to vector<8x8x64xf32>
    %77 = arith.truncf %76 : vector<8x8x64xf32> to vector<8x8x64xbf16>
    "tpu.trace_start"() <{level = 10 : i32, message = "bsd,btd->bst"}> : () -> ()
    %cst_29 = arith.constant dense<0.000000e+00> : vector<8x8x8xf32>
    %78 = tpu.matmul %71, %74, %cst_29 {dimension_numbers = #tpu.dot_dimension_numbers<[2], [2], [1], [1], [0, 0, 0, 1, 1, 1], [0], [0]>} : vector<8x8x64xbf16>, vector<8x8x64xbf16>, vector<8x8x8xf32> -> vector<8x8x8xf32>
    %cst_30 = arith.constant -1.000000e+30 : f32
    "tpu.trace_stop"() : () -> ()
    %79 = vector.shape_cast %38 : vector<1x8x8xi1> to vector<1x8x8xi1>
    %80 = vector.broadcast %79 : vector<1x8x8xi1> to vector<8x8x8xi1>
    %81 = vector.broadcast %cst_30 : f32 to vector<8x8x8xf32>
    %82 = arith.select %80, %78, %81 : vector<8x8x8xi1>, vector<8x8x8xf32>
    %cst_31 = arith.constant dense<0xFF800000> : vector<8x8xf32>
    %83 = vector.multi_reduction <maximumf>, %82, %cst_31 [2] : vector<8x8x8xf32> to vector<8x8xf32>
    %84 = vector.shape_cast %83 : vector<8x8xf32> to vector<8x8x1xf32>
    %85 = vector.broadcast %84 : vector<8x8x1xf32> to vector<8x8x8xf32>
    %86 = arith.subf %82, %85 : vector<8x8x8xf32>
    %87 = math.exp %86 : vector<8x8x8xf32>
    %cst_32 = arith.constant dense<0.000000e+00> : vector<8x8xf32>
    %88 = vector.multi_reduction <add>, %87, %cst_32 [2] : vector<8x8x8xf32> to vector<8x8xf32>
    %89 = vector.shape_cast %88 : vector<8x8xf32> to vector<8x8x1xf32>
    %90 = vector.broadcast %89 : vector<8x8x1xf32> to vector<8x8x8xf32>
    %91 = arith.divf %87, %90 : vector<8x8x8xf32>
    %92 = arith.truncf %91 : vector<8x8x8xf32> to vector<8x8x8xbf16>
    "tpu.trace_start"() <{level = 10 : i32, message = "bst,btd->bsd"}> : () -> ()
    %cst_33 = arith.constant dense<0.000000e+00> : vector<8x8x64xf32>
    %93 = tpu.matmul %92, %77, %cst_33 {dimension_numbers = #tpu.dot_dimension_numbers<[2], [1], [1], [2], [0, 0, 0, 1, 1, 2], [0], [0]>} : vector<8x8x8xbf16>, vector<8x8x64xbf16>, vector<8x8x64xf32> -> vector<8x8x64xf32>
    "tpu.trace_stop"() : () -> ()
    %94 = vector.shape_cast %93 : vector<8x8x64xf32> to vector<64x64xf32>
    %95 = arith.truncf %94 : vector<64x64xf32> to vector<64x64xbf16>
    %96 = vector.extract_strided_slice %39 {offsets = [64, 0], sizes = [64, 128], strides = [1, 1]} : vector<128x128xbf16> to vector<64x128xbf16>
    %cst_34 = arith.constant dense<0.000000e+00> : vector<64x128xf32>
    %97 = tpu.matmul %95, %96, %cst_34 {dimension_numbers = #tpu.dot_dimension_numbers<[1], [0], [0], [1], [0, 0, 1, 1], [], []>} : vector<64x64xbf16>, vector<64x128xbf16>, vector<64x128xf32> -> vector<64x128xf32>
    %98 = arith.addf %68, %97 : vector<64x128xf32>
    %c0_35 = arith.constant 0 : index
    %c0_36 = arith.constant 0 : index
    %99 = vector.load %arg11[%c0_35, %c0_36] : memref<1x128xf32, #tpu.memory_space<vmem>>, vector<1x128xf32>
    %100 = vector.broadcast %99 : vector<1x128xf32> to vector<64x128xf32>
    %101 = arith.addf %98, %100 : vector<64x128xf32>
    %102 = arith.addf %23, %101 : vector<64x128xf32>
    %c0_37 = arith.constant 0 : index
    %c0_38 = arith.constant 0 : index
    %103 = vector.load %arg12[%c0_37, %c0_38] : memref<1x128xf32, #tpu.memory_space<vmem>>, vector<1x128xf32>
    %c0_39 = arith.constant 0 : index
    %c0_40 = arith.constant 0 : index
    %104 = vector.load %arg13[%c0_39, %c0_40] : memref<1x128xf32, #tpu.memory_space<vmem>>, vector<1x128xf32>
    %cst_41 = arith.constant dense<0.000000e+00> : vector<64xf32>
    %105 = vector.multi_reduction <add>, %102, %cst_41 [1] : vector<64x128xf32> to vector<64xf32>
    %106 = vector.shape_cast %105 : vector<64xf32> to vector<64x1xf32>
    %cst_42 = arith.constant 1.280000e+02 : f32
    %107 = vector.broadcast %cst_42 : f32 to vector<64x1xf32>
    %108 = arith.divf %106, %107 : vector<64x1xf32>
    %109 = vector.broadcast %108 : vector<64x1xf32> to vector<64x128xf32>
    %110 = arith.subf %102, %109 : vector<64x128xf32>
    %111 = vector.broadcast %108 : vector<64x1xf32> to vector<64x128xf32>
    %112 = arith.subf %102, %111 : vector<64x128xf32>
    %113 = arith.mulf %110, %112 : vector<64x128xf32>
    %cst_43 = arith.constant dense<0.000000e+00> : vector<64xf32>
    %114 = vector.multi_reduction <add>, %113, %cst_43 [1] : vector<64x128xf32> to vector<64xf32>
    %115 = vector.shape_cast %114 : vector<64xf32> to vector<64x1xf32>
    %cst_44 = arith.constant 1.280000e+02 : f32
    %116 = vector.broadcast %cst_44 : f32 to vector<64x1xf32>
    %117 = arith.divf %115, %116 : vector<64x1xf32>
    %118 = vector.broadcast %108 : vector<64x1xf32> to vector<64x128xf32>
    %119 = arith.subf %102, %118 : vector<64x128xf32>
    %cst_45 = arith.constant 9.99999974E-6 : f32
    %120 = vector.broadcast %cst_45 : f32 to vector<64x1xf32>
    %121 = arith.addf %117, %120 : vector<64x1xf32>
    %122 = math.rsqrt %121 : vector<64x1xf32>
    %123 = vector.broadcast %122 : vector<64x1xf32> to vector<64x128xf32>
    %124 = arith.mulf %119, %123 : vector<64x128xf32>
    %125 = vector.broadcast %103 : vector<1x128xf32> to vector<64x128xf32>
    %126 = arith.mulf %124, %125 : vector<64x128xf32>
    %127 = vector.broadcast %104 : vector<1x128xf32> to vector<64x128xf32>
    %128 = arith.addf %126, %127 : vector<64x128xf32>
    %129 = arith.truncf %128 : vector<64x128xf32> to vector<64x128xbf16>
    %c0_46 = arith.constant 0 : index
    %c0_47 = arith.constant 0 : index
    %130 = vector.load %arg14[%c0_46, %c0_47] : memref<128x256xbf16, #tpu.memory_space<vmem>>, vector<128x256xbf16>
    %cst_48 = arith.constant dense<0.000000e+00> : vector<64x256xf32>
    %131 = tpu.matmul %129, %130, %cst_48 {dimension_numbers = #tpu.dot_dimension_numbers<[1], [0], [0], [1], [0, 0, 1, 1], [], []>} : vector<64x128xbf16>, vector<128x256xbf16>, vector<64x256xf32> -> vector<64x256xf32>
    %c0_49 = arith.constant 0 : index
    %c0_50 = arith.constant 0 : index
    %132 = vector.load %arg15[%c0_49, %c0_50] : memref<1x256xf32, #tpu.memory_space<vmem>>, vector<1x256xf32>
    %133 = vector.broadcast %132 : vector<1x256xf32> to vector<64x256xf32>
    %134 = arith.addf %131, %133 : vector<64x256xf32>
    %cst_51 = arith.constant 5.000000e-01 : f32
    %135 = vector.broadcast %cst_51 : f32 to vector<64x256xf32>
    %136 = arith.mulf %135, %134 : vector<64x256xf32>
    %cst_52 = arith.constant 4.471500e-02 : f32
    %137 = vector.broadcast %cst_52 : f32 to vector<64x256xf32>
    %138 = arith.mulf %137, %134 : vector<64x256xf32>
    %139 = arith.mulf %138, %134 : vector<64x256xf32>
    %140 = arith.mulf %139, %134 : vector<64x256xf32>
    %141 = arith.addf %134, %140 : vector<64x256xf32>
    %cst_53 = arith.constant 0.797884583 : f32
    %142 = vector.broadcast %cst_53 : f32 to vector<64x256xf32>
    %143 = arith.mulf %142, %141 : vector<64x256xf32>
    %144 = math.tanh %143 : vector<64x256xf32>
    %cst_54 = arith.constant 1.000000e+00 : f32
    %145 = vector.broadcast %cst_54 : f32 to vector<64x256xf32>
    %146 = arith.addf %145, %144 : vector<64x256xf32>
    %147 = arith.mulf %136, %146 : vector<64x256xf32>
    %148 = arith.truncf %147 : vector<64x256xf32> to vector<64x256xbf16>
    %c0_55 = arith.constant 0 : index
    %c0_56 = arith.constant 0 : index
    %149 = vector.load %arg16[%c0_55, %c0_56] : memref<256x128xbf16, #tpu.memory_space<vmem>>, vector<256x128xbf16>
    %cst_57 = arith.constant dense<0.000000e+00> : vector<64x128xf32>
    %150 = tpu.matmul %148, %149, %cst_57 {dimension_numbers = #tpu.dot_dimension_numbers<[1], [0], [0], [1], [0, 0, 1, 1], [], []>} : vector<64x256xbf16>, vector<256x128xbf16>, vector<64x128xf32> -> vector<64x128xf32>
    %c0_58 = arith.constant 0 : index
    %c0_59 = arith.constant 0 : index
    %151 = vector.load %arg17[%c0_58, %c0_59] : memref<1x128xf32, #tpu.memory_space<vmem>>, vector<1x128xf32>
    %152 = vector.broadcast %151 : vector<1x128xf32> to vector<64x128xf32>
    %153 = arith.addf %150, %152 : vector<64x128xf32>
    %154 = arith.addf %128, %153 : vector<64x128xf32>
    %c0_60 = arith.constant 0 : index
    %c0_61 = arith.constant 0 : index
    %155 = vector.load %arg18[%c0_60, %c0_61] : memref<1x128xf32, #tpu.memory_space<vmem>>, vector<1x128xf32>
    %c0_62 = arith.constant 0 : index
    %c0_63 = arith.constant 0 : index
    %156 = vector.load %arg19[%c0_62, %c0_63] : memref<1x128xf32, #tpu.memory_space<vmem>>, vector<1x128xf32>
    %cst_64 = arith.constant dense<0.000000e+00> : vector<64xf32>
    %157 = vector.multi_reduction <add>, %154, %cst_64 [1] : vector<64x128xf32> to vector<64xf32>
    %158 = vector.shape_cast %157 : vector<64xf32> to vector<64x1xf32>
    %cst_65 = arith.constant 1.280000e+02 : f32
    %159 = vector.broadcast %cst_65 : f32 to vector<64x1xf32>
    %160 = arith.divf %158, %159 : vector<64x1xf32>
    %161 = vector.broadcast %160 : vector<64x1xf32> to vector<64x128xf32>
    %162 = arith.subf %154, %161 : vector<64x128xf32>
    %163 = vector.broadcast %160 : vector<64x1xf32> to vector<64x128xf32>
    %164 = arith.subf %154, %163 : vector<64x128xf32>
    %165 = arith.mulf %162, %164 : vector<64x128xf32>
    %cst_66 = arith.constant dense<0.000000e+00> : vector<64xf32>
    %166 = vector.multi_reduction <add>, %165, %cst_66 [1] : vector<64x128xf32> to vector<64xf32>
    %167 = vector.shape_cast %166 : vector<64xf32> to vector<64x1xf32>
    %cst_67 = arith.constant 1.280000e+02 : f32
    %168 = vector.broadcast %cst_67 : f32 to vector<64x1xf32>
    %169 = arith.divf %167, %168 : vector<64x1xf32>
    %170 = vector.broadcast %160 : vector<64x1xf32> to vector<64x128xf32>
    %171 = arith.subf %154, %170 : vector<64x128xf32>
    %cst_68 = arith.constant 9.99999974E-6 : f32
    %172 = vector.broadcast %cst_68 : f32 to vector<64x1xf32>
    %173 = arith.addf %169, %172 : vector<64x1xf32>
    %174 = math.rsqrt %173 : vector<64x1xf32>
    %175 = vector.broadcast %174 : vector<64x1xf32> to vector<64x128xf32>
    %176 = arith.mulf %171, %175 : vector<64x128xf32>
    %177 = vector.broadcast %155 : vector<1x128xf32> to vector<64x128xf32>
    %178 = arith.mulf %176, %177 : vector<64x128xf32>
    %179 = vector.broadcast %156 : vector<1x128xf32> to vector<64x128xf32>
    %180 = arith.addf %178, %179 : vector<64x128xf32>
    %181 = vector.shape_cast %180 : vector<64x128xf32> to vector<8x8x128xf32>
    %c0_69 = arith.constant 0 : index
    %c0_70 = arith.constant 0 : index
    %182 = vector.load %arg20[%c0_69, %c0_70] : memref<8x128xf32, #tpu.memory_space<vmem>>, vector<8x128xf32>
    %183 = vector.shape_cast %182 : vector<8x128xf32> to vector<1x8x128xf32>
    %184 = vector.broadcast %183 : vector<1x8x128xf32> to vector<8x8x128xf32>
    %185 = arith.mulf %181, %184 : vector<8x8x128xf32>
    %cst_71 = arith.constant dense<0.000000e+00> : vector<8x8xf32>
    %186 = vector.multi_reduction <add>, %185, %cst_71 [2] : vector<8x8x128xf32> to vector<8x8xf32>
    %c0_72 = arith.constant 0 : index
    %c0_73 = arith.constant 0 : index
    %187 = vector.load %arg21[%c0_72, %c0_73] : memref<1x8xf32, #tpu.memory_space<vmem>>, vector<1x8xf32>
    %188 = vector.broadcast %187 : vector<1x8xf32> to vector<8x8xf32>
    %189 = arith.addf %186, %188 : vector<8x8xf32>
    %c0_74 = arith.constant 0 : index
    %c0_75 = arith.constant 0 : index
    %190 = vector.load %arg22[%c0_74, %c0_75] : memref<8x8xf32, #tpu.memory_space<vmem>>, vector<8x8xf32>
    tpu.vector_store %arg22[%c0_74, %c0_75], %189 {strides = array<i32>} : memref<8x8xf32, #tpu.memory_space<vmem>>, vector<8x8xf32>,
    return
  }
  func.func @transform_0(%arg0: i32) -> (i32, i32) {
    %c0_i32 = arith.constant 0 : i32
    %c0_i32_0 = arith.constant 0 : i32
    return %arg0, %c0_i32 : i32, i32
  }
  func.func @transform_1(%arg0: i32) -> (i32, i32, i32) {
    %c0_i32 = arith.constant 0 : i32
    %c0_i32_0 = arith.constant 0 : i32
    %c0_i32_1 = arith.constant 0 : i32
    return %arg0, %c0_i32, %c0_i32_0 : i32, i32, i32
  }
  func.func @transform_2(%arg0: i32) -> (i32, i32) {
    %c0_i32 = arith.constant 0 : i32
    %c0_i32_0 = arith.constant 0 : i32
    %c0_i32_1 = arith.constant 0 : i32
    return %c0_i32, %c0_i32_0 : i32, i32
  }
  func.func @transform_3(%arg0: i32) -> (i32, i32) {
    %c0_i32 = arith.constant 0 : i32
    %c0_i32_0 = arith.constant 0 : i32
    %c0_i32_1 = arith.constant 0 : i32
    return %c0_i32, %c0_i32_0 : i32, i32
  }
  func.func @transform_4(%arg0: i32) -> (i32, i32) {
    %c0_i32 = arith.constant 0 : i32
    %c0_i32_0 = arith.constant 0 : i32
    %c0_i32_1 = arith.constant 0 : i32
    return %c0_i32, %c0_i32_0 : i32, i32
  }
  func.func @transform_5(%arg0: i32) -> (i32, i32) {
    %c0_i32 = arith.constant 0 : i32
    %c0_i32_0 = arith.constant 0 : i32
    %c0_i32_1 = arith.constant 0 : i32
    return %c0_i32, %c0_i32_0 : i32, i32
  }
  func.func @transform_6(%arg0: i32) -> (i32, i32) {
    %c0_i32 = arith.constant 0 : i32
    %c0_i32_0 = arith.constant 0 : i32
    %c0_i32_1 = arith.constant 0 : i32
    return %c0_i32, %c0_i32_0 : i32, i32
  }
  func.func @transform_7(%arg0: i32) -> (i32, i32) {
    %c0_i32 = arith.constant 0 : i32
    %c0_i32_0 = arith.constant 0 : i32
    %c0_i32_1 = arith.constant 0 : i32
    return %c0_i32, %c0_i32_0 : i32, i32
  }
  func.func @transform_8(%arg0: i32) -> (i32, i32) {
    %c0_i32 = arith.constant 0 : i32
    %c0_i32_0 = arith.constant 0 : i32
    %c0_i32_1 = arith.constant 0 : i32
    return %c0_i32, %c0_i32_0 : i32, i32
  }
  func.func @transform_9(%arg0: i32) -> (i32, i32) {
    %c0_i32 = arith.constant 0 : i32
    %c0_i32_0 = arith.constant 0 : i32
    %c0_i32_1 = arith.constant 0 : i32
    return %c0_i32, %c0_i32_0 : i32, i32
  }
  func.func @transform_10(%arg0: i32) -> (i32, i32) {
    %c0_i32 = arith.constant 0 : i32
    %c0_i32_0 = arith.constant 0 : i32
    %c0_i32_1 = arith.constant 0 : i32
    return %c0_i32, %c0_i32_0 : i32, i32
  }
  func.func @transform_11(%arg0: i32) -> (i32, i32) {
    %c0_i32 = arith.constant 0 : i32
    %c0_i32_0 = arith.constant 0 : i32
    %c0_i32_1 = arith.constant 0 : i32
    return %c0_i32, %c0_i32_0 : i32, i32
  }
  func.func @transform_12(%arg0: i32) -> (i32, i32) {
    %c0_i32 = arith.constant 0 : i32
    %c0_i32_0 = arith.constant 0 : i32
    %c0_i32_1 = arith.constant 0 : i32
    return %c0_i32, %c0_i32_0 : i32, i32
  }
  func.func @transform_13(%arg0: i32) -> (i32, i32) {
    %c0_i32 = arith.constant 0 : i32
    %c0_i32_0 = arith.constant 0 : i32
    %c0_i32_1 = arith.constant 0 : i32
    return %c0_i32, %c0_i32_0 : i32, i32
  }
  func.func @transform_14(%arg0: i32) -> (i32, i32) {
    %c0_i32 = arith.constant 0 : i32
    %c0_i32_0 = arith.constant 0 : i32
    %c0_i32_1 = arith.constant 0 : i32
    return %c0_i32, %c0_i32_0 : i32, i32
  }
  func.func @transform_15(%arg0: i32) -> (i32, i32) {
    %c0_i32 = arith.constant 0 : i32
    %c0_i32_0 = arith.constant 0 : i32
    %c0_i32_1 = arith.constant 0 : i32
    return %c0_i32, %c0_i32_0 : i32, i32
  }
  func.func @transform_16(%arg0: i32) -> (i32, i32) {
    %c0_i32 = arith.constant 0 : i32
    %c0_i32_0 = arith.constant 0 : i32
    %c0_i32_1 = arith.constant 0 : i32
    return %c0_i32, %c0_i32_0 : i32, i32
  }
  func.func @transform_17(%arg0: i32) -> (i32, i32) {
    %c0_i32 = arith.constant 0 : i32
    %c0_i32_0 = arith.constant 0 : i32
    %c0_i32_1 = arith.constant 0 : i32
    return %c0_i32, %c0_i32_0 : i32, i32
  }
  func.func @transform_18(%arg0: i32) -> (i32, i32) {
    %c0_i32 = arith.constant 0 : i32
    %c0_i32_0 = arith.constant 0 : i32
    %c0_i32_1 = arith.constant 0 : i32
    return %c0_i32, %c0_i32_0 : i32, i32
  }
  func.func @transform_19(%arg0: i32) -> (i32, i32) {
    %c0_i32 = arith.constant 0 : i32
    %c0_i32_0 = arith.constant 0 : i32
    %c0_i32_1 = arith.constant 0 : i32
    return %c0_i32, %c0_i32_0 : i32, i32
  }
  func.func @transform_20(%arg0: i32) -> (i32, i32) {
    %c0_i32 = arith.constant 0 : i32
    %c0_i32_0 = arith.constant 0 : i32
    %c0_i32_1 = arith.constant 0 : i32
    return %c0_i32, %c0_i32_0 : i32, i32
  }
  func.func @transform_21(%arg0: i32) -> (i32, i32) {
    %c0_i32 = arith.constant 0 : i32
    %c0_i32_0 = arith.constant 0 : i32
    return %arg0, %c0_i32 : i32, i32
  }
}

</mosaic_0001>

<bundles_post_ra>
// kernel: _forward_impl.1
= control target key start
LH: loop header
LB: loop body
LE: loop exit
PB: predicated region body
PF: predicated region fallthrough
CT: control target
= control target key end

     0   :  { %v4513_v0 = vmov 0.0   ;;  %vm4514_vm0 = vmmov 0   ;;  %v4515_v55 = vmov 0   ;;  %v4516_v56 = vmov 1966171168   ;;  %s5790_s2 = inlined_call_operand.vmem [shape: bf16[128,128], index: 2, kind: input, shape index: {}]   ;;  %s5791_s4 = inlined_call_operand.vmem [shape: bf16[128,128], index: 4, kind: input, shape index: {}]   ;;  %s5792_s1 = inlined_call_operand.vmem [shape: f32[8,8,128], index: 1, kind: input, shape index: {}]   ;;  %s5793_s7 = inlined_call_operand.vmem [shape: bf16[128,384], index: 7, kind: input, shape index: {}]   ;;  %s5794_s0 = inlined_call_operand.vmem [shape: f32[8,128], index: 0, kind: input, shape index: {}]   ;;  %s5795_s3 = inlined_call_operand.vmem [shape: f32[1,128], index: 3, kind: input, shape index: {}]   ;;  %s5796_s5 = inlined_call_operand.vmem [shape: f32[1,128], index: 5, kind: input, shape index: {}]   ;;  %s5797_s6 = inlined_call_operand.vmem [shape: f32[8,128], index: 6, kind: input, shape index: {}]   ;;  %s5798_s8 = inlined_call_operand.vmem [shape: f32[1,384], index: 8, kind: input, shape index: {}]   ;;  %s5799_s9 = inlined_call_operand.vmem [shape: bf16[128,128], index: 9, kind: input, shape index: {}]   ;;  %s5800_s10 = inlined_call_operand.vmem [shape: f32[1,128], index: 10, kind: input, shape index: {}]   ;;  %s5801_s13 = inlined_call_operand.vmem [shape: bf16[128,256], index: 13, kind: input, shape index: {}]   ;;  %s5802_s11 = inlined_call_operand.vmem [shape: f32[1,128], index: 11, kind: input, shape index: {}]   ;;  %s5803_s12 = inlined_call_operand.vmem [shape: f32[1,128], index: 12, kind: input, shape index: {}]   ;;  %s5804_s15 = inlined_call_operand.vmem [shape: bf16[256,128], index: 15, kind: input, shape index: {}]   ;;  %s5805_s14 = inlined_call_operand.vmem [shape: f32[1,256], index: 14, kind: input, shape index: {}]   ;;  %s5806_s16 = inlined_call_operand.vmem [shape: f32[1,128], index: 16, kind: input, shape index: {}]   ;;  %s5807_s17 = inlined_call_operand.vmem [shape: f32[1,128], index: 17, kind: input, shape index: {}]   ;;  %s5808_s18 = inlined_call_operand.vmem [shape: f32[1,128], index: 18, kind: input, shape index: {}]   ;;  %s5809_s19 = inlined_call_operand.vmem [shape: f32[8,128], index: 19, kind: input, shape index: {}]   ;;  %s5810_s20 = inlined_call_operand.vmem [shape: f32[1,8], index: 20, kind: input, shape index: {}]   ;;  %s5811_s21 = inlined_call_operand.vmem [shape: f32[8,8], index: 21, kind: output, shape index: {}]  }
   0x1   :  { %5817 = sst [smem:[#allocation2_spill]] %s5790_s2  ;;  %3990 = vmatprep.subr.bf16.mxu0 %v4513_v0  ;;  %4006 = vmatprep.mubr.msk.bf16.mxu0 %vm4514_vm0, %v4513_v0  ;;  %v333_v57 = vunpack.c.l.s4 %v4516_v56  ;;  %v335_v58 = vlaneseq  ;;  %vm809_vm1 = vcmask 523264   ;;  %vm1288_vm2 = vcmask 1043456  }
   0x2   :  { %5818 = sst [smem:[#allocation3_spill]] %s5791_s4  ;;  %4288 = vset.pattern.permute.xlu0 %v4515_v55  ;;  %4287 = vset.pattern.permute.xlu1 %v4515_v55  ;;  %vm1188_vm4 = vcmask 64512   ;;  %vm3688_vm5 = vcmask 1041409   ;;  %vm3690_vm6 = vcmask 1042434   ;;  %vm3692_vm7 = vcmask 1043459  }
   0x3   :  { %5819 = sst [smem:[#allocation4_spill]] %s5792_s1  ;;  %v334_v59 = vunpack.c.0.s8 %v333_v57  ;;  %v4791_v60 = vshrl.u32 %v335_v58, 7  ;;  %vm3694_vm8 = vcmask 1044484   ;;  %vm3696_vm9 = vcmask 1045509  }
   0x4   :  { %5820 = sst [smem:[#allocation5_spill]] %s5793_s7  ;;  %vm3698_vm10 = vcmask 1046534   ;;  %vm3700_vm11 = vcmask 1047559  }
   0x5   :  { %5821 = sst [smem:[#allocation6_spill]] %s5794_s0  ;;  %v337_v62 = vsub.s32 %v334_v59, %v4791_v60 }
   0x6   :  { %5822 = sst [smem:[#allocation7_spill]] %s5795_s3 }
   0x7   :  { %s5823_s26 = sld [smem:[#allocation2_spill]] }
   0x8   :  { %s5824_s28 = sld [smem:[#allocation3_spill]] }
   0x9   :  { %s5825_s22 = sld [smem:[#allocation4_spill]] }
   0xa   :  { %s5826_s25 = sld [smem:[#allocation6_spill]] }
   0xb   :  { %s5827_s4 = sld [smem:[#allocation5_spill]] }
   0xd   :  { %v4289_v1 = vld [vmem:[%s5823_s26 + $0x38] sm:$0xff]   ;;  %v4291_v3 = vld [vmem:[%s5823_s26 + $0x30] sm:$0xff]   ;;  %v4293_v6 = vld [vmem:[%s5823_s26 + $0x28] sm:$0xff]  }
   0xe   :  { %v4290_v2 = vld [vmem:[%s5824_s28 + $0x38] sm:$0xff]   ;;  %3991 = vmatpush3.bf16.msra.mxu0 %v4289_v1  ;;  %v4292_v4 = vld [vmem:[%s5824_s28 + $0x30] sm:$0xff]   ;;  %v4294_v5 = vld [vmem:[%s5824_s28 + $0x28] sm:$0xff]  }
   0xf   :  { %4010 = vmatprep.subr.bf16.mxu1 %v4290_v2  ;;  %3992 = vmatprep.subr.bf16.mxu0 %v4513_v0  ;;  %v4296_v7 = vld [vmem:[%s5824_s28 + $0x20] sm:$0xff]   ;;  %v4298_v9 = vld [vmem:[%s5824_s28 + $0x18] sm:$0xff]   ;;  %v183_v12 = vld [vmem:[%s5825_s22 + $0x8] sm:$0xff] }
  0x10   :  { %4011 = vmatpush3.bf16.msra.mxu1 %v4290_v2  ;;  %v4295_v8 = vld [vmem:[%s5823_s26 + $0x20] sm:$0xff]   ;;  %v4297_v10 = vld [vmem:[%s5823_s26 + $0x18] sm:$0xff]   ;;  %v4300_v13 = vld [vmem:[%s5824_s28 + $0x10] sm:$0xff]  }
  0x11   :  { %4012 = vmatprep.subr.bf16.mxu1 %v4292_v4  ;;  %v182_v11 = vld [vmem:[%s5825_s22] sm:$0xff]  ;;  %v4299_v15 = vld [vmem:[%s5823_s26 + $0x10] sm:$0xff]   ;;  %v4302_v16 = vld [vmem:[%s5824_s28 + $0x8] sm:$0xff]  }
  0x12   :  { %3993 = vmatpush3.bf16.msra.mxu0 %v4291_v3  ;;  %v190_v14 = vpack.c.bf16 %v183_v12, %v182_v11  ;;  %v4301_v17 = vld [vmem:[%s5823_s26 + $0x8] sm:$0xff]   ;;  %v4303_v18 = vld [vmem:[%s5823_s26] sm:$0xff]   ;;  %v184_v21 = vld [vmem:[%s5825_s22 + $0x10] sm:$0xff] }
  0x13   :  { %3994 = vmatprep.subr.bf16.mxu0 %v4513_v0  ;;  %v4304_v19 = vld [vmem:[%s5824_s28] sm:$0xff]   ;;  %v185_v22 = vld [vmem:[%s5825_s22 + $0x18] sm:$0xff]  ;;  %v187_v24 = vld [vmem:[%s5825_s22 + $0x28] sm:$0xff]  ;;  %s5828_s28 = sld [smem:[#allocation7_spill]] }
  0x14   :  { %4013 = vmatpush3.bf16.msra.mxu1 %v4292_v4  ;;  %4026 = vmatprep.mubr.bf16.mxu1 %v190_v14  ;;  %v69_v20 = vld [vmem:[%s5826_s25] sm:$0xff]  ;;  %v4307_v25 = vld [vmem:[%s5827_s4 + $0xac] ss:$12 sps:$4 sm:$0xff]   ;;  %v4305_v26 = vld [vmem:[%s5827_s4 + $0xa8] ss:$12 sps:$4 sm:$0xff]   ;;  %v191_v30 = vpack.c.bf16 %v185_v22, %v184_v21 }
  0x15   :  { %4014 = vmatprep.subr.bf16.mxu1 %v4294_v5  ;;  %v186_v23 = vld [vmem:[%s5825_s22 + $0x20] sm:$0xff]  ;;  %v4308_v27 = vld [vmem:[%s5827_s4 + $0xb0] ss:$12 sps:$4 sm:$0xff]   ;;  %v70_v28 = vpack.c.bf16 %v69_v20, %v69_v20  ;;  %v4320_v41 = vld [vmem:[%s5827_s4 + $0x68] ss:$12 sps:$4 sm:$0xff]  }
  0x16   :  { %3995 = vmatpush3.bf16.msra.mxu0 %v4293_v6  ;;  %v4311_v29 = vld [vmem:[%s5827_s4 + $0x94] ss:$12 sps:$4 sm:$0xff]   ;;  %v4312_v31 = vld [vmem:[%s5827_s4 + $0x98] ss:$12 sps:$4 sm:$0xff]   ;;  %v192_v32 = vpack.c.bf16 %v187_v24, %v186_v23  ;;  %v4309_v33 = vld [vmem:[%s5827_s4 + $0x90] ss:$12 sps:$4 sm:$0xff]  }
  0x17   :  { %3996 = vmatprep.subr.bf16.mxu0 %v4513_v0  ;;  %v4315_v34 = vld [vmem:[%s5827_s4 + $0x7c] ss:$12 sps:$4 sm:$0xff]   ;;  %v188_v35 = vld [vmem:[%s5825_s22 + $0x30] sm:$0xff]  ;;  %v4316_v37 = vld [vmem:[%s5827_s4 + $0x80] ss:$12 sps:$4 sm:$0xff]   ;;  %v4798_v6 = vsub.s32 0, %v4791_v60 }
  0x18   :  { %4015 = vmatpush3.bf16.msra.mxu1 %v4294_v5  ;;  %v189_v36 = vld [vmem:[%s5825_s22 + $0x38] sm:$0xff]  ;;  %v4319_v40 = vld [vmem:[%s5827_s4 + $0x64] ss:$12 sps:$4 sm:$0xff]   ;;  %v4317_v42 = vld [vmem:[%s5827_s4 + $0x60] ss:$12 sps:$4 sm:$0xff]  }
  0x19   :  { %4016 = vmatprep.subr.bf16.mxu1 %v4296_v7  ;;  %v4313_v38 = vld [vmem:[%s5827_s4 + $0x78] ss:$12 sps:$4 sm:$0xff]   ;;  %v193_v39 = vpack.c.bf16 %v189_v36, %v188_v35  ;;  %v4321_v44 = vld [vmem:[%s5827_s4 + $0x48] ss:$12 sps:$4 sm:$0xff]   ;;  %v4324_v45 = vld [vmem:[%s5827_s4 + $0x50] ss:$12 sps:$4 sm:$0xff]  }
  0x1a   :  { %3997 = vmatpush3.bf16.msra.mxu0 %v4295_v8  ;;  %v4323_v43 = vld [vmem:[%s5827_s4 + $0x4c] ss:$12 sps:$4 sm:$0xff]   ;;  %v4327_v46 = vld [vmem:[%s5827_s4 + $0x34] ss:$12 sps:$4 sm:$0xff]   ;;  %v4325_v47 = vld [vmem:[%s5827_s4 + $0x30] ss:$12 sps:$4 sm:$0xff]  }
  0x1b   :  { %3998 = vmatprep.subr.bf16.mxu0 %v4513_v0  ;;  %v4328_v48 = vld [vmem:[%s5827_s4 + $0x38] ss:$12 sps:$4 sm:$0xff]   ;;  %v4331_v49 = vld [vmem:[%s5827_s4 + $0x1c] ss:$12 sps:$4 sm:$0xff]   ;;  %v4332_v51 = vld [vmem:[%s5827_s4 + $0x20] ss:$12 sps:$4 sm:$0xff]  }
  0x1c   :  { %4017 = vmatpush3.bf16.msra.mxu1 %v4296_v7  ;;  %v4329_v50 = vld [vmem:[%s5827_s4 + $0x18] ss:$12 sps:$4 sm:$0xff]   ;;  %v4333_v53 = vld [vmem:[%s5827_s4] ss:$12 sps:$4 sm:$0xff]   ;;  %v4336_v54 = vld [vmem:[%s5827_s4 + $0x8] ss:$12 sps:$4 sm:$0xff]  }
  0x1d   :  { %4018 = vmatprep.subr.bf16.mxu1 %v4298_v9  ;;  %v4335_v52 = vld [vmem:[%s5827_s4 + $0x4] ss:$12 sps:$4 sm:$0xff]   ;;  %v3708_v61 = vld [vmem:[%s5828_s28] ss:$0 sm:$0xff] }
  0x1e   :  { %3999 = vmatpush3.bf16.msra.mxu0 %v4297_v10  ;;  %v3717_v12 = vld [vmem:[%s5796_s5] ss:$0 sm:$0xff] }
  0x1f   :  { %4000 = vmatprep.subr.bf16.mxu0 %v4513_v0 }
  0x20   :  { %4019 = vmatpush3.bf16.msra.mxu1 %v4298_v9 }
  0x21   :  { %4020 = vmatprep.subr.bf16.mxu1 %v4300_v13 }
  0x22   :  { %4001 = vmatpush3.bf16.msra.mxu0 %v4299_v15 }
  0x23   :  { %4002 = vmatprep.subr.bf16.mxu0 %v4513_v0 }
  0x24   :  { %4021 = vmatpush3.bf16.msra.mxu1 %v4300_v13 }
  0x25   :  { %4022 = vmatprep.subr.bf16.mxu1 %v4302_v16 }
  0x26   :  { %4003 = vmatpush3.bf16.msra.mxu0 %v4301_v17 }
  0x27   :  { %4004 = vmatprep.subr.bf16.mxu0 %v4513_v0 }
  0x28   :  { %4023 = vmatpush3.bf16.msra.mxu1 %v4302_v16 }
  0x29   :  { %4024 = vmatprep.subr.bf16.mxu1 %v4304_v19 }
  0x2a   :  { %4005 = vmatpush3.bf16.msra.mxu0 %v4303_v18 }
  0x2b   :  { %618 = vmatprep.subr.bf16.mxu0 %v4307_v25 }
  0x2c   :  { %4025 = vmatpush3.bf16.msra.mxu1 %v4304_v19 }
  0x2d   :  { %4007 = vmatmul.mubr.bf16.vlgmr.msra.gmra.mxu0 %v70_v28  ;;  %4034 = vmatprep.subr.bf16.mxu1 %v4308_v27 }
  0x2e   :  { %619 = vmatpush1.bf16.msra.mxu0 %v4305_v26  ;;  %650 = vmatprep.mubr.bf16.mxu0 %v4515_v55 }
  0x2f   :  { %4027 = vmatmul.mubr.bf16.vlgmr.msra.gmra.mxu1 %v191_v30  ;;  %620 = vmatprep.subr.bf16.mxu0 %v4311_v29 }
  0x30   :  { %4030 = vmatprep.mubr.bf16.mxu1 %v192_v32  ;;  %4035 = vmatpush3.bf16.msra.mxu1 %v4308_v27  ;;  %v428_v27 = vld [vmem:[%s5797_s6] sm:$0xff] }
  0x31   :  { %4036 = vmatprep.subr.bf16.mxu1 %v4312_v31 }
  0x32   :  { %621 = vmatpush1.bf16.msra.mxu0 %v4309_v33 }
  0x33   :  { %622 = vmatprep.subr.bf16.mxu0 %v4315_v34 }
  0x34   :  { %4037 = vmatpush3.bf16.msra.mxu1 %v4312_v31 }
  0x35   :  { %4038 = vmatprep.subr.bf16.mxu1 %v4316_v37 }
  0x36   :  { %623 = vmatpush1.bf16.msra.mxu0 %v4313_v38 }
  0x37   :  { %4031 = vmatmul.mubr.bf16.gmra.mxu1 %v193_v39  ;;  %624 = vmatprep.subr.bf16.mxu0 %v4319_v40 }
  0x38   :  { %4039 = vmatpush3.bf16.msra.mxu1 %v4316_v37 }
  0x39   :  { %4040 = vmatprep.subr.bf16.mxu1 %v4320_v41 }
  0x3a   :  { %625 = vmatpush1.bf16.msra.mxu0 %v4317_v42 }
  0x3b   :  { %626 = vmatprep.subr.bf16.mxu0 %v4323_v43 }
  0x3c   :  { %4041 = vmatpush3.bf16.msra.mxu1 %v4320_v41 }
  0x3d   :  { %4042 = vmatprep.subr.bf16.mxu1 %v4324_v45 }
  0x3e   :  { %627 = vmatpush1.bf16.msra.mxu0 %v4321_v44 }
  0x3f   :  { %628 = vmatprep.subr.bf16.mxu0 %v4327_v46 }
  0x40   :  { %4043 = vmatpush3.bf16.msra.mxu1 %v4324_v45 }
  0x41   :  { %4044 = vmatprep.subr.bf16.mxu1 %v4328_v48 }
  0x42   :  { %629 = vmatpush1.bf16.msra.mxu0 %v4325_v47 }
  0x43   :  { %630 = vmatprep.subr.bf16.mxu0 %v4331_v49 }
  0x44   :  { %4045 = vmatpush3.bf16.msra.mxu1 %v4328_v48 }
  0x45   :  { %4046 = vmatprep.subr.bf16.mxu1 %v4332_v51 }
  0x46   :  { %631 = vmatpush1.bf16.msra.mxu0 %v4329_v50 }
  0x47   :  { %632 = vmatprep.subr.bf16.mxu0 %v4335_v52 }
  0x48   :  { %4047 = vmatpush3.bf16.msra.mxu1 %v4332_v51 }
  0x49   :  { %4048 = vmatprep.subr.bf16.mxu1 %v4336_v54 }
  0x4a   :  { %633 = vmatpush1.bf16.msra.mxu0 %v4333_v53 }
  0x4b   :  { %4070 = vmatprep.subr.bf16.mxu0 %v4513_v0 }
  0x4c   :  { %4049 = vmatpush3.bf16.msra.mxu1 %v4336_v54 }
  0x4d   :  { %4058 = vmatprep.subr.bf16.mxu1 %v4513_v0 }
  0xed   :  { %v176_v63 = vpop.f32.mrf.mxu0 }
  0xee   :  { %v177_v1 = vadd.f32 %v3708_v61, %v176_v63 }
  0xef   :  { %v4028_v2 = vpop.f32.mrf.mxu1  ;;  %v4008_v3 = vpop.f32.mrf.mxu0 }
  0xf0   :  { %v331_v4 = vcombine.high %v177_v1, %v177_v1  ;;  %v338_v5 = vrot.slane %v177_v1, %v337_v62  ;;  %v308_v19 = vadd.f32 %v4028_v2, %v3717_v12 }
  0xf1   :  { %v299_v7 = vpop.f32.mrf.mxu1  ;;  %v179_v8 = vpop.f32.mrf.mxu0 }
  0xf2   :  { %v345_v9 = vrot.slane %v331_v4, %v337_v62  ;;  %v346_v10 = vcombine.high %v338_v5, %v338_v5  ;;  %v354_v11 = vrot.slane %v338_v5, %v337_v62  ;;  %v300_v20 = vadd.f32 %v3717_v12, %v299_v7  ;;  %v473_v8 = vld [vmem:[%s5798_s8] sm:$0x7]  ;;  %s4517_s8 = smov 64  }
  0xf3   :  { %v4029_v13 = vpop.f32.mrf.mxu1  ;;  %v4009_v14 = vpop.f32.mrf.mxu0  ;;  %v5816_v5 = vsub.s32 1, %v4791_v60  ;;  %v485_v7 = vsub.s32 2, %v4791_v60 }
  0xf4   :  { %v347_v15 = vcombine.high %v345_v9, %v345_v9  ;;  %v361_v16 = vrot.slane %v345_v9, %v337_v62  ;;  %v368_v17 = vrot.slane %v346_v10, %v337_v62  ;;  %v376_v18 = vcombine.high %v354_v11, %v354_v11 }
  0xf5   :  { %v383_v21 = vrot.slane %v354_v11, %v4798_v6  ;;  %v302_v22 = vpop.f32.mrf.mxu1  ;;  %v311_v33 = vadd.f32 %v4029_v13, %v3717_v12  ;;  %v4852_v9 = vrot.slane %v473_v8, %v5816_v5  ;;  %v4854_v10 = vrot.slane %v473_v8, %v485_v7 }
  0xf6   :  { %v391_v23 = vrot.slane %v376_v18, %v4798_v6  ;;  %v378_v24 = vcombine.high %v368_v17, %v368_v17  ;;  %v303_v25 = vadd.f32 %v3717_v12, %v302_v22  ;;  %v387_v26 = vrot.slane %v368_v17, %v4798_v6 }
  0xf7   :  { %v420_v28 = vadd.f32 %v383_v21, %v300_v20  ;;  %v4032_v29 = vpop.f32.mrf.mxu1  ;;  %v377_v30 = vcombine.high %v361_v16, %v361_v16  ;;  %v375_v31 = vrot.slane %v347_v15, %v337_v62  ;;  %v399_v44 = vrot.slane %v361_v16, %v4798_v6 }
  0xf8   :  { %v422_v32 = vadd.f32 %v391_v23, %v308_v19  ;;  %v395_v34 = vrot.slane %v378_v24, %v4798_v6  ;;  %v421_v35 = vadd.f32 %v387_v26, %v303_v25  ;;  %v324_v42 = vadd.f32 %v4032_v29, %v3717_v12 }
  0xf9   :  { %v315_v36 = vpop.f32.mrf.mxu1  ;;  %v379_v37 = vcombine.high %v375_v31, %v375_v31  ;;  %v4810_v38 = vadd.f32 %v428_v27, %v420_v28  ;;  %v407_v43 = vrot.slane %v377_v30, %v4798_v6  ;;  %v403_v52 = vrot.slane %v375_v31, %v4798_v6 }
  0xfa   :  { %v423_v39 = vadd.f32 %v395_v34, %v311_v33  ;;  %v4812_v40 = vadd.f32 %v428_v27, %v421_v35  ;;  %v316_v41 = vadd.f32 %v3717_v12, %v315_v36  ;;  %v4817_v47 = vadd.f32 %v428_v27, %v422_v32 }
  0xfb   :  { %v4033_v45 = vpop.f32.mrf.mxu1  ;;  %v411_v46 = vrot.slane %v379_v37, %v4798_v6  ;;  %v426_v59 = vadd.f32 %v407_v43, %v324_v42 }
  0xfc   :  { %v4819_v48 = vadd.f32 %v428_v27, %v423_v39  ;;  %v437_v49 = vpack.c.bf16 %v4812_v40, %v4810_v38  ;;  %v327_v50 = vadd.f32 %v4033_v45, %v3717_v12  ;;  %v424_v54 = vadd.f32 %v399_v44, %v316_v41 }
  0xfd   :  { %v318_v51 = vpop.f32.mrf.mxu1  ;;  %v4833_v2 = vadd.f32 %v428_v27, %v426_v59 }
  0xfe   :  { %v438_v53 = vpack.c.bf16 %v4819_v48, %v4817_v47  ;;  %v427_v56 = vadd.f32 %v411_v46, %v327_v50  ;;  %v319_v57 = vadd.f32 %v3717_v12, %v318_v51  ;;  %651 = vmatmul.mubr.bf16.vlgmr.msra.gmra.mxu0 %v437_v49  ;;  %4050 = vmatprep.mubr.bf16.mxu1 %v437_v49 }
  0xff   :  { %660 = vmatprep.mubr.bf16.mxu0 %v4515_v55  ;;  %v4827_v62 = vadd.f32 %v428_v27, %v424_v54  ;;  %v4857_v12 = vrot.slane %v473_v8, %v4798_v6 }
 0x100   :  { %v425_v61 = vadd.f32 %v403_v52, %v319_v57  ;;  %4051 = vmatmul.mubr.bf16.vlgmr.msra.gmra.mxu1 %v438_v53  ;;  %v4829_v63 = vadd.f32 %v428_v27, %v427_v56 }
 0x102   :  { %v4831_v1 = vadd.f32 %v428_v27, %v425_v61  ;;  %v440_v4 = vpack.c.bf16 %v4829_v63, %v4833_v2 }
 0x104   :  { %v439_v3 = vpack.c.bf16 %v4831_v1, %v4827_v62 }
 0x106   :  { %4054 = vmatprep.mubr.bf16.mxu1 %v439_v3  ;;  %661 = vmatmul.mubr.bf16.gmra.mxu0 %v438_v53 }
 0x107   :  { %670 = vmatprep.mubr.bf16.mxu0 %v4515_v55 }
 0x108   :  { %4055 = vmatmul.mubr.bf16.gmra.mxu1 %v440_v4 }
 0x109   :  { %4060 = vmatprep.mubr.msk.bf16.mxu1 %vm4514_vm0, %v4513_v0 }
 0x10e   :  { %671 = vmatmul.mubr.bf16.gmra.mxu0 %v439_v3 }
 0x10f   :  { %680 = vmatprep.mubr.bf16.mxu0 %v4515_v55 }
 0x116   :  { %681 = vmatmul.mubr.bf16.gmra.mxu0 %v440_v4 }
 0x117   :  { %4072 = vmatprep.mubr.msk.bf16.mxu0 %vm4514_vm0, %v4513_v0 }
 0x1be   :  { %v652_v11 = vpop.f32.mrf.mxu0 }
 0x1bf   :  { %v653_v19 = vadd.f32 %v652_v11, %v4857_v12 }
 0x1c0   :  { %v654_v13 = vpop.f32.mrf.mxu0  ;;  %v4052_v14 = vpop.f32.mrf.mxu1 }
 0x1c1   :  { %v655_v15 = vadd.f32 %v654_v13, %v4852_v9  ;;  %v4861_v16 = vadd.f32 %v4052_v14, %v4854_v10  ;;  %v756_v28 = vmul.f32 0.125, %v653_v19 }
 0x1c2   :  { %v656_v17 = vpop.f32.mrf.mxu0  ;;  %v4863_v18 = vpop.f32.mrf.mxu1 }
 0x1c3   :  { %v4866_v20 = vpack.c.bf16 %v655_v15, %v655_v15  ;;  %v4883_v36 = vpack.c.bf16 %v756_v28, %v756_v28  ;;  %v657_v37 = vadd.f32 %v656_v17, %v4857_v12 }
 0x1c4   :  { %v658_v21 = vpop.f32.mrf.mxu0  ;;  %v4053_v22 = vpop.f32.mrf.mxu1 }
 0x1c5   :  { %v814_v23 = vsel %vm809_vm1, %v4866_v20, 0  ;;  %v659_v24 = vadd.f32 %v658_v21, %v4852_v9  ;;  %v4872_v25 = vadd.f32 %v4053_v22, %v4854_v10  ;;  %v757_v52 = vmul.f32 0.125, %v657_v37 }
 0x1c6   :  { %v662_v26 = vpop.f32.mrf.mxu0  ;;  %v4874_v27 = vpop.f32.mrf.mxu1  ;;  %4059 = vmatpush3.bf16.xpose.msra.mxu1 %v814_v23  ;;  %v726_v37 = vadd.f32 %v4863_v18, %v4854_v10 }
 0x1c7   :  { %4064 = vmatprep.subr.bf16.mxu1 %v4513_v0  ;;  %v4877_v31 = vpack.c.bf16 %v659_v24, %v659_v24  ;;  %v663_v39 = vadd.f32 %v662_v26, %v4857_v12  ;;  %v4910_v3 = vpack.c.bf16 %v757_v52, %v757_v52 }
 0x1c8   :  { %v664_v29 = vpop.f32.mrf.mxu0  ;;  %v4056_v30 = vpop.f32.mrf.mxu1 }
 0x1c9   :  { %v665_v32 = vadd.f32 %v664_v29, %v4852_v9  ;;  %v4881_v33 = vadd.f32 %v4056_v30, %v4854_v10  ;;  %v860_v45 = vsel %vm809_vm1, %v4877_v31, 0  ;;  %v758_v53 = vmul.f32 0.125, %v663_v39 }
 0x1ca   :  { %v666_v34 = vpop.f32.mrf.mxu0  ;;  %v741_v35 = vpop.f32.mrf.mxu1 }
 0x1cb   :  { %v4887_v41 = vpack.c.bf16 %v665_v32, %v665_v32  ;;  %v4890_v42 = vadd.f32 %v741_v35, %v4854_v10  ;;  %v667_v59 = vadd.f32 %v666_v34, %v4857_v12  ;;  %v4912_v4 = vpack.c.bf16 %v758_v53, %v758_v53 }
 0x1cc   :  { %v668_v43 = vpop.f32.mrf.mxu0  ;;  %v4057_v44 = vpop.f32.mrf.mxu1 }
 0x1cd   :  { %v906_v46 = vsel %vm809_vm1, %v4887_v41, 0  ;;  %v669_v49 = vadd.f32 %v668_v43, %v4852_v9  ;;  %v4898_v50 = vadd.f32 %v4057_v44, %v4854_v10  ;;  %4061 = vmatmul.mubr.msk.bf16.vlgmr.msra.gmra.mxu1 %vm809_vm1, %v4883_v36  ;;  %v759_v17 = vmul.f32 0.125, %v667_v59 }
 0x1ce   :  { %v672_v51 = vpop.f32.mrf.mxu0  ;;  %4065 = vmatpush3.bf16.xpose.msra.mxu1 %v860_v45  ;;  %4071 = vmatpush3.bf16.xpose.msra.mxu0 %v906_v46 }
 0x1cf   :  { %4066 = vmatprep.mubr.msk.bf16.mxu1 %vm4514_vm0, %v4513_v0  ;;  %4076 = vmatprep.subr.bf16.mxu1 %v4513_v0  ;;  %v4906_v56 = vpack.c.bf16 %v669_v49, %v669_v49  ;;  %v673_v7 = vadd.f32 %v672_v51, %v4857_v12  ;;  %v4935_v26 = vpack.c.bf16 %v759_v17, %v759_v17 }
 0x1d0   :  { %v674_v54 = vpop.f32.mrf.mxu0  ;;  %4082 = vmatprep.subr.bf16.mxu0 %v4513_v0 }
 0x1d1   :  { %v675_v57 = vadd.f32 %v674_v54, %v4852_v9  ;;  %v952_v13 = vsel %vm809_vm1, %v4906_v56, 0  ;;  %v760_v21 = vmul.f32 0.125, %v673_v7  ;;  %v729_v54 = vadd.f32 %v4874_v27, %v4854_v10 }
 0x1d2   :  { %v676_v61 = vpop.f32.mrf.mxu0  ;;  %v4997_v7 = vand.u32 127, %v335_v58 }
 0x1d3   :  { %v4915_v8 = vpack.c.bf16 %v675_v57, %v675_v57  ;;  %v4937_v29 = vpack.c.bf16 %v760_v21, %v760_v21  ;;  %v677_v30 = vadd.f32 %v676_v61, %v4857_v12 }
 0x1d4   :  { %v678_v11 = vpop.f32.mrf.mxu0  ;;  %vm5001_vm3 = vcmp.le.s32.totalorder %v4997_v7, %v4791_v60 }
 0x1d5   :  { %v998_v14 = vsel %vm809_vm1, %v4915_v8, 0  ;;  %v679_v15 = vadd.f32 %v678_v11, %v4852_v9  ;;  %4067 = vmatmul.mubr.msk.bf16.vlgmr.msra.gmra.mxu1 %vm809_vm1, %v4910_v3  ;;  %4073 = vmatmul.mubr.msk.bf16.vlgmr.msra.gmra.mxu0 %vm809_vm1, %v4912_v4  ;;  %v761_v45 = vmul.f32 0.125, %v677_v30 }
 0x1d6   :  { %v682_v19 = vpop.f32.mrf.mxu0  ;;  %4077 = vmatpush3.bf16.xpose.msra.mxu1 %v952_v13  ;;  %4083 = vmatpush3.bf16.xpose.msra.mxu0 %v998_v14  ;;  %v5005_v13 = vpop.f32.mrf.mxu1 }
 0x1d7   :  { %4078 = vmatprep.mubr.msk.bf16.mxu1 %vm4514_vm0, %v4513_v0  ;;  %4084 = vmatprep.mubr.msk.bf16.mxu0 %vm4514_vm0, %v4513_v0  ;;  %v4932_v23 = vpack.c.bf16 %v679_v15, %v679_v15  ;;  %v683_v32 = vadd.f32 %v682_v19, %v4857_v12  ;;  %v4964_v49 = vpack.c.bf16 %v761_v45, %v761_v45 }
 0x1d8   :  { %v684_v22 = vpop.f32.mrf.mxu0  ;;  %4088 = vmatprep.subr.bf16.mxu1 %v4513_v0  ;;  %4094 = vmatprep.subr.bf16.mxu0 %v4513_v0 }
 0x1d9   :  { %v685_v24 = vadd.f32 %v684_v22, %v4852_v9  ;;  %v1044_v39 = vsel %vm809_vm1, %v4932_v23, 0  ;;  %v762_v46 = vmul.f32 0.125, %v683_v32 }
 0x1da   :  { %v686_v28 = vpop.f32.mrf.mxu0 }
 0x1db   :  { %v4941_v34 = vpack.c.bf16 %v685_v24, %v685_v24  ;;  %v4966_v51 = vpack.c.bf16 %v762_v46, %v762_v46  ;;  %v687_v52 = vadd.f32 %v686_v28, %v4857_v12  ;;  %v4985_v12 = vpack.c.bf16 %v729_v54, %v729_v54 }
 0x1dc   :  { %v688_v35 = vpop.f32.mrf.mxu0 }
 0x1dd   :  { %v1090_v43 = vsel %vm809_vm1, %v4941_v34, 0  ;;  %v689_v44 = vadd.f32 %v688_v35, %v4852_v9  ;;  %4079 = vmatmul.mubr.msk.bf16.vlgmr.msra.gmra.mxu1 %vm809_vm1, %v4935_v26  ;;  %4085 = vmatmul.mubr.msk.bf16.vlgmr.msra.gmra.mxu0 %vm809_vm1, %v4937_v29  ;;  %v4960_v9 = vpack.c.bf16 %v726_v37, %v726_v37  ;;  %v763_v59 = vmul.f32 0.125, %v687_v52 }
 0x1de   :  { %4089 = vmatpush3.bf16.xpose.msra.mxu1 %v1044_v39  ;;  %4095 = vmatpush3.bf16.xpose.msra.mxu0 %v1090_v43  ;;  %v1336_v61 = vsel %vm1288_vm2, %v4985_v12, 0 }
 0x1df   :  { %4090 = vmatprep.mubr.msk.bf16.mxu1 %vm4514_vm0, %v4513_v0  ;;  %4096 = vmatprep.mubr.msk.bf16.mxu0 %vm4514_vm0, %v4513_v0  ;;  %v4962_v18 = vpack.c.bf16 %v689_v44, %v689_v44  ;;  %v1290_v53 = vsel %vm1288_vm2, %v4960_v9, 0  ;;  %v4987_v27 = vpack.c.bf16 %v763_v59, %v763_v59 }
 0x1e0   :  { %4100 = vmatprep.subr.bf16.mxu1 %v4513_v0  ;;  %4106 = vmatprep.subr.bf16.mxu0 %v4513_v0 }
 0x1e1   :  { %v1136_v57 = vsel %vm809_vm1, %v4962_v18, 0 }
 0x1e5   :  { %4091 = vmatmul.mubr.msk.bf16.vlgmr.msra.gmra.mxu1 %vm809_vm1, %v4964_v49  ;;  %4097 = vmatmul.mubr.msk.bf16.vlgmr.msra.gmra.mxu0 %vm809_vm1, %v4966_v51 }
 0x1e6   :  { %4101 = vmatpush3.bf16.xpose.msra.mxu1 %v1136_v57  ;;  %4107 = vmatpush3.bf16.msra.mxu0 %v1290_v53 }
 0x1e7   :  { %4102 = vmatprep.mubr.msk.bf16.mxu1 %vm4514_vm0, %v4513_v0  ;;  %4112 = vmatprep.subr.bf16.mxu1 %v4513_v0 }
 0x1e8   :  { %4108 = vmatprep.mubr.msk.bf16.mxu0 %vm4514_vm0, %v4513_v0  ;;  %4118 = vmatprep.subr.bf16.mxu0 %v4513_v0 }
 0x1ed   :  { %4103 = vmatmul.mubr.msk.bf16.vlgmr.msra.gmra.mxu1 %vm809_vm1, %v4987_v27 }
 0x1ee   :  { %4113 = vmatpush3.bf16.msra.mxu1 %v1336_v61  ;;  %4114 = vmatprep.mubr.msk.bf16.mxu1 %vm4514_vm0, %v4513_v0 }
 0x1ef   :  { %4124 = vmatprep.subr.bf16.mxu1 %v4513_v0 }
 0x28d   :  { %v850_v14 = vpop.f32.mrf.mxu1 }
 0x28e   :  { %v1180_v15 = vsel %vm5001_vm3, %v850_v14, -1e+30 }
 0x28f   :  { %v4062_v17 = vpop.f32.mrf.mxu1  ;;  %v1189_v19 = vsel %vm1188_vm4, %v1180_v15, -inf }
 0x290   :  { %1190 = vmax.xlane.f32.xlu0 %v1189_v19 }
 0x291   :  { %v853_v21 = vpop.f32.mrf.mxu1 }
 0x293   :  { %v4063_v58 = vpop.f32.mrf.mxu1 }
 0x295   :  { %v896_v22 = vpop.f32.mrf.mxu1  ;;  %v942_v24 = vpop.f32.mrf.mxu0 }
 0x296   :  { %v1181_v28 = vsel %vm5001_vm3, %v896_v22, -1e+30  ;;  %v1182_v30 = vsel %vm5001_vm3, %v942_v24, -1e+30 }
 0x297   :  { %v4068_v32 = vpop.f32.mrf.mxu1  ;;  %v4074_v35 = vpop.f32.mrf.mxu0  ;;  %v1195_v37 = vsel %vm1188_vm4, %v1182_v30, -inf  ;;  %v1192_v39 = vsel %vm1188_vm4, %v1181_v28, -inf }
 0x298   :  { %1196 = vmax.xlane.f32.xlu1 %v1195_v37  ;;  %1193 = vmax.xlane.f32.xlu0 %v1192_v39 }
 0x299   :  { %v899_v43 = vpop.f32.mrf.mxu1  ;;  %v945_v44 = vpop.f32.mrf.mxu0 }
 0x29b   :  { %v4069_v45 = vpop.f32.mrf.mxu1  ;;  %v4075_v46 = vpop.f32.mrf.mxu0 }
 0x29d   :  { %v988_v52 = vpop.f32.mrf.mxu1  ;;  %v1034_v53 = vpop.f32.mrf.mxu0 }
 0x29e   :  { %v1183_v54 = vsel %vm5001_vm3, %v988_v52, -1e+30  ;;  %v1184_v57 = vsel %vm5001_vm3, %v1034_v53, -1e+30 }
 0x29f   :  { %v4080_v59 = vpop.f32.mrf.mxu1  ;;  %v4086_v61 = vpop.f32.mrf.mxu0  ;;  %v1201_v14 = vsel %vm1188_vm4, %v1184_v57, -inf  ;;  %v1198_v17 = vsel %vm1188_vm4, %v1183_v54, -inf }
 0x2a0   :  { %1202 = vmax.xlane.f32.xlu0 %v1201_v14  ;;  %1199 = vmax.xlane.f32.xlu1 %v1198_v17 }
 0x2a1   :  { %v991_v19 = vpop.f32.mrf.mxu1  ;;  %v1037_v21 = vpop.f32.mrf.mxu0 }
 0x2a3   :  { %v4081_v58 = vpop.f32.mrf.mxu1  ;;  %v4087_v22 = vpop.f32.mrf.mxu0 }
 0x2a5   :  { %v1080_v24 = vpop.f32.mrf.mxu1  ;;  %v1126_v32 = vpop.f32.mrf.mxu0 }
 0x2a6   :  { %v1185_v35 = vsel %vm5001_vm3, %v1080_v24, -1e+30  ;;  %v1186_v37 = vsel %vm5001_vm3, %v1126_v32, -1e+30 }
 0x2a7   :  { %v4092_v39 = vpop.f32.mrf.mxu1  ;;  %v4098_v43 = vpop.f32.mrf.mxu0  ;;  %v1207_v44 = vsel %vm1188_vm4, %v1186_v37, -inf  ;;  %v1204_v45 = vsel %vm1188_vm4, %v1185_v35, -inf }
 0x2a8   :  { %1208 = vmax.xlane.f32.xlu0 %v1207_v44  ;;  %1205 = vmax.xlane.f32.xlu1 %v1204_v45 }
 0x2a9   :  { %v1083_v46 = vpop.f32.mrf.mxu1  ;;  %v1129_v52 = vpop.f32.mrf.mxu0 }
 0x2ab   :  { %v4093_v53 = vpop.f32.mrf.mxu1  ;;  %v4099_v59 = vpop.f32.mrf.mxu0 }
 0x2ad   :  { %v1172_v61 = vpop.f32.mrf.mxu1 }
 0x2ae   :  { %v5030_v14 = vsel %vm5001_vm3, %v1172_v61, -1e+30 }
 0x2af   :  { %v4104_v17 = vpop.f32.mrf.mxu1  ;;  %v1210_v19 = vsel %vm1188_vm4, %v5030_v14, -inf }
 0x2b0   :  { %1211 = vmax.xlane.f32.xlu1 %v1210_v19 }
 0x2b1   :  { %v1175_v21 = vpop.f32.mrf.mxu1 }
 0x2b3   :  { %v4105_v58 = vpop.f32.mrf.mxu1 }
 0x319   :  { %v1191_v22 = vpop.xlane.xlu0 %1190 }
 0x31a   :  { %v1213_v24 = vsub.f32 %v1180_v15, %v1191_v22 }
 0x31c   :  { %v1221_v32 = vmul.f32 1.442695, %v1213_v24 }
 0x31e   :  { %4385 = vpow2.f32 %v1221_v32 }
 0x321   :  { %v1197_v39 = vpop.xlane.xlu1 %1196  ;;  %v1194_v43 = vpop.xlane.xlu0 %1193 }
 0x322   :  { %v1215_v44 = vsub.f32 %v1182_v30, %v1197_v39  ;;  %v1214_v45 = vsub.f32 %v1181_v28, %v1194_v43 }
 0x324   :  { %v1225_v46 = vmul.f32 1.442695, %v1215_v44  ;;  %v1223_v52 = vmul.f32 1.442695, %v1214_v45 }
 0x326   :  { %4387 = vpow2.f32 %v1225_v46 }
 0x327   :  { %4389 = vpow2.f32 %v1223_v52 }
 0x329   :  { %v1203_v53 = vpop.xlane.xlu0 %1202  ;;  %v1200_v59 = vpop.xlane.xlu1 %1199 }
 0x32a   :  { %v1217_v61 = vsub.f32 %v1184_v57, %v1203_v53  ;;  %v1216_v17 = vsub.f32 %v1183_v54, %v1200_v59 }
 0x32b   :  { %v5034_v5 = vpop.eup %4385 }
 0x32c   :  { %v1229_v19 = vmul.f32 1.442695, %v1217_v61  ;;  %v1227_v21 = vmul.f32 1.442695, %v1216_v17  ;;  %v1237_v15 = vsel %vm1188_vm4, %v5034_v5, 0.0 }
 0x32d   :  { %1238 = vadd.xlane.f32.xlu0 %v1237_v15 }
 0x32e   :  { %4391 = vpow2.f32 %v1229_v19 }
 0x32f   :  { %4393 = vpow2.f32 %v1227_v21 }
 0x331   :  { %v1209_v30 = vpop.xlane.xlu0 %1208  ;;  %v1206_v28 = vpop.xlane.xlu1 %1205 }
 0x332   :  { %v1219_v58 = vsub.f32 %v1186_v37, %v1209_v30  ;;  %v1218_v22 = vsub.f32 %v1185_v35, %v1206_v28 }
 0x333   :  { %v5038_v24 = vpop.eup %4387 }
 0x334   :  { %v5040_v32 = vpop.eup %4389  ;;  %v1233_v57 = vmul.f32 1.442695, %v1219_v58  ;;  %v1231_v54 = vmul.f32 1.442695, %v1218_v22  ;;  %v1243_v39 = vsel %vm1188_vm4, %v5038_v24, 0.0 }
 0x335   :  { %1244 = vadd.xlane.f32.xlu0 %v1243_v39  ;;  %v1240_v43 = vsel %vm1188_vm4, %v5040_v32, 0.0 }
 0x336   :  { %4395 = vpow2.f32 %v1233_v57  ;;  %1241 = vadd.xlane.f32.xlu1 %v1240_v43 }
 0x337   :  { %4397 = vpow2.f32 %v1231_v54 }
 0x339   :  { %v1212_v61 = vpop.xlane.xlu1 %1211 }
 0x33a   :  { %v1220_v17 = vsub.f32 %v5030_v14, %v1212_v61 }
 0x33b   :  { %v5046_v44 = vpop.eup %4391 }
 0x33c   :  { %v5048_v37 = vpop.eup %4393  ;;  %v1249_v35 = vsel %vm1188_vm4, %v5046_v44, 0.0  ;;  %v1235_v19 = vmul.f32 1.442695, %v1220_v17 }
 0x33d   :  { %1250 = vadd.xlane.f32.xlu0 %v1249_v35  ;;  %v1246_v45 = vsel %vm1188_vm4, %v5048_v37, 0.0 }
 0x33e   :  { %1247 = vadd.xlane.f32.xlu1 %v1246_v45  ;;  %4399 = vpow2.f32 %v1235_v19  ;;  %v5157_v45 = vpack.c.bf16 %v4898_v50, %v4898_v50 }
 0x343   :  { %v5054_v46 = vpop.eup %4395 }
 0x344   :  { %v5056_v52 = vpop.eup %4397  ;;  %v1255_v53 = vsel %vm1188_vm4, %v5054_v46, 0.0 }
 0x345   :  { %1256 = vadd.xlane.f32.xlu0 %v1255_v53  ;;  %v1252_v59 = vsel %vm1188_vm4, %v5056_v52, 0.0 }
 0x346   :  { %1253 = vadd.xlane.f32.xlu1 %v1252_v59 }
 0x357   :  { %1714 = vrot.lane.b32.xlu1 %v4877_v31, %s4517_s8 }
 0x35b   :  { %1659 = vrot.lane.b32.xlu1 %v4883_v36, %s4517_s8  ;;  %1662 = vrot.lane.b32.xlu0 %v4866_v20, %s4517_s8  ;;  %v5081_v20 = vpop.eup %4399 }
 0x35c   :  { %v1258_v31 = vsel %vm1188_vm4, %v5081_v20, 0.0 }
 0x35f   :  { %1766 = vrot.lane.b32.xlu0 %v4887_v41, %s4517_s8 }
 0x363   :  { %1763 = vrot.lane.b32.xlu0 %v4912_v4, %s4517_s8  ;;  %v5101_v4 = vpack.c.bf16 %v4861_v16, %v4861_v16 }
 0x367   :  { %1870 = vrot.lane.b32.xlu0 %v4915_v8, %s4517_s8 }
 0x36b   :  { %1867 = vrot.lane.b32.xlu0 %v4937_v29, %s4517_s8 }
 0x36f   :  { %1974 = vrot.lane.b32.xlu0 %v4941_v34, %s4517_s8  ;;  %v1382_v34 = vsel %vm1288_vm2, %v5101_v4, 0 }
 0x373   :  { %1971 = vrot.lane.b32.xlu0 %v4966_v51, %s4517_s8  ;;  %v5117_v51 = vpack.c.bf16 %v4872_v25, %v4872_v25  ;;  %v745_v25 = vadd.f32 %v5005_v13, %v4854_v10 }
 0x375   :  { %v5139_v13 = vpack.c.bf16 %v745_v25, %v745_v25 }
 0x37f   :  { %1259 = vadd.xlane.f32.xlu1 %v1258_v31  ;;  %v1612_v31 = vsel %vm1288_vm2, %v5157_v45, 0 }
 0x390   :  { %1711 = vrot.lane.b32.xlu1 %v4910_v3, %s4517_s8 }
 0x394   :  { %1818 = vrot.lane.b32.xlu1 %v4906_v56, %s4517_s8 }
 0x398   :  { %1815 = vrot.lane.b32.xlu1 %v4935_v26, %s4517_s8 }
 0x39c   :  { %1922 = vrot.lane.b32.xlu1 %v4932_v23, %s4517_s8 }
 0x3a0   :  { %1919 = vrot.lane.b32.xlu1 %v4964_v49, %s4517_s8 }
 0x3a4   :  { %2026 = vrot.lane.b32.xlu1 %v4962_v18, %s4517_s8 }
 0x3a8   :  { %2023 = vrot.lane.b32.xlu1 %v4987_v27, %s4517_s8 }
 0x3b6   :  { %v1239_v36 = vpop.xlane.xlu0 %1238 }
 0x3b7   :  { %4401 = vrcp.f32 %v1239_v36 }
 0x3be   :  { %v1245_v41 = vpop.xlane.xlu0 %1244 }
 0x3bf   :  { %4403 = vrcp.f32 %v1245_v41  ;;  %v1242_v56 = vpop.xlane.xlu1 %1241 }
 0x3c0   :  { %4405 = vrcp.f32 %v1242_v56 }
 0x3c4   :  { %v4402_v3 = vpop.eup %4401 }
 0x3c5   :  { %v1262_v8 = vmul.f32 %v4402_v3, %v5034_v5  ;;  %v5112_v5 = vpack.c.bf16 %v4890_v42, %v4890_v42  ;;  %v1428_v42 = vsel %vm1288_vm2, %v5117_v51, 0 }
 0x3c6   :  { %v1251_v23 = vpop.xlane.xlu0 %1250 }
 0x3c7   :  { %4407 = vrcp.f32 %v1251_v23  ;;  %v1248_v26 = vpop.xlane.xlu1 %1247  ;;  %v1277_v29 = vpack.c.bf16 %v1262_v8, %v1262_v8  ;;  %v1474_v28 = vsel %vm1288_vm2, %v5112_v5, 0 }
 0x3c8   :  { %4409 = vrcp.f32 %v1248_v26 }
 0x3c9   :  { %4109 = vmatmul.mubr.msk.bf16.vlgmr.msra.gmra.mxu0 %vm1188_vm4, %v1277_v29 }
 0x3ca   :  { %4119 = vmatpush3.bf16.msra.mxu0 %v1382_v34  ;;  %4120 = vmatprep.mubr.msk.bf16.mxu0 %vm4514_vm0, %v4513_v0 }
 0x3cb   :  { %4130 = vmatprep.subr.bf16.mxu0 %v4513_v0 }
 0x3cc   :  { %v4404_v16 = vpop.eup %4403 }
 0x3cd   :  { %v4406_v18 = vpop.eup %4405  ;;  %v1266_v49 = vmul.f32 %v4404_v16, %v5038_v24  ;;  %v5135_v24 = vpack.c.bf16 %v4881_v33, %v4881_v33  ;;  %v1520_v33 = vsel %vm1288_vm2, %v5139_v13, 0 }
 0x3ce   :  { %v1257_v27 = vpop.xlane.xlu0 %1256  ;;  %v1264_v14 = vmul.f32 %v4406_v18, %v5040_v32 }
 0x3cf   :  { %4411 = vrcp.f32 %v1257_v27  ;;  %v1254_v21 = vpop.xlane.xlu1 %1253  ;;  %v1279_v15 = vpack.c.bf16 %v1266_v49, %v1266_v49  ;;  %v1566_v43 = vsel %vm1288_vm2, %v5135_v24, 0 }
 0x3d0   :  { %4413 = vrcp.f32 %v1254_v21  ;;  %v1278_v30 = vpack.c.bf16 %v1264_v14, %v1264_v14 }
 0x3d1   :  { %4121 = vmatmul.mubr.msk.bf16.vlgmr.msra.gmra.mxu0 %vm1188_vm4, %v1279_v15 }
 0x3d2   :  { %4115 = vmatmul.mubr.msk.bf16.vlgmr.msra.gmra.mxu1 %vm1188_vm4, %v1278_v30  ;;  %4131 = vmatpush3.bf16.msra.mxu0 %v1474_v28  ;;  %v1663_v54 = vpop.permute.xlu0 %1662 }
 0x3d3   :  { %4125 = vmatpush3.bf16.msra.mxu1 %v1428_v42  ;;  %4126 = vmatprep.mubr.msk.bf16.mxu1 %vm4514_vm0, %v4513_v0  ;;  %v1668_v19 = vsel %vm809_vm1, %v1663_v54, 0  ;;  %v1715_v36 = vpop.permute.xlu1 %1714 }
 0x3d4   :  { %v4408_v58 = vpop.eup %4407  ;;  %4132 = vmatprep.mubr.msk.bf16.mxu0 %vm4514_vm0, %v4513_v0  ;;  %4136 = vmatprep.subr.bf16.mxu1 %v4513_v0  ;;  %v1720_v14 = vsel %vm809_vm1, %v1715_v36, 0 }
 0x3d5   :  { %v4410_v22 = vpop.eup %4409  ;;  %4142 = vmatprep.subr.bf16.mxu0 %v4513_v0  ;;  %v1270_v10 = vmul.f32 %v4408_v58, %v5046_v44 }
 0x3d6   :  { %v1268_v32 = vmul.f32 %v4410_v22, %v5048_v37  ;;  %v1767_v53 = vpop.permute.xlu0 %1766 }
 0x3d7   :  { %v1281_v57 = vpack.c.bf16 %v1270_v10, %v1270_v10 }
 0x3d8   :  { %v1280_v39 = vpack.c.bf16 %v1268_v32, %v1268_v32 }
 0x3d9   :  { %4133 = vmatmul.mubr.msk.bf16.vlgmr.msra.gmra.mxu0 %vm1188_vm4, %v1281_v57 }
 0x3da   :  { %4127 = vmatmul.mubr.msk.bf16.vlgmr.msra.gmra.mxu1 %vm1188_vm4, %v1280_v39  ;;  %4143 = vmatpush3.bf16.msra.mxu0 %v1566_v43  ;;  %v1764_v50 = vpop.permute.xlu0 %1763 }
 0x3db   :  { %4137 = vmatpush3.bf16.msra.mxu1 %v1520_v33  ;;  %4138 = vmatprep.mubr.msk.bf16.mxu1 %vm4514_vm0, %v4513_v0 }
 0x3dc   :  { %v4412_v44 = vpop.eup %4411  ;;  %4144 = vmatprep.mubr.msk.bf16.mxu0 %vm4514_vm0, %v4513_v0  ;;  %4148 = vmatprep.subr.bf16.mxu1 %v4513_v0 }
 0x3dd   :  { %v4414_v37 = vpop.eup %4413  ;;  %4154 = vmatprep.subr.bf16.mxu0 %v4513_v0  ;;  %v1274_v35 = vmul.f32 %v4412_v44, %v5054_v46  ;;  %v1660_v46 = vpop.permute.xlu1 %1659 }
 0x3de   :  { %v1272_v59 = vmul.f32 %v4414_v37, %v5056_v52  ;;  %v1772_v52 = vsel %vm809_vm1, %v1767_v53, 0  ;;  %v1871_v41 = vpop.permute.xlu0 %1870 }
 0x3df   :  { %v1283_v61 = vpack.c.bf16 %v1274_v35, %v1274_v35  ;;  %v1876_v3 = vsel %vm809_vm1, %v1871_v41, 0 }
 0x3e0   :  { %v1282_v17 = vpack.c.bf16 %v1272_v59, %v1272_v59 }
 0x3e1   :  { %4145 = vmatmul.mubr.msk.bf16.vlgmr.msra.gmra.mxu0 %vm1188_vm4, %v1283_v61 }
 0x3e2   :  { %4139 = vmatmul.mubr.msk.bf16.vlgmr.msra.gmra.mxu1 %vm1188_vm4, %v1282_v17  ;;  %4155 = vmatpush3.bf16.xpose.msra.mxu0 %v1668_v19  ;;  %v1868_v56 = vpop.permute.xlu0 %1867 }
 0x3e3   :  { %4149 = vmatpush3.bf16.msra.mxu1 %v1612_v31  ;;  %4156 = vmatprep.mubr.msk.bf16.mxu0 %vm4514_vm0, %v4513_v0 }
 0x3e4   :  { %4166 = vmatprep.subr.bf16.mxu0 %v4513_v0  ;;  %4150 = vmatprep.mubr.msk.bf16.mxu1 %vm4514_vm0, %v4513_v0 }
 0x3e5   :  { %4160 = vmatprep.subr.bf16.mxu1 %v4513_v0 }
 0x3e6   :  { %v1975_v8 = vpop.permute.xlu0 %1974 }
 0x3e7   :  { %v1980_v23 = vsel %vm809_vm1, %v1975_v8, 0 }
 0x3e9   :  { %4157 = vmatmul.mubr.msk.bf16.vlgmr.msra.gmra.mxu0 %vm809_vm1, %v1660_v46 }
 0x3ea   :  { %4167 = vmatpush3.bf16.xpose.msra.mxu0 %v1772_v52  ;;  %4168 = vmatprep.mubr.msk.bf16.mxu0 %vm4514_vm0, %v4513_v0  ;;  %v1972_v26 = vpop.permute.xlu0 %1971 }
 0x3eb   :  { %4178 = vmatprep.subr.bf16.mxu0 %v4513_v0 }
 0x3f1   :  { %4169 = vmatmul.mubr.msk.bf16.vlgmr.msra.gmra.mxu0 %vm809_vm1, %v1764_v50 }
 0x3f2   :  { %4179 = vmatpush3.bf16.xpose.msra.mxu0 %v1876_v3  ;;  %4180 = vmatprep.mubr.msk.bf16.mxu0 %vm4514_vm0, %v4513_v0 }
 0x3f3   :  { %4190 = vmatprep.subr.bf16.mxu0 %v4513_v0 }
 0x3f9   :  { %4181 = vmatmul.mubr.msk.bf16.vlgmr.msra.gmra.mxu0 %vm809_vm1, %v1868_v56 }
 0x3fa   :  { %4191 = vmatpush3.bf16.xpose.msra.mxu0 %v1980_v23  ;;  %4192 = vmatprep.mubr.msk.bf16.mxu0 %vm4514_vm0, %v4513_v0 }
 0x3fb   :  { %4202 = vmatprep.subr.bf16.mxu0 %v4513_v0 }
 0x401   :  { %4193 = vmatmul.mubr.msk.bf16.vlgmr.msra.gmra.mxu0 %vm809_vm1, %v1972_v26 }
 0x402   :  { %4204 = vmatprep.mubr.msk.bf16.mxu0 %vm4514_vm0, %v4513_v0 }
 0x408   :  { %v1260_v29 = vpop.xlane.xlu1 %1259 }
 0x409   :  { %4415 = vrcp.f32 %v1260_v29 }
 0x40c   :  { %v1712_v34 = vpop.permute.xlu1 %1711 }
 0x410   :  { %v1819_v49 = vpop.permute.xlu1 %1818 }
 0x411   :  { %v1824_v15 = vsel %vm809_vm1, %v1819_v49, 0 }
 0x414   :  { %v1816_v21 = vpop.permute.xlu1 %1815 }
 0x416   :  { %v4416_v16 = vpop.eup %4415 }
 0x417   :  { %v1276_v18 = vmul.f32 %v4416_v16, %v5081_v20 }
 0x418   :  { %v1923_v30 = vpop.permute.xlu1 %1922 }
 0x419   :  { %v1284_v27 = vpack.c.bf16 %v1276_v18, %v1276_v18  ;;  %v1928_v28 = vsel %vm809_vm1, %v1923_v30, 0 }
 0x41b   :  { %4151 = vmatmul.mubr.msk.bf16.vlgmr.msra.gmra.mxu1 %vm1188_vm4, %v1284_v27 }
 0x41c   :  { %4161 = vmatpush3.bf16.xpose.msra.mxu1 %v1720_v14  ;;  %4162 = vmatprep.mubr.msk.bf16.mxu1 %vm4514_vm0, %v4513_v0  ;;  %v1920_v20 = vpop.permute.xlu1 %1919 }
 0x41d   :  { %4172 = vmatprep.subr.bf16.mxu1 %v4513_v0 }
 0x420   :  { %v2027_v42 = vpop.permute.xlu1 %2026 }
 0x421   :  { %v2032_v25 = vsel %vm809_vm1, %v2027_v42, 0 }
 0x423   :  { %4163 = vmatmul.mubr.msk.bf16.vlgmr.msra.gmra.mxu1 %vm809_vm1, %v1712_v34 }
 0x424   :  { %4173 = vmatpush3.bf16.xpose.msra.mxu1 %v1824_v15  ;;  %4174 = vmatprep.mubr.msk.bf16.mxu1 %vm4514_vm0, %v4513_v0  ;;  %v2024_v58 = vpop.permute.xlu1 %2023 }
 0x425   :  { %4184 = vmatprep.subr.bf16.mxu1 %v4513_v0 }
 0x42b   :  { %4175 = vmatmul.mubr.msk.bf16.vlgmr.msra.gmra.mxu1 %vm809_vm1, %v1816_v21 }
 0x42c   :  { %4185 = vmatpush3.bf16.xpose.msra.mxu1 %v1928_v28  ;;  %4186 = vmatprep.mubr.msk.bf16.mxu1 %vm4514_vm0, %v4513_v0 }
 0x42d   :  { %4196 = vmatprep.subr.bf16.mxu1 %v4513_v0 }
 0x433   :  { %4187 = vmatmul.mubr.msk.bf16.vlgmr.msra.gmra.mxu1 %vm809_vm1, %v1920_v20 }
 0x434   :  { %4197 = vmatpush3.bf16.xpose.msra.mxu1 %v2032_v25  ;;  %4198 = vmatprep.mubr.msk.bf16.mxu1 %vm4514_vm0, %v4513_v0 }
 0x435   :  { %4208 = vmatprep.subr.bf16.mxu1 %v4513_v0 }
 0x43b   :  { %4199 = vmatmul.mubr.msk.bf16.vlgmr.msra.gmra.mxu1 %vm809_vm1, %v2024_v58 }
 0x43c   :  { %4210 = vmatprep.mubr.msk.bf16.mxu1 %vm4514_vm0, %v4513_v0 }
 0x489   :  { %v5213_v22 = vpop.f32.mrf.mxu0 }
 0x48b   :  { %v4110_v10 = vpop.f32.mrf.mxu0 }
 0x48d   :  { %v1329_v32 = vpop.f32.mrf.mxu0 }
 0x48f   :  { %v4111_v57 = vpop.f32.mrf.mxu0 }
 0x491   :  { %v5215_v54 = vpop.f32.mrf.mxu0 }
 0x492   :  { %v5217_v39 = vpop.f32.mrf.mxu1 }
 0x493   :  { %v1654_v43 = vpack.c.bf16 %v5217_v39, %v5213_v22  ;;  %v4122_v33 = vpop.f32.mrf.mxu0  ;;  %v4341_v22 = vld [vmem:[%s5799_s9 + $0x38] sm:$0xff]   ;;  %v4342_v39 = vld [vmem:[%s5799_s9 + $0x30] sm:$0xff]  }
 0x494   :  { %v4116_v44 = vpop.f32.mrf.mxu1 }
 0x495   :  { %v1421_v37 = vpop.f32.mrf.mxu0 }
 0x496   :  { %v1375_v35 = vpop.f32.mrf.mxu1 }
 0x497   :  { %v4123_v53 = vpop.f32.mrf.mxu0 }
 0x498   :  { %v4117_v59 = vpop.f32.mrf.mxu1 }
 0x499   :  { %v5221_v61 = vpop.f32.mrf.mxu0 }
 0x49a   :  { %v5223_v17 = vpop.f32.mrf.mxu1 }
 0x49b   :  { %v1655_v19 = vpack.c.bf16 %v5223_v17, %v5215_v54  ;;  %v4134_v31 = vpop.f32.mrf.mxu0  ;;  %v4343_v54 = vld [vmem:[%s5799_s9 + $0x28] sm:$0xff]  }
 0x49c   :  { %v4128_v36 = vpop.f32.mrf.mxu1 }
 0x49d   :  { %v1513_v50 = vpop.f32.mrf.mxu0 }
 0x49e   :  { %v1467_v46 = vpop.f32.mrf.mxu1 }
 0x49f   :  { %v4135_v52 = vpop.f32.mrf.mxu0 }
 0x4a0   :  { %v4129_v41 = vpop.f32.mrf.mxu1 }
 0x4a1   :  { %v5227_v56 = vpop.f32.mrf.mxu0 }
 0x4a2   :  { %v5229_v3 = vpop.f32.mrf.mxu1 }
 0x4a3   :  { %v1656_v8 = vpack.c.bf16 %v5229_v3, %v5221_v61  ;;  %v4146_v23 = vpop.f32.mrf.mxu0 }
 0x4a4   :  { %v4140_v26 = vpop.f32.mrf.mxu1 }
 0x4a5   :  { %v1605_v29 = vpop.f32.mrf.mxu0 }
 0x4a6   :  { %v1559_v34 = vpop.f32.mrf.mxu1 }
 0x4a7   :  { %v4147_v16 = vpop.f32.mrf.mxu0 }
 0x4a8   :  { %v4141_v18 = vpop.f32.mrf.mxu1 }
 0x4a9   :  { %v1704_v49 = vpop.f32.mrf.mxu0 }
 0x4aa   :  { %v5235_v27 = vsel %vm5001_vm3, %v1704_v49, -1e+30 }
 0x4ab   :  { %v4158_v14 = vpop.f32.mrf.mxu0  ;;  %v2082_v21 = vsel %vm1188_vm4, %v5235_v27, -inf }
 0x4ac   :  { %2083 = vmax.xlane.f32.xlu0 %v2082_v21 }
 0x4ad   :  { %v1707_v15 = vpop.f32.mrf.mxu0 }
 0x4af   :  { %v4159_v30 = vpop.f32.mrf.mxu0 }
 0x4b1   :  { %v1808_v20 = vpop.f32.mrf.mxu0 }
 0x4b2   :  { %v2076_v28 = vsel %vm5001_vm3, %v1808_v20, -1e+30 }
 0x4b3   :  { %v4170_v42 = vpop.f32.mrf.mxu0  ;;  %v2088_v25 = vsel %vm1188_vm4, %v2076_v28, -inf }
 0x4b4   :  { %2089 = vmax.xlane.f32.xlu0 %v2088_v25 }
 0x4b5   :  { %v1811_v58 = vpop.f32.mrf.mxu0 }
 0x4b7   :  { %v4171_v10 = vpop.f32.mrf.mxu0 }
 0x4b9   :  { %v1912_v32 = vpop.f32.mrf.mxu0 }
 0x4ba   :  { %v2078_v15 = vsel %vm5001_vm3, %v1912_v32, -1e+30 }
 0x4bb   :  { %v4182_v57 = vpop.f32.mrf.mxu0  ;;  %v2094_v42 = vsel %vm1188_vm4, %v2078_v15, -inf }
 0x4bd   :  { %v1915_v33 = vpop.f32.mrf.mxu0 }
 0x4bf   :  { %v4183_v44 = vpop.f32.mrf.mxu0 }
 0x4c1   :  { %v2016_v37 = vpop.f32.mrf.mxu0 }
 0x4c2   :  { %v2080_v25 = vsel %vm5001_vm3, %v2016_v37, -1e+30 }
 0x4c3   :  { %v4194_v35 = vpop.f32.mrf.mxu0  ;;  %v2100_v33 = vsel %vm1188_vm4, %v2080_v25, -inf }
 0x4c5   :  { %v2019_v53 = vpop.f32.mrf.mxu0 }
 0x4c7   :  { %v4195_v59 = vpop.f32.mrf.mxu0 }
 0x4db   :  { %v5242_v31 = vpop.f32.mrf.mxu1 }
 0x4dc   :  { %v1657_v36 = vpack.c.bf16 %v5242_v31, %v5227_v56 }
 0x4dd   :  { %v4152_v50 = vpop.f32.mrf.mxu1 }
 0x4df   :  { %v1651_v46 = vpop.f32.mrf.mxu1 }
 0x4e1   :  { %v4153_v52 = vpop.f32.mrf.mxu1 }
 0x4e3   :  { %v1756_v41 = vpop.f32.mrf.mxu1 }
 0x4e4   :  { %v2075_v23 = vsel %vm5001_vm3, %v1756_v41, -1e+30 }
 0x4e5   :  { %v4164_v26 = vpop.f32.mrf.mxu1  ;;  %v2085_v29 = vsel %vm1188_vm4, %v2075_v23, -inf }
 0x4e6   :  { %2086 = vmax.xlane.f32.xlu1 %v2085_v29 }
 0x4e7   :  { %v1759_v34 = vpop.f32.mrf.mxu1 }
 0x4e9   :  { %v4165_v16 = vpop.f32.mrf.mxu1 }
 0x4eb   :  { %v1860_v18 = vpop.f32.mrf.mxu1 }
 0x4ec   :  { %v5251_v49 = vsel %vm5001_vm3, %v1860_v18, -1e+30 }
 0x4ed   :  { %v4176_v14 = vpop.f32.mrf.mxu1  ;;  %v2091_v21 = vsel %vm1188_vm4, %v5251_v49, -inf }
 0x4ee   :  { %2092 = vmax.xlane.f32.xlu0 %v2091_v21 }
 0x4ef   :  { %v1863_v30 = vpop.f32.mrf.mxu1 }
 0x4f1   :  { %v4177_v20 = vpop.f32.mrf.mxu1 }
 0x4f2   :  { %2095 = vmax.xlane.f32.xlu0 %v2094_v42 }
 0x4f3   :  { %v1964_v58 = vpop.f32.mrf.mxu1 }
 0x4f4   :  { %v5262_v10 = vsel %vm5001_vm3, %v1964_v58, -1e+30 }
 0x4f5   :  { %v4188_v57 = vpop.f32.mrf.mxu1  ;;  %v2097_v32 = vsel %vm1188_vm4, %v5262_v10, -inf }
 0x4f6   :  { %2101 = vmax.xlane.f32.xlu0 %v2100_v33  ;;  %2098 = vmax.xlane.f32.xlu1 %v2097_v32 }
 0x4f7   :  { %v1967_v44 = vpop.f32.mrf.mxu1 }
 0x4f9   :  { %v4189_v35 = vpop.f32.mrf.mxu1 }
 0x4fb   :  { %v2068_v53 = vpop.f32.mrf.mxu1 }
 0x4fc   :  { %v5275_v46 = vsel %vm5001_vm3, %v2068_v53, -1e+30 }
 0x4fd   :  { %v4200_v59 = vpop.f32.mrf.mxu1  ;;  %v2103_v52 = vsel %vm1188_vm4, %v5275_v46, -inf }
 0x4ff   :  { %v2071_v50 = vpop.f32.mrf.mxu1 }
 0x501   :  { %v4201_v37 = vpop.f32.mrf.mxu1 }
 0x507   :  { %2228 = vrot.lane.b32.xlu1 %v4985_v12, %s4517_s8 }
 0x50b   :  { %2277 = vrot.lane.b32.xlu1 %v5101_v4, %s4517_s8 }
 0x50c   :  { %2179 = vrot.lane.b32.xlu0 %v4960_v9, %s4517_s8 }
 0x52f   :  { %2104 = vmax.xlane.f32.xlu1 %v2103_v52 }
 0x535   :  { %v2084_v41 = vpop.xlane.xlu0 %2083 }
 0x536   :  { %v2106_v26 = vsub.f32 %v5235_v27, %v2084_v41 }
 0x538   :  { %v2114_v29 = vmul.f32 1.442695, %v2106_v26 }
 0x53a   :  { %4417 = vpow2.f32 %v2114_v29 }
 0x53d   :  { %v2090_v12 = vpop.xlane.xlu0 %2089 }
 0x53e   :  { %v2108_v34 = vsub.f32 %v2076_v28, %v2090_v12 }
 0x540   :  { %v2118_v16 = vmul.f32 1.442695, %v2108_v34  ;;  %2326 = vrot.lane.b32.xlu1 %v5117_v51, %s4517_s8 }
 0x542   :  { %4419 = vpow2.f32 %v2118_v16 }
 0x547   :  { %v5282_v9 = vpop.eup %4417 }
 0x548   :  { %v2130_v11 = vsel %vm1188_vm4, %v5282_v9, 0.0 }
 0x549   :  { %2131 = vadd.xlane.f32.xlu0 %v2130_v11 }
 0x54f   :  { %v5286_v4 = vpop.eup %4419 }
 0x550   :  { %v2136_v27 = vsel %vm1188_vm4, %v5286_v4, 0.0 }
 0x551   :  { %2137 = vadd.xlane.f32.xlu0 %v2136_v27 }
 0x567   :  { %2375 = vrot.lane.b32.xlu0 %v5112_v5, %s4517_s8 }
 0x56f   :  { %v2087_v28 = vpop.xlane.xlu1 %2086 }
 0x570   :  { %v2107_v18 = vsub.f32 %v2075_v23, %v2087_v28 }
 0x572   :  { %v2116_v14 = vmul.f32 1.442695, %v2107_v18 }
 0x574   :  { %4421 = vpow2.f32 %v2116_v14 }
 0x577   :  { %v2093_v51 = vpop.xlane.xlu0 %2092 }
 0x578   :  { %v2109_v37 = vsub.f32 %v5251_v49, %v2093_v51 }
 0x57a   :  { %v2120_v52 = vmul.f32 1.442695, %v2109_v37 }
 0x57b   :  { %v2096_v21 = vpop.xlane.xlu0 %2095 }
 0x57c   :  { %v2110_v30 = vsub.f32 %v2078_v15, %v2096_v21 }
 0x57e   :  { %v2122_v20 = vmul.f32 1.442695, %v2110_v30 }
 0x57f   :  { %v2102_v42 = vpop.xlane.xlu0 %2101  ;;  %v2099_v58 = vpop.xlane.xlu1 %2098 }
 0x580   :  { %4423 = vpow2.f32 %v2122_v20  ;;  %v2112_v57 = vsub.f32 %v2080_v25, %v2102_v42  ;;  %v2111_v41 = vsub.f32 %v5262_v10, %v2099_v58 }
 0x581   :  { %v5292_v33 = vpop.eup %4421 }
 0x582   :  { %v2126_v32 = vmul.f32 1.442695, %v2112_v57  ;;  %v2133_v44 = vsel %vm1188_vm4, %v5292_v33, 0.0  ;;  %v2124_v26 = vmul.f32 1.442695, %v2111_v41 }
 0x583   :  { %v2180_v35 = vpop.permute.xlu0 %2179  ;;  %v2229_v5 = vpop.permute.xlu1 %2228  ;;  %2134 = vadd.xlane.f32.xlu1 %v2133_v44 }
 0x584   :  { %4425 = vpow2.f32 %v2126_v32  ;;  %v2185_v23 = vsel %vm1288_vm2, %v2180_v35, 0  ;;  %v2234_v53 = vsel %vm1288_vm2, %v2229_v5, 0 }
 0x585   :  { %4203 = vmatpush3.bf16.msra.mxu0 %v2185_v23  ;;  %4209 = vmatpush3.bf16.msra.mxu1 %v2234_v53  ;;  %4427 = vpow2.f32 %v2120_v52 }
 0x586   :  { %4214 = vmatprep.subr.bf16.mxu0 %v4513_v0  ;;  %4220 = vmatprep.subr.bf16.mxu1 %v4513_v0  ;;  %4429 = vpow2.f32 %v2124_v26 }
 0x587   :  { %v2278_v12 = vpop.permute.xlu1 %2277 }
 0x588   :  { %v2283_v21 = vsel %vm1288_vm2, %v2278_v12, 0 }
 0x58d   :  { %v5300_v15 = vpop.eup %4423 }
 0x58e   :  { %v2142_v25 = vsel %vm1188_vm4, %v5300_v15, 0.0 }
 0x58f   :  { %2143 = vadd.xlane.f32.xlu0 %v2142_v25 }
 0x591   :  { %v5304_v59 = vpop.eup %4425 }
 0x592   :  { %v2148_v50 = vsel %vm1188_vm4, %v5304_v59, 0.0  ;;  %v5314_v29 = vpop.eup %4427 }
 0x593   :  { %2149 = vadd.xlane.f32.xlu0 %v2148_v50  ;;  %v2139_v34 = vsel %vm1188_vm4, %v5314_v29, 0.0  ;;  %v5318_v16 = vpop.eup %4429 }
 0x594   :  { %2424 = vrot.lane.b32.xlu1 %v5139_v13, %s4517_s8  ;;  %v2145_v10 = vsel %vm1188_vm4, %v5318_v16, 0.0 }
 0x5a9   :  { %2473 = vrot.lane.b32.xlu0 %v5135_v24, %s4517_s8 }
 0x5b8   :  { %2140 = vadd.xlane.f32.xlu1 %v2139_v34  ;;  %v2105_v13 = vpop.xlane.xlu1 %2104 }
 0x5b9   :  { %v2113_v49 = vsub.f32 %v5275_v46, %v2105_v13 }
 0x5bb   :  { %v2128_v11 = vmul.f32 1.442695, %v2113_v49 }
 0x5bc   :  { %2146 = vadd.xlane.f32.xlu1 %v2145_v10 }
 0x5bd   :  { %4431 = vpow2.f32 %v2128_v11 }
 0x5ca   :  { %v5323_v24 = vpop.eup %4431 }
 0x5cb   :  { %v2151_v27 = vsel %vm1188_vm4, %v5323_v24, 0.0 }
 0x5cc   :  { %2152 = vadd.xlane.f32.xlu1 %v2151_v27 }
 0x5d2   :  { %v2132_v28 = vpop.xlane.xlu0 %2131 }
 0x5d3   :  { %4433 = vrcp.f32 %v2132_v28 }
 0x5da   :  { %v2138_v18 = vpop.xlane.xlu0 %2137 }
 0x5db   :  { %4435 = vrcp.f32 %v2138_v18 }
 0x5dd   :  { %2522 = vrot.lane.b32.xlu1 %v5157_v45, %s4517_s8 }
 0x5de   :  { %v2376_v42 = vpop.permute.xlu0 %2375 }
 0x5df   :  { %v2381_v45 = vsel %vm1288_vm2, %v2376_v42, 0 }
 0x5e0   :  { %v4434_v46 = vpop.eup %4433 }
 0x5e1   :  { %v2155_v14 = vmul.f32 %v4434_v46, %v5282_v9  ;;  %v2327_v9 = vpop.permute.xlu1 %2326 }
 0x5e2   :  { %v2332_v23 = vsel %vm1288_vm2, %v2327_v9, 0 }
 0x5e3   :  { %v2170_v51 = vpack.c.bf16 %v2155_v14, %v2155_v14  ;;  %v4337_v14 = vld [vmem:[%s5799_s9 + $0x18] sm:$0xff]  }
 0x5e5   :  { %4205 = vmatmul.mubr.msk.bf16.vlgmr.msra.gmra.mxu0 %vm1188_vm4, %v2170_v51 }
 0x5e6   :  { %4215 = vmatpush3.bf16.msra.mxu0 %v2283_v21  ;;  %4216 = vmatprep.mubr.msk.bf16.mxu0 %vm4514_vm0, %v4513_v0 }
 0x5e7   :  { %4226 = vmatprep.subr.bf16.mxu0 %v4513_v0 }
 0x5e8   :  { %v4436_v30 = vpop.eup %4435 }
 0x5e9   :  { %v2159_v20 = vmul.f32 %v4436_v30, %v5286_v4 }
 0x5eb   :  { %v2172_v58 = vpack.c.bf16 %v2159_v20, %v2159_v20 }
 0x5ed   :  { %4217 = vmatmul.mubr.msk.bf16.vlgmr.msra.gmra.mxu0 %vm1188_vm4, %v2172_v58 }
 0x5ee   :  { %4227 = vmatpush3.bf16.msra.mxu0 %v2381_v45  ;;  %4228 = vmatprep.mubr.msk.bf16.mxu0 %vm4514_vm0, %v4513_v0 }
 0x5ef   :  { %4238 = vmatprep.subr.bf16.mxu0 %v4513_v0 }
 0x60c   :  { %v2135_v57 = vpop.xlane.xlu1 %2134 }
 0x60d   :  { %4437 = vrcp.f32 %v2135_v57 }
 0x610   :  { %v2425_v12 = vpop.permute.xlu1 %2424 }
 0x611   :  { %v2430_v27 = vsel %vm1288_vm2, %v2425_v12, 0 }
 0x618   :  { %v2144_v32 = vpop.xlane.xlu0 %2143 }
 0x619   :  { %4439 = vrcp.f32 %v2144_v32 }
 0x61a   :  { %v4438_v44 = vpop.eup %4437 }
 0x61b   :  { %v2157_v4 = vmul.f32 %v4438_v44, %v5292_v33 }
 0x61c   :  { %v2150_v35 = vpop.xlane.xlu0 %2149 }
 0x61d   :  { %4441 = vrcp.f32 %v2150_v35  ;;  %v2171_v5 = vpack.c.bf16 %v2157_v4, %v2157_v4 }
 0x61f   :  { %4211 = vmatmul.mubr.msk.bf16.vlgmr.msra.gmra.mxu1 %vm1188_vm4, %v2171_v5 }
 0x620   :  { %4221 = vmatpush3.bf16.msra.mxu1 %v2332_v23  ;;  %4222 = vmatprep.mubr.msk.bf16.mxu1 %vm4514_vm0, %v4513_v0  ;;  %v2474_v50 = vpop.permute.xlu0 %2473 }
 0x621   :  { %4232 = vmatprep.subr.bf16.mxu1 %v4513_v0  ;;  %v2479_v33 = vsel %vm1288_vm2, %v2474_v50, 0 }
 0x626   :  { %v4440_v53 = vpop.eup %4439 }
 0x627   :  { %v2163_v25 = vmul.f32 %v4440_v53, %v5300_v15 }
 0x629   :  { %v2174_v37 = vpack.c.bf16 %v2163_v25, %v2163_v25 }
 0x62a   :  { %v4442_v52 = vpop.eup %4441 }
 0x62b   :  { %4229 = vmatmul.mubr.msk.bf16.vlgmr.msra.gmra.mxu0 %vm1188_vm4, %v2174_v37  ;;  %v2167_v41 = vmul.f32 %v4442_v52, %v5304_v59 }
 0x62c   :  { %4239 = vmatpush3.bf16.msra.mxu0 %v2479_v33  ;;  %4240 = vmatprep.mubr.msk.bf16.mxu0 %vm4514_vm0, %v4513_v0 }
 0x62d   :  { %v2176_v26 = vpack.c.bf16 %v2167_v41, %v2167_v41  ;;  %4250 = vmatprep.subr.bf16.mxu0 %v4341_v22 }
 0x633   :  { %4241 = vmatmul.mubr.msk.bf16.vlgmr.msra.gmra.mxu0 %vm1188_vm4, %v2176_v26 }
 0x634   :  { %4251 = vmatpush3.bf16.msra.mxu0 %v4341_v22 }
 0x635   :  { %4252 = vmatprep.subr.bf16.mxu0 %v4342_v39 }
 0x638   :  { %4253 = vmatpush3.bf16.msra.mxu0 %v4342_v39 }
 0x639   :  { %4254 = vmatprep.subr.bf16.mxu0 %v4343_v54 }
 0x63c   :  { %4255 = vmatpush3.bf16.msra.mxu0 %v4343_v54 }
 0x641   :  { %v2141_v34 = vpop.xlane.xlu1 %2140 }
 0x642   :  { %4443 = vrcp.f32 %v2141_v34 }
 0x645   :  { %v2147_v15 = vpop.xlane.xlu1 %2146 }
 0x646   :  { %4445 = vrcp.f32 %v2147_v15 }
 0x64f   :  { %v4444_v13 = vpop.eup %4443 }
 0x650   :  { %v2161_v49 = vmul.f32 %v4444_v13, %v5314_v29 }
 0x652   :  { %v2173_v11 = vpack.c.bf16 %v2161_v49, %v2161_v49 }
 0x653   :  { %v4446_v10 = vpop.eup %4445 }
 0x654   :  { %4223 = vmatmul.mubr.msk.bf16.vlgmr.msra.gmra.mxu1 %vm1188_vm4, %v2173_v11  ;;  %v2165_v59 = vmul.f32 %v4446_v10, %v5318_v16  ;;  %v4338_v16 = vld [vmem:[%s5799_s9 + $0x10] sm:$0xff]  }
 0x655   :  { %4233 = vmatpush3.bf16.msra.mxu1 %v2430_v27  ;;  %v2153_v28 = vpop.xlane.xlu1 %2152  ;;  %4234 = vmatprep.mubr.msk.bf16.mxu1 %vm4514_vm0, %v4513_v0 }
 0x656   :  { %4447 = vrcp.f32 %v2153_v28  ;;  %4244 = vmatprep.subr.bf16.mxu1 %v4513_v0  ;;  %v2175_v29 = vpack.c.bf16 %v2165_v59, %v2165_v59 }
 0x659   :  { %v2523_v18 = vpop.permute.xlu1 %2522 }
 0x65a   :  { %v2528_v46 = vsel %vm1288_vm2, %v2523_v18, 0 }
 0x65c   :  { %4235 = vmatmul.mubr.msk.bf16.vlgmr.msra.gmra.mxu1 %vm1188_vm4, %v2175_v29 }
 0x65d   :  { %4245 = vmatpush3.bf16.msra.mxu1 %v2528_v46  ;;  %4246 = vmatprep.mubr.msk.bf16.mxu1 %vm4514_vm0, %v4513_v0  ;;  %v4339_v0 = vld [vmem:[%s5799_s9 + $0x8] sm:$0xff]  }
 0x65e   :  { %4266 = vmatprep.subr.bf16.mxu1 %v4337_v14 }
 0x663   :  { %v4448_v51 = vpop.eup %4447 }
 0x664   :  { %v2169_v21 = vmul.f32 %v4448_v51, %v5323_v24  ;;  %v4340_v24 = vld [vmem:[%s5799_s9] sm:$0xff]  }
 0x666   :  { %v2177_v30 = vpack.c.bf16 %v2169_v21, %v2169_v21  ;;  %v3798_v21 = vld [vmem:[%s5800_s10] ss:$0 sm:$0xff] }
 0x668   :  { %4247 = vmatmul.mubr.msk.bf16.vlgmr.msra.gmra.mxu1 %vm1188_vm4, %v2177_v30 }
 0x669   :  { %4267 = vmatpush3.bf16.msra.mxu1 %v4337_v14  ;;  %4274 = vmatprep.mubr.msk.bf16.mxu1 %vm809_vm1, %v1654_v43  ;;  %v4344_v43 = vld [vmem:[%s5799_s9 + $0x20] sm:$0xff]  }
 0x66a   :  { %4268 = vmatprep.subr.bf16.mxu1 %v4338_v16  ;;  %4256 = vmatprep.subr.bf16.mxu0 %v4344_v43 }
 0x66b   :  { %4257 = vmatpush3.bf16.msra.mxu0 %v4344_v43 }
 0x66d   :  { %4269 = vmatpush3.bf16.msra.mxu1 %v4338_v16 }
 0x66e   :  { %4270 = vmatprep.subr.bf16.mxu1 %v4339_v0 }
 0x671   :  { %4271 = vmatpush3.bf16.msra.mxu1 %v4339_v0 }
 0x672   :  { %4272 = vmatprep.subr.bf16.mxu1 %v4340_v24 }
 0x675   :  { %4273 = vmatpush3.bf16.msra.mxu1 %v4340_v24 }
 0x678   :  { %4275 = vmatmul.mubr.msk.bf16.vlgmr.msra.gmra.mxu1 %vm809_vm1, %v1655_v19 }
 0x679   :  { %4278 = vmatprep.mubr.msk.bf16.mxu1 %vm809_vm1, %v1656_v8 }
 0x680   :  { %4279 = vmatmul.mubr.msk.bf16.gmra.mxu1 %vm809_vm1, %v1657_v36 }
 0x6a5   :  { %v2221_v61 = vpop.f32.mrf.mxu0 }
 0x6a7   :  { %v4206_v17 = vpop.f32.mrf.mxu0 }
 0x6a9   :  { %v2224_v19 = vpop.f32.mrf.mxu0 }
 0x6ab   :  { %v4207_v3 = vpop.f32.mrf.mxu0 }
 0x6ad   :  { %v2319_v8 = vpop.f32.mrf.mxu0 }
 0x6af   :  { %v4218_v20 = vpop.f32.mrf.mxu0 }
 0x6b1   :  { %v2322_v42 = vpop.f32.mrf.mxu0 }
 0x6b3   :  { %v4219_v58 = vpop.f32.mrf.mxu0 }
 0x6df   :  { %v2270_v56 = vpop.f32.mrf.mxu1 }
 0x6e0   :  { %v2570_v31 = vpack.c.bf16 %v2270_v56, %v2221_v61 }
 0x6e1   :  { %v4212_v36 = vpop.f32.mrf.mxu1 }
 0x6e2   :  { %4258 = vmatprep.mubr.msk.bf16.mxu0 %vm809_vm1, %v2570_v31 }
 0x6e3   :  { %v2273_v45 = vpop.f32.mrf.mxu1 }
 0x6e5   :  { %v4213_v9 = vpop.f32.mrf.mxu1 }
 0x6eb   :  { %v2417_v57 = vpop.f32.mrf.mxu0 }
 0x6ed   :  { %v4230_v32 = vpop.f32.mrf.mxu0 }
 0x6ef   :  { %v2420_v44 = vpop.f32.mrf.mxu0 }
 0x6f1   :  { %v4231_v4 = vpop.f32.mrf.mxu0 }
 0x6f3   :  { %v2515_v35 = vpop.f32.mrf.mxu0 }
 0x6f5   :  { %v4242_v5 = vpop.f32.mrf.mxu0 }
 0x6f7   :  { %v2518_v23 = vpop.f32.mrf.mxu0 }
 0x6f9   :  { %v4243_v53 = vpop.f32.mrf.mxu0 }
 0x714   :  { %v2368_v25 = vpop.f32.mrf.mxu1 }
 0x715   :  { %v2571_v50 = vpack.c.bf16 %v2368_v25, %v2319_v8  ;;  %v4345_v25 = vld [vmem:[%s5801_s13 + $0x70] ss:$8 sps:$4 sm:$0xff]  }
 0x716   :  { %v4224_v37 = vpop.f32.mrf.mxu1 }
 0x717   :  { %4259 = vmatmul.mubr.msk.bf16.vlgmr.msra.gmra.mxu0 %vm809_vm1, %v2571_v50 }
 0x718   :  { %v2371_v52 = vpop.f32.mrf.mxu1 }
 0x71a   :  { %v4225_v33 = vpop.f32.mrf.mxu1 }
 0x71c   :  { %v2466_v41 = vpop.f32.mrf.mxu1 }
 0x71d   :  { %v2572_v26 = vpack.c.bf16 %v2466_v41, %v2417_v57 }
 0x71e   :  { %v4236_v12 = vpop.f32.mrf.mxu1 }
 0x71f   :  { %4262 = vmatprep.mubr.msk.bf16.mxu0 %vm809_vm1, %v2572_v26 }
 0x720   :  { %v2469_v34 = vpop.f32.mrf.mxu1 }
 0x722   :  { %v4237_v15 = vpop.f32.mrf.mxu1 }
 0x728   :  { %v2564_v13 = vpop.f32.mrf.mxu1 }
 0x729   :  { %v2573_v49 = vpack.c.bf16 %v2564_v13, %v2515_v35 }
 0x72a   :  { %v4248_v11 = vpop.f32.mrf.mxu1 }
 0x72b   :  { %4263 = vmatmul.mubr.msk.bf16.gmra.mxu0 %vm809_vm1, %v2573_v49 }
 0x72c   :  { %v2567_v10 = vpop.f32.mrf.mxu1  ;;  %3062 = vmatprep.mubr.bf16.mxu0 %v4515_v55 }
 0x72e   :  { %v4249_v27 = vpop.f32.mrf.mxu1 }
 0x72f   :  { %v4350_v27 = vld [vmem:[%s5801_s13 + $0x64] ss:$8 sps:$4 sm:$0xff]  }
 0x738   :  { %v4276_v28 = vpop.f32.mrf.mxu1 }
 0x73a   :  { %v2745_v59 = vpop.f32.mrf.mxu1 }
 0x73c   :  { %v4277_v46 = vpop.f32.mrf.mxu1 }
 0x73e   :  { %v2748_v0 = vpop.f32.mrf.mxu1 }
 0x740   :  { %v4280_v8 = vpop.f32.mrf.mxu1 }
 0x742   :  { %v2761_v42 = vpop.f32.mrf.mxu1 }
 0x744   :  { %v4281_v56 = vpop.f32.mrf.mxu1 }
 0x746   :  { %v2764_v57 = vpop.f32.mrf.mxu1 }
 0x7d7   :  { %v4260_v18 = vpop.f32.mrf.mxu0 }
 0x7d8   :  { %v2754_v14 = vadd.f32 %v4276_v28, %v4260_v18  ;;  %v4348_v28 = vld [vmem:[%s5801_s13 + $0x60] ss:$8 sps:$4 sm:$0xff]  }
 0x7d9   :  { %v2644_v29 = vpop.f32.mrf.mxu0 }
 0x7da   :  { %v2746_v51 = vadd.f32 %v2745_v59, %v2644_v29  ;;  %v2785_v22 = vadd.f32 %v3798_v21, %v2754_v14  ;;  %v4351_v14 = vld [vmem:[%s5801_s13 + $0x50] ss:$8 sps:$4 sm:$0xff]  }
 0x7db   :  { %v4261_v30 = vpop.f32.mrf.mxu0 }
 0x7dc   :  { %v2783_v16 = vadd.f32 %v3798_v21, %v2746_v51  ;;  %v2757_v39 = vadd.f32 %v4277_v46, %v4261_v30  ;;  %v2793_v3 = vadd.f32 %v2785_v22, %v4817_v47  ;;  %v4353_v46 = vld [vmem:[%s5801_s13 + $0x54] ss:$8 sps:$4 sm:$0xff]  }
 0x7dd   :  { %v2647_v24 = vpop.f32.mrf.mxu0 }
 0x7de   :  { %v2749_v54 = vadd.f32 %v2748_v0, %v2647_v24  ;;  %v2791_v43 = vadd.f32 %v2783_v16, %v4810_v38  ;;  %v2786_v17 = vadd.f32 %v3798_v21, %v2757_v39  ;;  %v4356_v24 = vld [vmem:[%s5801_s13 + $0x44] ss:$8 sps:$4 sm:$0xff]  }
 0x7e0   :  { %v2784_v61 = vadd.f32 %v3798_v21, %v2749_v54  ;;  %2801 = vadd.xlane.f32.xlu0 %v2791_v43  ;;  %v2794_v20 = vadd.f32 %v2786_v17, %v4819_v48  ;;  %v4354_v54 = vld [vmem:[%s5801_s13 + $0x40] ss:$8 sps:$4 sm:$0xff]  }
 0x7e2   :  { %v2792_v19 = vadd.f32 %v2784_v61, %v4812_v40 }
 0x7e4   :  { %2803 = vadd.xlane.f32.xlu1 %v2792_v19  ;;  %2805 = vadd.xlane.f32.xlu0 %v2793_v3 }
 0x7e8   :  { %2807 = vadd.xlane.f32.xlu0 %v2794_v20 }
 0x7eb   :  { %v4264_v58 = vpop.f32.mrf.mxu0 }
 0x7ec   :  { %v2770_v36 = vadd.f32 %v4280_v8, %v4264_v58  ;;  %v4362_v58 = vld [vmem:[%s5801_s13 + $0x24] ss:$8 sps:$4 sm:$0xff]  }
 0x7ed   :  { %v2660_v31 = vpop.f32.mrf.mxu0 }
 0x7ee   :  { %v2762_v45 = vadd.f32 %v2761_v42, %v2660_v31  ;;  %v2789_v44 = vadd.f32 %v3798_v21, %v2770_v36  ;;  %v4365_v31 = vld [vmem:[%s5801_s13 + $0x14] ss:$8 sps:$4 sm:$0xff]   ;;  %v4363_v36 = vld [vmem:[%s5801_s13 + $0x10] ss:$8 sps:$4 sm:$0xff]  }
 0x7ef   :  { %v4265_v38 = vpop.f32.mrf.mxu0 }
 0x7f0   :  { %v2787_v9 = vadd.f32 %v3798_v21, %v2762_v45  ;;  %v2773_v40 = vadd.f32 %v4281_v56, %v4265_v38  ;;  %v2797_v23 = vadd.f32 %v2789_v44, %v4833_v2  ;;  %v4360_v56 = vld [vmem:[%s5801_s13 + $0x20] ss:$8 sps:$4 sm:$0xff]   ;;  %v4368_v45 = vld [vmem:[%s5801_s13 + $0x4] ss:$8 sps:$4 sm:$0xff]  }
 0x7f1   :  { %v2663_v32 = vpop.f32.mrf.mxu0  ;;  %v4366_v38 = vld [vmem:[%s5801_s13] ss:$8 sps:$4 sm:$0xff]  }
 0x7f2   :  { %v2765_v4 = vadd.f32 %v2764_v57, %v2663_v32  ;;  %v2795_v47 = vadd.f32 %v2787_v9, %v4827_v62  ;;  %v2790_v5 = vadd.f32 %v3798_v21, %v2773_v40  ;;  %v4347_v62 = vld [vmem:[%s5801_s13 + $0x74] ss:$8 sps:$4 sm:$0xff]  }
 0x7f3   :  { %3030 = vmatprep.subr.bf16.mxu0 %v4347_v62 }
 0x7f4   :  { %v2788_v35 = vadd.f32 %v3798_v21, %v2765_v4  ;;  %2809 = vadd.xlane.f32.xlu0 %v2795_v47  ;;  %v2798_v53 = vadd.f32 %v2790_v5, %v4829_v63  ;;  %3031 = vmatpush1.bf16.msra.mxu0 %v4345_v25 }
 0x7f5   :  { %3032 = vmatprep.subr.bf16.mxu0 %v4350_v27 }
 0x7f6   :  { %v2796_v48 = vadd.f32 %v2788_v35, %v4831_v1 }
 0x7f8   :  { %2811 = vadd.xlane.f32.xlu1 %v2796_v48  ;;  %2813 = vadd.xlane.f32.xlu0 %v2797_v23 }
 0x7f9   :  { %3033 = vmatpush1.bf16.msra.mxu0 %v4348_v28 }
 0x7fa   :  { %3034 = vmatprep.subr.bf16.mxu0 %v4353_v46 }
 0x7fc   :  { %2815 = vadd.xlane.f32.xlu1 %v2798_v53 }
 0x7fd   :  { %3035 = vmatpush1.bf16.msra.mxu0 %v4351_v14 }
 0x7fe   :  { %3036 = vmatprep.subr.bf16.mxu0 %v4356_v24 }
 0x801   :  { %3037 = vmatpush1.bf16.msra.mxu0 %v4354_v54 }
 0x869   :  { %v2802_v50 = vpop.xlane.xlu0 %2801 }
 0x86a   :  { %v2818_v37 = vmul.f32 0.0078125, %v2802_v50  ;;  %v3799_v50 = vld [vmem:[%s5802_s11] ss:$0 sm:$0xff] }
 0x86c   :  { %v5429_v1 = vsub.f32 %v2791_v43, %v2818_v37 }
 0x86d   :  { %v2804_v2 = vpop.xlane.xlu1 %2803  ;;  %v2806_v52 = vpop.xlane.xlu0 %2805 }
 0x86e   :  { %v2819_v33 = vmul.f32 0.0078125, %v2804_v2  ;;  %v2820_v41 = vmul.f32 0.0078125, %v2806_v52  ;;  %v2834_v63 = vmul.f32 %v5429_v1, %v5429_v1 }
 0x870   :  { %v5433_v26 = vsub.f32 %v2792_v19, %v2819_v33  ;;  %v5435_v12 = vsub.f32 %v2793_v3, %v2820_v41  ;;  %2842 = vadd.xlane.f32.xlu0 %v2834_v63  ;;  %v4359_v3 = vld [vmem:[%s5801_s13 + $0x34] ss:$8 sps:$4 sm:$0xff]  }
 0x871   :  { %v2808_v34 = vpop.xlane.xlu0 %2807  ;;  %3038 = vmatprep.subr.bf16.mxu0 %v4359_v3 }
 0x872   :  { %v2821_v15 = vmul.f32 0.0078125, %v2808_v34  ;;  %v2835_v13 = vmul.f32 %v5433_v26, %v5433_v26  ;;  %v2836_v49 = vmul.f32 %v5435_v12, %v5435_v12 }
 0x874   :  { %v5441_v11 = vsub.f32 %v2794_v20, %v2821_v15  ;;  %2844 = vadd.xlane.f32.xlu1 %v2835_v13  ;;  %2846 = vadd.xlane.f32.xlu0 %v2836_v49  ;;  %v4357_v20 = vld [vmem:[%s5801_s13 + $0x30] ss:$8 sps:$4 sm:$0xff]   ;;  %v3800_v15 = vld [vmem:[%s5803_s12] ss:$0 sm:$0xff] }
 0x875   :  { %3039 = vmatpush1.bf16.msra.mxu0 %v4357_v20 }
 0x876   :  { %v2837_v10 = vmul.f32 %v5441_v11, %v5441_v11  ;;  %3040 = vmatprep.subr.bf16.mxu0 %v4362_v58 }
 0x878   :  { %2848 = vadd.xlane.f32.xlu1 %v2837_v10 }
 0x879   :  { %3041 = vmatpush1.bf16.msra.mxu0 %v4360_v56 }
 0x87a   :  { %3042 = vmatprep.subr.bf16.mxu0 %v4365_v31 }
 0x87d   :  { %v2810_v59 = vpop.xlane.xlu0 %2809  ;;  %3043 = vmatpush1.bf16.msra.mxu0 %v4363_v36 }
 0x87e   :  { %v2822_v18 = vmul.f32 0.0078125, %v2810_v59  ;;  %3044 = vmatprep.subr.bf16.mxu0 %v4368_v45 }
 0x880   :  { %v5454_v29 = vsub.f32 %v2795_v47, %v2822_v18 }
 0x881   :  { %v2812_v51 = vpop.xlane.xlu1 %2811  ;;  %v2814_v21 = vpop.xlane.xlu0 %2813  ;;  %3045 = vmatpush1.bf16.msra.mxu0 %v4366_v38 }
 0x882   :  { %v2823_v30 = vmul.f32 0.0078125, %v2812_v51  ;;  %v2824_v16 = vmul.f32 0.0078125, %v2814_v21  ;;  %v2838_v0 = vmul.f32 %v5454_v29, %v5454_v29 }
 0x884   :  { %v5464_v22 = vsub.f32 %v2796_v48, %v2823_v30  ;;  %v5466_v39 = vsub.f32 %v2797_v23, %v2824_v16  ;;  %2850 = vadd.xlane.f32.xlu0 %v2838_v0 }
 0x885   :  { %v2816_v43 = vpop.xlane.xlu1 %2815 }
 0x886   :  { %v2825_v61 = vmul.f32 0.0078125, %v2816_v43  ;;  %v2839_v17 = vmul.f32 %v5464_v22, %v5464_v22  ;;  %v2840_v19 = vmul.f32 %v5466_v39, %v5466_v39 }
 0x888   :  { %v5478_v8 = vsub.f32 %v2798_v53, %v2825_v61  ;;  %2852 = vadd.xlane.f32.xlu1 %v2839_v17  ;;  %2854 = vadd.xlane.f32.xlu0 %v2840_v19 }
 0x88a   :  { %v2841_v42 = vmul.f32 %v5478_v8, %v5478_v8 }
 0x88c   :  { %2856 = vadd.xlane.f32.xlu1 %v2841_v42 }
 0x8f9   :  { %v2843_v9 = vpop.xlane.xlu0 %2842 }
 0x8fa   :  { %v2858_v57 = vmul.f32 0.0078125, %v2843_v9 }
 0x8fc   :  { %v2866_v32 = vadd.f32 1e-05, %v2858_v57 }
 0x8fd   :  { %v2845_v44 = vpop.xlane.xlu1 %2844  ;;  %v2847_v40 = vpop.xlane.xlu0 %2846 }
 0x8fe   :  { %4449 = vrsqrt.f32 %v2866_v32  ;;  %v2859_v4 = vmul.f32 0.0078125, %v2845_v44  ;;  %v2860_v47 = vmul.f32 0.0078125, %v2847_v40  ;;  %v4372_v40 = vld [vmem:[%s5804_s15 + $0x30] sm:$0xff]  }
 0x900   :  { %v2867_v35 = vadd.f32 1e-05, %v2859_v4  ;;  %v2868_v5 = vadd.f32 1e-05, %v2860_v47  ;;  %v4373_v4 = vld [vmem:[%s5804_s15 + $0x68] sm:$0xff]  }
 0x901   :  { %v2849_v48 = vpop.xlane.xlu1 %2848  ;;  %v4374_v47 = vld [vmem:[%s5804_s15 + $0x28] sm:$0xff]  }
 0x902   :  { %4451 = vrsqrt.f32 %v2867_v35  ;;  %v2861_v23 = vmul.f32 0.0078125, %v2849_v48  ;;  %v4375_v35 = vld [vmem:[%s5804_s15 + $0x60] sm:$0xff]   ;;  %v4377_v48 = vld [vmem:[%s5804_s15 + $0x58] sm:$0xff]  }
 0x903   :  { %4453 = vrsqrt.f32 %v2868_v5  ;;  %v4376_v5 = vld [vmem:[%s5804_s15 + $0x20] sm:$0xff]  }
 0x904   :  { %v2869_v53 = vadd.f32 1e-05, %v2861_v23  ;;  %v4378_v23 = vld [vmem:[%s5804_s15 + $0x18] sm:$0xff]  }
 0x906   :  { %4455 = vrsqrt.f32 %v2869_v53  ;;  %v4379_v53 = vld [vmem:[%s5804_s15 + $0x50] sm:$0xff]  }
 0x90b   :  { %v4450_v25 = vpop.eup %4449 }
 0x90c   :  { %v2882_v62 = vmul.f32 %v4450_v25, %v5429_v1  ;;  %v4380_v25 = vld [vmem:[%s5804_s15 + $0x10] sm:$0xff]  }
 0x90d   :  { %v2851_v37 = vpop.xlane.xlu0 %2850 }
 0x90e   :  { %v2862_v2 = vmul.f32 0.0078125, %v2851_v37  ;;  %v2896_v33 = vmul.f32 %v3799_v50, %v2882_v62  ;;  %v4381_v62 = vld [vmem:[%s5804_s15 + $0x48] sm:$0xff]   ;;  %v4383_v37 = vld [vmem:[%s5804_s15 + $0x40] sm:$0xff]  }
 0x90f   :  { %v4452_v52 = vpop.eup %4451 }
 0x910   :  { %v4454_v41 = vpop.eup %4453  ;;  %v2883_v63 = vmul.f32 %v4452_v52, %v5433_v26  ;;  %v2870_v34 = vadd.f32 1e-05, %v2862_v2  ;;  %v5511_v59 = vadd.f32 %v3800_v15, %v2896_v33  ;;  %v4384_v2 = vld [vmem:[%s5804_s15] sm:$0xff]  }
 0x911   :  { %v2853_v13 = vpop.xlane.xlu1 %2852  ;;  %v2855_v49 = vpop.xlane.xlu0 %2854  ;;  %v2884_v18 = vmul.f32 %v4454_v41, %v5435_v12  ;;  %v2938_v52 = vld [vmem:[%s5805_s14] sm:$0x3]  ;;  %v5831_v41 = vsub.s32 1, %v4791_v60 }
 0x912   :  { %4457 = vrsqrt.f32 %v2870_v34  ;;  %v2863_v1 = vmul.f32 0.0078125, %v2853_v13  ;;  %v2864_v10 = vmul.f32 0.0078125, %v2855_v49  ;;  %v2897_v27 = vmul.f32 %v3799_v50, %v2883_v63 }
 0x913   :  { %v4456_v28 = vpop.eup %4455  ;;  %v2898_v54 = vmul.f32 %v3799_v50, %v2884_v18  ;;  %v5596_v33 = vrot.slane %v2938_v52, %v4798_v6  ;;  %v5600_v63 = vrot.slane %v2938_v52, %v5831_v41 }
 0x914   :  { %v2871_v46 = vadd.f32 1e-05, %v2863_v1  ;;  %v2872_v14 = vadd.f32 1e-05, %v2864_v10  ;;  %v5514_v51 = vadd.f32 %v3800_v15, %v2897_v27  ;;  %v2885_v26 = vmul.f32 %v4456_v28, %v5441_v11 }
 0x915   :  { %v2857_v21 = vpop.xlane.xlu1 %2856  ;;  %v5522_v43 = vadd.f32 %v3800_v15, %v2898_v54 }
 0x916   :  { %4459 = vrsqrt.f32 %v2871_v46  ;;  %v2865_v30 = vmul.f32 0.0078125, %v2857_v21  ;;  %v2918_v16 = vpack.c.bf16 %v5514_v51, %v5511_v59  ;;  %v2899_v0 = vmul.f32 %v3799_v50, %v2885_v26 }
 0x917   :  { %4461 = vrsqrt.f32 %v2872_v14 }
 0x918   :  { %v2873_v24 = vadd.f32 1e-05, %v2865_v30  ;;  %3063 = vmatmul.mubr.bf16.vlgmr.msra.gmra.mxu0 %v2918_v16  ;;  %v5520_v12 = vadd.f32 %v3800_v15, %v2899_v0 }
 0x919   :  { %3072 = vmatprep.mubr.bf16.mxu0 %v4515_v55 }
 0x91a   :  { %4463 = vrsqrt.f32 %v2873_v24  ;;  %v2919_v11 = vpack.c.bf16 %v5520_v12, %v5522_v43 }
 0x91f   :  { %v4458_v61 = vpop.eup %4457 }
 0x920   :  { %3073 = vmatmul.mubr.bf16.gmra.mxu0 %v2919_v11  ;;  %v2886_v17 = vmul.f32 %v4458_v61, %v5454_v29 }
 0x921   :  { %3082 = vmatprep.mubr.bf16.mxu0 %v4515_v55 }
 0x922   :  { %v2900_v20 = vmul.f32 %v3799_v50, %v2886_v17 }
 0x923   :  { %v4460_v19 = vpop.eup %4459 }
 0x924   :  { %v2887_v3 = vmul.f32 %v4460_v19, %v5464_v22  ;;  %v4462_v42 = vpop.eup %4461  ;;  %v5529_v31 = vadd.f32 %v3800_v15, %v2900_v20 }
 0x925   :  { %v2888_v45 = vmul.f32 %v4462_v42, %v5466_v39  ;;  %v4369_v39 = vld [vmem:[%s5804_s15 + $0x78] sm:$0xff]  }
 0x926   :  { %v2901_v58 = vmul.f32 %v3799_v50, %v2887_v3  ;;  %3950 = vmatprep.subr.bf16.mxu1 %v4369_v39 }
 0x927   :  { %v4464_v56 = vpop.eup %4463  ;;  %v2902_v57 = vmul.f32 %v3799_v50, %v2888_v45 }
 0x928   :  { %v5531_v36 = vadd.f32 %v3800_v15, %v2901_v58  ;;  %v2889_v38 = vmul.f32 %v4464_v56, %v5478_v8  ;;  %v4370_v8 = vld [vmem:[%s5804_s15 + $0x38] sm:$0xff]  }
 0x929   :  { %v5540_v32 = vadd.f32 %v3800_v15, %v2902_v57  ;;  %3951 = vmatpush3.bf16.msra.mxu1 %v4370_v8 }
 0x92a   :  { %v2920_v29 = vpack.c.bf16 %v5531_v36, %v5529_v31  ;;  %v2903_v9 = vmul.f32 %v3799_v50, %v2889_v38  ;;  %v4382_v50 = vld [vmem:[%s5804_s15 + $0x8] sm:$0xff]  }
 0x92c   :  { %3083 = vmatmul.mubr.bf16.gmra.mxu0 %v2920_v29  ;;  %v5538_v22 = vadd.f32 %v3800_v15, %v2903_v9 }
 0x92d   :  { %3092 = vmatprep.mubr.bf16.mxu0 %v4515_v55  ;;  %v4371_v55 = vld [vmem:[%s5804_s15 + $0x70] sm:$0xff]  }
 0x92e   :  { %v2921_v44 = vpack.c.bf16 %v5538_v22, %v5540_v32  ;;  %3952 = vmatprep.subr.bf16.mxu1 %v4371_v55 }
 0x92f   :  { %3953 = vmatpush3.bf16.msra.mxu1 %v4372_v40 }
 0x930   :  { %3954 = vmatprep.subr.bf16.mxu1 %v4373_v4 }
 0x933   :  { %3955 = vmatpush3.bf16.msra.mxu1 %v4374_v47 }
 0x934   :  { %3093 = vmatmul.mubr.bf16.gmra.mxu0 %v2921_v44  ;;  %3956 = vmatprep.subr.bf16.mxu1 %v4375_v35 }
 0x937   :  { %3957 = vmatpush3.bf16.msra.mxu1 %v4376_v5 }
 0x938   :  { %3958 = vmatprep.subr.bf16.mxu1 %v4377_v48 }
 0x93b   :  { %3959 = vmatpush3.bf16.msra.mxu1 %v4378_v23 }
 0x93c   :  { %3960 = vmatprep.subr.bf16.mxu1 %v4379_v53 }
 0x93f   :  { %3961 = vmatpush3.bf16.msra.mxu1 %v4380_v25 }
 0x940   :  { %3962 = vmatprep.subr.bf16.mxu1 %v4381_v62 }
 0x943   :  { %3963 = vmatpush3.bf16.msra.mxu1 %v4382_v50 }
 0x944   :  { %3964 = vmatprep.subr.bf16.mxu1 %v4383_v37 }
 0x947   :  { %3965 = vmatpush3.bf16.msra.mxu1 %v4384_v2 }
 0x9d8   :  { %v3064_v34 = vpop.f32.mrf.mxu0 }
 0x9d9   :  { %v5603_v15 = vadd.f32 %v3064_v34, %v5596_v33 }
 0x9da   :  { %v3066_v13 = vpop.f32.mrf.mxu0 }
 0x9db   :  { %v3119_v49 = vmul.f32 0.044715, %v5603_v15  ;;  %v5607_v1 = vadd.f32 %v3066_v13, %v5600_v63 }
 0x9dc   :  { %v3068_v10 = vpop.f32.mrf.mxu0 }
 0x9dd   :  { %v3135_v27 = vmul.f32 %v3119_v49, %v5603_v15  ;;  %v3120_v6 = vmul.f32 0.044715, %v5607_v1  ;;  %v5612_v28 = vadd.f32 %v3068_v10, %v5596_v33 }
 0x9de   :  { %v3070_v18 = vpop.f32.mrf.mxu0 }
 0x9df   :  { %v3151_v46 = vmul.f32 %v3135_v27, %v5603_v15  ;;  %v3136_v14 = vmul.f32 %v3120_v6, %v5607_v1  ;;  %v3121_v26 = vmul.f32 0.044715, %v5612_v28  ;;  %v5618_v21 = vadd.f32 %v3070_v18, %v5600_v63 }
 0x9e0   :  { %v3074_v30 = vpop.f32.mrf.mxu0 }
 0x9e1   :  { %v3167_v16 = vadd.f32 %v3151_v46, %v5603_v15  ;;  %v3152_v0 = vmul.f32 %v3136_v14, %v5607_v1  ;;  %v3137_v24 = vmul.f32 %v3121_v26, %v5612_v28  ;;  %v5624_v54 = vadd.f32 %v3074_v30, %v5596_v33 }
 0x9e2   :  { %v3122_v11 = vmul.f32 0.044715, %v5618_v21  ;;  %v3076_v61 = vpop.f32.mrf.mxu0 }
 0x9e3   :  { %v3183_v17 = vmul.f32 0.7978846, %v3167_v16  ;;  %v3153_v19 = vmul.f32 %v3137_v24, %v5612_v28  ;;  %v3123_v3 = vmul.f32 0.044715, %v5624_v54  ;;  %v5630_v20 = vadd.f32 %v3076_v61, %v5600_v63 }
 0x9e4   :  { %v3138_v42 = vmul.f32 %v3122_v11, %v5618_v21  ;;  %v3078_v58 = vpop.f32.mrf.mxu0  ;;  %v3168_v56 = vadd.f32 %v3152_v0, %v5607_v1 }
 0x9e5   :  { %v3169_v45 = vadd.f32 %v3153_v19, %v5612_v28  ;;  %v3139_v38 = vmul.f32 %v3123_v3, %v5624_v54  ;;  %v3124_v29 = vmul.f32 0.044715, %v5630_v20  ;;  %4465 = vtanh.f32 %v3183_v17 }
 0x9e6   :  { %v3154_v9 = vmul.f32 %v3138_v42, %v5618_v21  ;;  %v3079_v57 = vadd.f32 %v3078_v58, %v5596_v33  ;;  %v3080_v44 = vpop.f32.mrf.mxu0  ;;  %v3184_v39 = vmul.f32 0.7978846, %v3168_v56  ;;  %v3103_v3 = vmul.f32 0.5, %v5603_v15 }
 0x9e7   :  { %v3185_v8 = vmul.f32 0.7978846, %v3169_v45  ;;  %v3155_v55 = vmul.f32 %v3139_v38, %v5624_v54  ;;  %v3140_v40 = vmul.f32 %v3124_v29, %v5630_v20  ;;  %v5642_v4 = vadd.f32 %v3080_v44, %v5600_v63 }
 0x9e8   :  { %v3125_v47 = vmul.f32 0.044715, %v3079_v57  ;;  %v3170_v35 = vadd.f32 %v3154_v9, %v5618_v21  ;;  %4467 = vtanh.f32 %v3184_v39  ;;  %v3104_v56 = vmul.f32 0.5, %v5607_v1 }
 0x9e9   :  { %4469 = vtanh.f32 %v3185_v8  ;;  %v3156_v5 = vmul.f32 %v3140_v40, %v5630_v20  ;;  %v3126_v48 = vmul.f32 0.044715, %v5642_v4  ;;  %v3171_v25 = vadd.f32 %v3155_v55, %v5624_v54 }
 0x9ea   :  { %v3141_v23 = vmul.f32 %v3125_v47, %v3079_v57  ;;  %v3186_v53 = vmul.f32 0.7978846, %v3170_v35  ;;  %v3105_v8 = vmul.f32 0.5, %v5612_v28  ;;  %v3106_v55 = vmul.f32 0.5, %v5618_v21 }
 0x9eb   :  { %v3142_v62 = vmul.f32 %v3126_v48, %v5642_v4  ;;  %v3172_v50 = vadd.f32 %v3156_v5, %v5630_v20  ;;  %v3187_v52 = vmul.f32 0.7978846, %v3171_v25  ;;  %v5681_v40 = vmul.f32 0.5, %v5624_v54 }
 0x9ec   :  { %v3157_v37 = vmul.f32 %v3141_v23, %v3079_v57  ;;  %v3084_v2 = vpop.f32.mrf.mxu0  ;;  %4471 = vtanh.f32 %v3186_v53  ;;  %v3109_v1 = vmul.f32 0.5, %v3079_v57 }
 0x9ed   :  { %v3158_v41 = vmul.f32 %v3142_v62, %v5642_v4  ;;  %v5652_v34 = vadd.f32 %v3084_v2, %v5596_v33  ;;  %v3188_v13 = vmul.f32 0.7978846, %v3172_v50  ;;  %4473 = vtanh.f32 %v3187_v52 }
 0x9ee   :  { %v3086_v49 = vpop.f32.mrf.mxu0  ;;  %v3173_v10 = vadd.f32 %v3157_v37, %v3079_v57 }
 0x9ef   :  { %v3127_v27 = vmul.f32 0.044715, %v5652_v34  ;;  %v5656_v6 = vadd.f32 %v3086_v49, %v5600_v63  ;;  %v3174_v18 = vadd.f32 %v3158_v41, %v5642_v4  ;;  %4475 = vtanh.f32 %v3188_v13 }
 0x9f0   :  { %v3088_v46 = vpop.f32.mrf.mxu0  ;;  %v3189_v14 = vmul.f32 0.7978846, %v3173_v10 }
 0x9f1   :  { %v3143_v26 = vmul.f32 %v3127_v27, %v5652_v34  ;;  %v3128_v30 = vmul.f32 0.044715, %v5656_v6  ;;  %v5662_v16 = vadd.f32 %v3088_v46, %v5596_v33  ;;  %v3190_v0 = vmul.f32 0.7978846, %v3174_v18 }
 0x9f2   :  { %v3090_v24 = vpop.f32.mrf.mxu0  ;;  %4477 = vtanh.f32 %v3189_v14  ;;  %v4466_v11 = vpop.eup %4465 }
 0x9f3   :  { %v3144_v61 = vmul.f32 %v3128_v30, %v5656_v6  ;;  %v3129_v17 = vmul.f32 0.044715, %v5662_v16  ;;  %v5667_v19 = vadd.f32 %v3090_v24, %v5600_v63  ;;  %v3159_v42 = vmul.f32 %v3143_v26, %v5652_v34 }
 0x9f4   :  { %v3094_v58 = vpop.f32.mrf.mxu0  ;;  %4479 = vtanh.f32 %v3190_v0  ;;  %v3215_v25 = vadd.f32 1.0, %v4466_v11 }
 0x9f5   :  { %v4468_v45 = vpop.eup %4467  ;;  %v3160_v38 = vmul.f32 %v3144_v61, %v5656_v6  ;;  %v3145_v29 = vmul.f32 %v3129_v17, %v5662_v16  ;;  %v3130_v9 = vmul.f32 0.044715, %v5667_v19  ;;  %v5676_v44 = vadd.f32 %v3094_v58, %v5596_v33 }
 0x9f6   :  { %v4470_v39 = vpop.eup %4469  ;;  %v3096_v15 = vpop.f32.mrf.mxu0  ;;  %v3216_v53 = vadd.f32 1.0, %v4468_v45  ;;  %v3175_v37 = vadd.f32 %v3159_v42, %v5652_v34  ;;  %v3231_v30 = vmul.f32 %v3215_v25, %v3103_v3 }
 0x9f7   :  { %v3161_v47 = vmul.f32 %v3145_v29, %v5662_v16  ;;  %v3146_v35 = vmul.f32 %v3130_v9, %v5667_v19  ;;  %v3131_v5 = vmul.f32 0.044715, %v5676_v44  ;;  %v5687_v48 = vadd.f32 %v3096_v15, %v5600_v63 }
 0x9f8   :  { %v3098_v23 = vpop.f32.mrf.mxu0  ;;  %v3217_v28 = vadd.f32 1.0, %v4470_v39  ;;  %v3176_v62 = vadd.f32 %v3160_v38, %v5656_v6  ;;  %v3191_v42 = vmul.f32 0.7978846, %v3175_v37 }
 0x9f9   :  { %v4472_v21 = vpop.eup %4471  ;;  %v3162_v54 = vmul.f32 %v3146_v35, %v5667_v19  ;;  %v3132_v57 = vmul.f32 0.044715, %v5687_v48  ;;  %v5693_v50 = vadd.f32 %v3098_v23, %v5596_v33  ;;  %v3147_v2 = vmul.f32 %v3131_v5, %v5676_v44 }
 0x9fa   :  { %v3100_v52 = vpop.f32.mrf.mxu0  ;;  %v3218_v41 = vadd.f32 1.0, %v4472_v21  ;;  %v3233_v13 = vmul.f32 %v3217_v28, %v3105_v8  ;;  %v3192_v49 = vmul.f32 0.7978846, %v3176_v62  ;;  %v3177_v46 = vadd.f32 %v3161_v47, %v5662_v16  ;;  %v4474_v14 = vpop.eup %4473 }
 0x9fb   :  { %v3148_v10 = vmul.f32 %v3132_v57, %v5687_v48  ;;  %v3133_v27 = vmul.f32 0.044715, %v5693_v50  ;;  %v5700_v18 = vadd.f32 %v3100_v52, %v5600_v63  ;;  %v3232_v33 = vmul.f32 %v3216_v53, %v3104_v56 }
 0x9fc   :  { %v3234_v26 = vmul.f32 %v3218_v41, %v3106_v55  ;;  %v3178_v0 = vadd.f32 %v3162_v54, %v5667_v19  ;;  %v4476_v24 = vpop.eup %4475  ;;  %v3163_v58 = vmul.f32 %v3147_v2, %v5676_v44  ;;  %4481 = vtanh.f32 %v3192_v49 }
 0x9fd   :  { %v3164_v11 = vmul.f32 %v3148_v10, %v5687_v48  ;;  %v3149_v61 = vmul.f32 %v3133_v27, %v5693_v50  ;;  %v3134_v17 = vmul.f32 0.044715, %v5700_v18  ;;  %v3247_v29 = vpack.c.bf16 %v3233_v13, %v3231_v30 }
 0x9fe   :  { %v3248_v63 = vpack.c.bf16 %v3234_v26, %v3232_v33  ;;  %v3194_v45 = vmul.f32 0.7978846, %v3178_v0  ;;  %v3193_v9 = vmul.f32 0.7978846, %v3177_v46  ;;  %v3220_v39 = vadd.f32 1.0, %v4476_v24 }
 0x9ff   :  { %v4478_v38 = vpop.eup %4477  ;;  %v3165_v56 = vmul.f32 %v3149_v61, %v5693_v50  ;;  %v3150_v3 = vmul.f32 %v3134_v17, %v5700_v18  ;;  %v3219_v8 = vadd.f32 1.0, %v4474_v14  ;;  %v3108_v35 = vmul.f32 0.5, %v5630_v20 }
 0xa00   :  { %3422 = vmatprep.mubr.bf16.mxu1 %v3248_v63  ;;  %v3221_v15 = vadd.f32 1.0, %v4478_v38  ;;  %4483 = vtanh.f32 %v3194_v45  ;;  %v3180_v5 = vadd.f32 %v3164_v11, %v5687_v48  ;;  %v3110_v23 = vmul.f32 0.5, %v5642_v4 }
 0xa01   :  { %v4480_v55 = vpop.eup %4479  ;;  %v3166_v47 = vmul.f32 %v3150_v3, %v5700_v18  ;;  %3423 = vmatmul.mubr.bf16.vlgmr.msra.gmra.mxu1 %v3247_v29  ;;  %4485 = vtanh.f32 %v3191_v42  ;;  %v3179_v21 = vadd.f32 %v3163_v58, %v5676_v44  ;;  %v3181_v54 = vadd.f32 %v3165_v56, %v5693_v50 }
 0xa02   :  { %v3222_v53 = vadd.f32 1.0, %v4480_v55  ;;  %v3237_v25 = vmul.f32 %v3221_v15, %v3109_v1  ;;  %4487 = vtanh.f32 %v3193_v9  ;;  %v3196_v62 = vmul.f32 0.7978846, %v3180_v5 }
 0xa03   :  { %v3182_v28 = vadd.f32 %v3166_v47, %v5700_v18  ;;  %v3236_v57 = vmul.f32 %v3220_v39, %v3108_v35  ;;  %v3235_v2 = vmul.f32 %v3219_v8, %v5681_v40  ;;  %v3195_v52 = vmul.f32 0.7978846, %v3179_v21 }
 0xa04   :  { %v3238_v37 = vmul.f32 %v3222_v53, %v3110_v23  ;;  %4489 = vtanh.f32 %v3196_v62  ;;  %v3197_v41 = vmul.f32 0.7978846, %v3181_v54  ;;  %v3112_v46 = vmul.f32 0.5, %v5656_v6 }
 0xa05   :  { %v3198_v20 = vmul.f32 0.7978846, %v3182_v28  ;;  %v3249_v4 = vpack.c.bf16 %v3237_v25, %v3235_v2  ;;  %v3114_v14 = vmul.f32 0.5, %v5667_v19  ;;  %v3111_v26 = vmul.f32 0.5, %v5652_v34 }
 0xa06   :  { %v3250_v13 = vpack.c.bf16 %v3238_v37, %v3236_v57  ;;  %v3113_v11 = vmul.f32 0.5, %v5662_v16  ;;  %v3116_v19 = vmul.f32 0.5, %v5687_v48  ;;  %v3118_v3 = vmul.f32 0.5, %v5700_v18  ;;  %v3817_v18 = vld [vmem:[%s5806_s16] ss:$0 sm:$0xff] }
 0xa07   :  { %4491 = vtanh.f32 %v3198_v20  ;;  %v3117_v8 = vmul.f32 0.5, %v5693_v50  ;;  %v3115_v55 = vmul.f32 0.5, %v5676_v44 }
 0xa08   :  { %3430 = vmatprep.mubr.bf16.mxu1 %v3250_v13  ;;  %4493 = vtanh.f32 %v3195_v52 }
 0xa09   :  { %3431 = vmatmul.mubr.bf16.gmra.mxu1 %v3249_v4  ;;  %4495 = vtanh.f32 %v3197_v41  ;;  %v4482_v1 = vpop.eup %4481 }
 0xa0a   :  { %v3224_v49 = vadd.f32 1.0, %v4482_v1 }
 0xa0c   :  { %v3240_v0 = vmul.f32 %v3224_v49, %v3112_v46 }
 0xa0d   :  { %v4484_v10 = vpop.eup %4483 }
 0xa0e   :  { %v4486_v27 = vpop.eup %4485  ;;  %v3226_v40 = vadd.f32 1.0, %v4484_v10 }
 0xa0f   :  { %v4488_v33 = vpop.eup %4487  ;;  %v3223_v30 = vadd.f32 1.0, %v4486_v27 }
 0xa10   :  { %v3242_v24 = vmul.f32 %v3226_v40, %v3114_v14  ;;  %v3225_v61 = vadd.f32 1.0, %v4488_v33 }
 0xa11   :  { %v4490_v17 = vpop.eup %4489  ;;  %v3239_v58 = vmul.f32 %v3223_v30, %v3111_v26 }
 0xa12   :  { %v3252_v42 = vpack.c.bf16 %v3242_v24, %v3240_v0  ;;  %v3241_v63 = vmul.f32 %v3225_v61, %v3113_v11  ;;  %v3228_v45 = vadd.f32 1.0, %v4490_v17 }
 0xa14   :  { %v4492_v38 = vpop.eup %4491  ;;  %3438 = vmatprep.mubr.bf16.mxu1 %v3252_v42  ;;  %v3251_v6 = vpack.c.bf16 %v3241_v63, %v3239_v58  ;;  %v3244_v39 = vmul.f32 %v3228_v45, %v3116_v19 }
 0xa15   :  { %v4494_v56 = vpop.eup %4493  ;;  %v3230_v34 = vadd.f32 1.0, %v4492_v38 }
 0xa16   :  { %v4496_v29 = vpop.eup %4495  ;;  %3439 = vmatmul.mubr.bf16.gmra.mxu1 %v3251_v6  ;;  %v3227_v9 = vadd.f32 1.0, %v4494_v56 }
 0xa17   :  { %v3246_v16 = vmul.f32 %v3230_v34, %v3118_v3  ;;  %v3229_v15 = vadd.f32 1.0, %v4496_v29 }
 0xa18   :  { %v3243_v5 = vmul.f32 %v3227_v9, %v3115_v55 }
 0xa19   :  { %v3254_v47 = vpack.c.bf16 %v3246_v16, %v3244_v39  ;;  %v3245_v35 = vmul.f32 %v3229_v15, %v3117_v8 }
 0xa1b   :  { %3446 = vmatprep.mubr.bf16.mxu1 %v3254_v47  ;;  %v3253_v23 = vpack.c.bf16 %v3245_v35, %v3243_v5 }
 0xa1e   :  { %3447 = vmatmul.mubr.bf16.gmra.mxu1 %v3253_v23 }
 0xac1   :  { %v3966_v48 = vpop.f32.mrf.mxu1 }
 0xac3   :  { %v3967_v53 = vpop.f32.mrf.mxu1 }
 0xac4   :  { %v3968_v25 = vadd.f32 %v3967_v53, %v3966_v48 }
 0xac5   :  { %v3969_v28 = vpop.f32.mrf.mxu1 }
 0xac6   :  { %v3425_v62 = vadd.f32 %v3968_v25, %v3817_v18 }
 0xac7   :  { %v3970_v21 = vpop.f32.mrf.mxu1 }
 0xac8   :  { %v3971_v50 = vadd.f32 %v3970_v21, %v3969_v28  ;;  %v3455_v54 = vadd.f32 %v3425_v62, %v5511_v59 }
 0xac9   :  { %v3972_v44 = vpop.f32.mrf.mxu1 }
 0xaca   :  { %v3428_v57 = vadd.f32 %v3971_v50, %v3817_v18  ;;  %3465 = vadd.xlane.f32.xlu0 %v3455_v54 }
 0xacb   :  { %v3973_v37 = vpop.f32.mrf.mxu1 }
 0xacc   :  { %v3974_v2 = vadd.f32 %v3973_v37, %v3972_v44  ;;  %v3456_v20 = vadd.f32 %v3428_v57, %v5514_v51 }
 0xacd   :  { %v3975_v52 = vpop.f32.mrf.mxu1 }
 0xace   :  { %v3433_v41 = vadd.f32 %v3974_v2, %v3817_v18  ;;  %3467 = vadd.xlane.f32.xlu1 %v3456_v20 }
 0xacf   :  { %v3976_v13 = vpop.f32.mrf.mxu1 }
 0xad0   :  { %v3977_v4 = vadd.f32 %v3976_v13, %v3975_v52  ;;  %v3457_v1 = vadd.f32 %v3433_v41, %v5522_v43 }
 0xad2   :  { %v3436_v49 = vadd.f32 %v3977_v4, %v3817_v18  ;;  %3469 = vadd.xlane.f32.xlu0 %v3457_v1 }
 0xad4   :  { %v3458_v10 = vadd.f32 %v3436_v49, %v5520_v12 }
 0xad6   :  { %v3978_v27 = vpop.f32.mrf.mxu1  ;;  %3471 = vadd.xlane.f32.xlu1 %v3458_v10 }
 0xad8   :  { %v3979_v59 = vpop.f32.mrf.mxu1 }
 0xad9   :  { %v3980_v46 = vadd.f32 %v3979_v59, %v3978_v27 }
 0xada   :  { %v3981_v14 = vpop.f32.mrf.mxu1 }
 0xadb   :  { %v3441_v40 = vadd.f32 %v3980_v46, %v3817_v18 }
 0xadc   :  { %v3982_v33 = vpop.f32.mrf.mxu1 }
 0xadd   :  { %v3983_v26 = vadd.f32 %v3982_v33, %v3981_v14  ;;  %v3459_v51 = vadd.f32 %v3441_v40, %v5529_v31  ;;  %v3834_v14 = vld [vmem:[%s5807_s17] ss:$0 sm:$0xff] }
 0xade   :  { %v3984_v30 = vpop.f32.mrf.mxu1  ;;  %v3835_v33 = vld [vmem:[%s5808_s18] ss:$0 sm:$0xff] }
 0xadf   :  { %v3444_v0 = vadd.f32 %v3983_v26, %v3817_v18  ;;  %3473 = vadd.xlane.f32.xlu0 %v3459_v51 }
 0xae0   :  { %v3985_v24 = vpop.f32.mrf.mxu1 }
 0xae1   :  { %v3986_v11 = vadd.f32 %v3985_v24, %v3984_v30  ;;  %v3460_v43 = vadd.f32 %v3444_v0, %v5531_v36  ;;  %v3581_v24 = vld [vmem:[%s5809_s19] sm:$0xff] }
 0xae2   :  { %v3987_v61 = vpop.f32.mrf.mxu1 }
 0xae3   :  { %v3449_v17 = vadd.f32 %v3986_v11, %v3817_v18  ;;  %3475 = vadd.xlane.f32.xlu1 %v3460_v43 }
 0xae4   :  { %v3988_v12 = vpop.f32.mrf.mxu1 }
 0xae5   :  { %v3989_v42 = vadd.f32 %v3988_v12, %v3987_v61  ;;  %v3461_v58 = vadd.f32 %v3449_v17, %v5540_v32 }
 0xae7   :  { %v3452_v63 = vadd.f32 %v3989_v42, %v3817_v18  ;;  %3477 = vadd.xlane.f32.xlu0 %v3461_v58 }
 0xae9   :  { %v3462_v45 = vadd.f32 %v3452_v63, %v5538_v22 }
 0xaeb   :  { %3479 = vadd.xlane.f32.xlu1 %v3462_v45 }
 0xb53   :  { %v3466_v31 = vpop.xlane.xlu0 %3465 }
 0xb54   :  { %v3481_v38 = vmul.f32 0.0078125, %v3466_v31 }
 0xb56   :  { %v3489_v6 = vsub.f32 %v3455_v54, %v3481_v38 }
 0xb57   :  { %v3468_v56 = vpop.xlane.xlu1 %3467 }
 0xb58   :  { %v3482_v19 = vmul.f32 0.0078125, %v3468_v56  ;;  %v3497_v3 = vmul.f32 %v3489_v6, %v3489_v6 }
 0xb5a   :  { %v5737_v34 = vsub.f32 %v3456_v20, %v3482_v19  ;;  %3505 = vadd.xlane.f32.xlu0 %v3497_v3 }
 0xb5b   :  { %v3470_v36 = vpop.xlane.xlu0 %3469 }
 0xb5c   :  { %v3483_v29 = vmul.f32 0.0078125, %v3470_v36  ;;  %v3498_v9 = vmul.f32 %v5737_v34, %v5737_v34 }
 0xb5e   :  { %v5741_v32 = vsub.f32 %v3457_v1, %v3483_v29  ;;  %3507 = vadd.xlane.f32.xlu1 %v3498_v9 }
 0xb5f   :  { %v3472_v39 = vpop.xlane.xlu1 %3471 }
 0xb60   :  { %v3484_v22 = vmul.f32 0.0078125, %v3472_v39  ;;  %v3499_v16 = vmul.f32 %v5741_v32, %v5741_v32 }
 0xb62   :  { %v5745_v8 = vsub.f32 %v3458_v10, %v3484_v22  ;;  %3509 = vadd.xlane.f32.xlu0 %v3499_v16 }
 0xb64   :  { %v3500_v15 = vmul.f32 %v5745_v8, %v5745_v8 }
 0xb66   :  { %3511 = vadd.xlane.f32.xlu1 %v3500_v15 }
 0xb68   :  { %v3474_v55 = vpop.xlane.xlu0 %3473 }
 0xb69   :  { %v3485_v47 = vmul.f32 0.0078125, %v3474_v55 }
 0xb6b   :  { %v5749_v35 = vsub.f32 %v3459_v51, %v3485_v47 }
 0xb6c   :  { %v3476_v5 = vpop.xlane.xlu1 %3475 }
 0xb6d   :  { %v3486_v23 = vmul.f32 0.0078125, %v3476_v5  ;;  %v3501_v48 = vmul.f32 %v5749_v35, %v5749_v35 }
 0xb6f   :  { %v5753_v18 = vsub.f32 %v3460_v43, %v3486_v23  ;;  %3513 = vadd.xlane.f32.xlu0 %v3501_v48 }
 0xb70   :  { %v3478_v53 = vpop.xlane.xlu0 %3477 }
 0xb71   :  { %v3487_v25 = vmul.f32 0.0078125, %v3478_v53  ;;  %v3502_v28 = vmul.f32 %v5753_v18, %v5753_v18 }
 0xb73   :  { %v5757_v62 = vsub.f32 %v3461_v58, %v3487_v25  ;;  %3515 = vadd.xlane.f32.xlu1 %v3502_v28 }
 0xb74   :  { %v3480_v21 = vpop.xlane.xlu1 %3479 }
 0xb75   :  { %v3488_v50 = vmul.f32 0.0078125, %v3480_v21  ;;  %v3503_v54 = vmul.f32 %v5757_v62, %v5757_v62 }
 0xb77   :  { %v5761_v44 = vsub.f32 %v3462_v45, %v3488_v50  ;;  %3517 = vadd.xlane.f32.xlu0 %v3503_v54 }
 0xb79   :  { %v3504_v57 = vmul.f32 %v5761_v44, %v5761_v44 }
 0xb7b   :  { %3519 = vadd.xlane.f32.xlu1 %v3504_v57 }
 0xbe3   :  { %v3506_v37 = vpop.xlane.xlu0 %3505 }
 0xbe4   :  { %v3521_v2 = vmul.f32 0.0078125, %v3506_v37 }
 0xbe6   :  { %v3529_v20 = vadd.f32 1e-05, %v3521_v2 }
 0xbe7   :  { %v3508_v52 = vpop.xlane.xlu1 %3507 }
 0xbe8   :  { %4497 = vrsqrt.f32 %v3529_v20  ;;  %v3522_v41 = vmul.f32 0.0078125, %v3508_v52 }
 0xbea   :  { %v3530_v13 = vadd.f32 1e-05, %v3522_v41 }
 0xbeb   :  { %v3510_v4 = vpop.xlane.xlu0 %3509 }
 0xbec   :  { %4499 = vrsqrt.f32 %v3530_v13  ;;  %v3523_v1 = vmul.f32 0.0078125, %v3510_v4 }
 0xbee   :  { %v3531_v49 = vadd.f32 1e-05, %v3523_v1 }
 0xbef   :  { %v3512_v10 = vpop.xlane.xlu1 %3511 }
 0xbf0   :  { %4501 = vrsqrt.f32 %v3531_v49  ;;  %v3524_v27 = vmul.f32 0.0078125, %v3512_v10 }
 0xbf2   :  { %v3532_v59 = vadd.f32 1e-05, %v3524_v27 }
 0xbf4   :  { %4503 = vrsqrt.f32 %v3532_v59 }
 0xbf5   :  { %v4498_v46 = vpop.eup %4497 }
 0xbf6   :  { %v3545_v40 = vmul.f32 %v4498_v46, %v3489_v6 }
 0xbf8   :  { %v3514_v26 = vpop.xlane.xlu0 %3513  ;;  %v3559_v51 = vmul.f32 %v3834_v14, %v3545_v40 }
 0xbf9   :  { %v4500_v30 = vpop.eup %4499  ;;  %v3525_v0 = vmul.f32 0.0078125, %v3514_v26 }
 0xbfa   :  { %v3573_v11 = vadd.f32 %v3835_v33, %v3559_v51  ;;  %v3546_v43 = vmul.f32 %v4500_v30, %v5737_v34 }
 0xbfb   :  { %v3533_v61 = vadd.f32 1e-05, %v3525_v0 }
 0xbfc   :  { %v3516_v17 = vpop.xlane.xlu1 %3515  ;;  %v3582_v12 = vmul.f32 %v3581_v24, %v3573_v11  ;;  %v3560_v42 = vmul.f32 %v3834_v14, %v3546_v43 }
 0xbfd   :  { %v4502_v58 = vpop.eup %4501  ;;  %4505 = vrsqrt.f32 %v3533_v61  ;;  %v3526_v63 = vmul.f32 0.0078125, %v3516_v17 }
 0xbfe   :  { %3590 = vadd.xlane.f32.xlu0 %v3582_v12  ;;  %v3574_v45 = vadd.f32 %v3835_v33, %v3560_v42  ;;  %v3547_v31 = vmul.f32 %v4502_v58, %v5741_v32  ;;  %v3658_v12 = vsub.s32 %v4997_v7, %v4791_v60 }
 0xbff   :  { %v3534_v38 = vadd.f32 1e-05, %v3526_v63 }
 0xc00   :  { %v3518_v6 = vpop.xlane.xlu0 %3517  ;;  %v3583_v56 = vmul.f32 %v3581_v24, %v3574_v45  ;;  %v3561_v19 = vmul.f32 %v3834_v14, %v3547_v31 }
 0xc01   :  { %v4504_v3 = vpop.eup %4503  ;;  %4507 = vrsqrt.f32 %v3534_v38  ;;  %v3527_v36 = vmul.f32 0.0078125, %v3518_v6 }
 0xc02   :  { %3592 = vadd.xlane.f32.xlu1 %v3583_v56  ;;  %v3575_v34 = vadd.f32 %v3835_v33, %v3561_v19  ;;  %v3548_v29 = vmul.f32 %v4504_v3, %v5745_v8 }
 0xc03   :  { %v3535_v9 = vadd.f32 1e-05, %v3527_v36 }
 0xc04   :  { %v3520_v39 = vpop.xlane.xlu1 %3519  ;;  %v3584_v22 = vmul.f32 %v3581_v24, %v3575_v34  ;;  %v3562_v16 = vmul.f32 %v3834_v14, %v3548_v29 }
 0xc05   :  { %4509 = vrsqrt.f32 %v3535_v9  ;;  %v3528_v15 = vmul.f32 0.0078125, %v3520_v39 }
 0xc06   :  { %3594 = vadd.xlane.f32.xlu0 %v3584_v22  ;;  %v3576_v55 = vadd.f32 %v3835_v33, %v3562_v16 }
 0xc07   :  { %v3536_v32 = vadd.f32 1e-05, %v3528_v15 }
 0xc08   :  { %v3585_v47 = vmul.f32 %v3581_v24, %v3576_v55 }
 0xc09   :  { %4511 = vrsqrt.f32 %v3536_v32 }
 0xc0a   :  { %v4506_v5 = vpop.eup %4505  ;;  %3596 = vadd.xlane.f32.xlu1 %v3585_v47 }
 0xc0b   :  { %v3549_v23 = vmul.f32 %v4506_v5, %v5749_v35 }
 0xc0d   :  { %v3563_v48 = vmul.f32 %v3834_v14, %v3549_v23 }
 0xc0e   :  { %v4508_v53 = vpop.eup %4507 }
 0xc0f   :  { %v3577_v25 = vadd.f32 %v3835_v33, %v3563_v48  ;;  %v3550_v8 = vmul.f32 %v4508_v53, %v5753_v18  ;;  %v3836_v18 = vld [vmem:[%s5810_s20] ss:$0 sm:$0xff] }
 0xc11   :  { %v3586_v28 = vmul.f32 %v3581_v24, %v3577_v25  ;;  %v3564_v21 = vmul.f32 %v3834_v14, %v3550_v8 }
 0xc12   :  { %v4510_v50 = vpop.eup %4509 }
 0xc13   :  { %3598 = vadd.xlane.f32.xlu0 %v3586_v28  ;;  %v3578_v54 = vadd.f32 %v3835_v33, %v3564_v21  ;;  %v3551_v57 = vmul.f32 %v4510_v50, %v5757_v62 }
 0xc15   :  { %v3587_v37 = vmul.f32 %v3581_v24, %v3578_v54  ;;  %v3565_v2 = vmul.f32 %v3834_v14, %v3551_v57 }
 0xc16   :  { %v4512_v20 = vpop.eup %4511 }
 0xc17   :  { %3600 = vadd.xlane.f32.xlu1 %v3587_v37  ;;  %v3579_v52 = vadd.f32 %v3835_v33, %v3565_v2  ;;  %v3552_v41 = vmul.f32 %v4512_v20, %v5761_v44 }
 0xc19   :  { %v3588_v35 = vmul.f32 %v3581_v24, %v3579_v52  ;;  %v3566_v13 = vmul.f32 %v3834_v14, %v3552_v41 }
 0xc1b   :  { %3602 = vadd.xlane.f32.xlu0 %v3588_v35  ;;  %v3580_v4 = vadd.f32 %v3835_v33, %v3566_v13 }
 0xc1d   :  { %v3589_v1 = vmul.f32 %v3581_v24, %v3580_v4 }
 0xc1f   :  { %3604 = vadd.xlane.f32.xlu1 %v3589_v1 }
 0xc31   :  { %3613 = vbcast.lane.b32.xlu0 %v3836_v18, 256 }
 0xc87   :  { %v3591_v49 = vpop.xlane.xlu0 %3590 }
 0xc8b   :  { %v3593_v27 = vpop.xlane.xlu1 %3592 }
 0xc8f   :  { %v3595_v62 = vpop.xlane.xlu0 %3594 }
 0xc93   :  { %v3597_v46 = vpop.xlane.xlu1 %3596 }
 0xc9c   :  { %v3599_v10 = vpop.xlane.xlu0 %3598 }
 0xca0   :  { %v3601_v0 = vpop.xlane.xlu1 %3600 }
 0xca4   :  { %v3603_v59 = vpop.xlane.xlu0 %3602 }
 0xca8   :  { %v3614_v40 = vpop.permute.xlu0 %3613  ;;  %v3605_v11 = vpop.xlane.xlu1 %3604 }
 0xca9   :  { %v3619_v26 = vadd.f32 %v3614_v40, %v3597_v46  ;;  %v3616_v44 = vadd.f32 %v3614_v40, %v3591_v49  ;;  %v3622_v14 = vadd.f32 %v3614_v40, %v3603_v59  ;;  %v3617_v33 = vadd.f32 %v3614_v40, %v3593_v27 }
 0xcaa   :  { %v3618_v51 = vadd.f32 %v3614_v40, %v3595_v62  ;;  %v3620_v30 = vadd.f32 %v3614_v40, %v3599_v10  ;;  %v3621_v24 = vadd.f32 %v3614_v40, %v3601_v0  ;;  %v3623_v43 = vadd.f32 %v3614_v40, %v3605_v11 }
 0xcab   :  { %3642 = vperm.xlu0 %4288, %v3619_v26   ;;  %3633 = vperm.xlu1 %4287, %v3616_v44  }
 0xcaf   :  { %3651 = vperm.xlu0 %4288, %v3622_v14   ;;  %3636 = vperm.xlu1 %4287, %v3617_v33  }
 0xcb3   :  { %3639 = vperm.xlu1 %4287, %v3618_v51  }
 0xcb7   :  { %3645 = vperm.xlu1 %4287, %v3620_v30  }
 0xcbb   :  { %3648 = vperm.xlu1 %4287, %v3621_v24  }
 0xcbf   :  { %3654 = vperm.xlu1 %4287, %v3623_v43  }
 0xd26   :  { %v3634_v61 = vpop.permute.xlu1 %3633  ;;  %v3643_v45 = vpop.permute.xlu0 %3642 }
 0xd27   :  { %v3659_v31 = vrot.slane %v3634_v61, %v3658_v12  ;;  %v3671_v3 = vrot.slane %v3643_v45, %v3658_v12 }
 0xd2a   :  { %v3637_v17 = vpop.permute.xlu1 %3636  ;;  %v3652_v34 = vpop.permute.xlu0 %3651 }
 0xd2b   :  { %v3663_v58 = vrot.slane %v3637_v17, %v3658_v12  ;;  %v3683_v39 = vrot.slane %v3652_v34, %v3658_v12 }
 0xd2d   :  { %v3689_v6 = vsel %vm3688_vm5, %v3663_v58, %v3659_v31 }
 0xd2e   :  { %v3640_v42 = vpop.permute.xlu1 %3639 }
 0xd2f   :  { %v3667_v63 = vrot.slane %v3640_v42, %v3658_v12 }
 0xd31   :  { %v3691_v56 = vsel %vm3690_vm6, %v3667_v63, %v3689_v6 }
 0xd32   :  { %v3646_v38 = vpop.permute.xlu1 %3645  ;;  %v3693_v29 = vsel %vm3692_vm7, %v3671_v3, %v3691_v56 }
 0xd33   :  { %v3675_v19 = vrot.slane %v3646_v38, %v3658_v12 }
 0xd35   :  { %v3695_v60 = vsel %vm3694_vm8, %v3675_v19, %v3693_v29 }
 0xd36   :  { %v3649_v36 = vpop.permute.xlu1 %3648 }
 0xd37   :  { %v3679_v9 = vrot.slane %v3649_v36, %v3658_v12 }
 0xd39   :  { %v3697_v7 = vsel %vm3696_vm9, %v3679_v9, %v3695_v60 }
 0xd3a   :  { %v3655_v22 = vpop.permute.xlu1 %3654  ;;  %v3699_v15 = vsel %vm3698_vm10, %v3683_v39, %v3697_v7 }
 0xd3b   :  { %v3687_v16 = vrot.slane %v3655_v22, %v3658_v12 }
 0xd3d   :  { %v3701_v55 = vsel %vm3700_vm11, %v3687_v16, %v3699_v15 }
 0xd3e   :  { %3703 = vst.msk [vmem:[%s5811_s21] sm:$0xff] %vm1188_vm4, %v3701_v55 }

</bundles_post_ra>
